<compile_context>
chip_gen: v7x
topology: tpu7x:2x2x1
jax: 0.10.0
libtpu: 0.0.40
codegen_flags: <defaults>
</compile_context>

<pallas_src>
import jax
import jax.numpy as jnp
from jax.experimental import pallas as pl
from jax.experimental.pallas import tpu as pltpu

NEG_SLOPE = 0.01            # nn.LeakyReLU default
BN_EPS = 1e-5               # nn.BatchNorm1d default
VMEM_LIMIT = 32 * 1024 * 1024


# ----------------------------- Pallas kernels -------------------------------
def _conv_stats_kernel(x_ref, w_ref, y_ref, st_ref):
    """One P-tile of the tap-folded conv + per-channel sum/sumsq partials.

    x_ref : (K*Cin, TP)   bf16 im2col taps (lane dim = points -> dense)
    w_ref : (Cout, K*Cin) bf16 folded weights
    y_ref : (Cout, TP)    f32 conv output tile
    st_ref: (1, Cout, 2)  f32 per-tile [sum, sumsq] partials
    """
    y = jnp.dot(w_ref[...], x_ref[...], preferred_element_type=jnp.float32)
    y_ref[...] = y
    s = jnp.sum(y, axis=1, keepdims=True)            # (Cout, 1)
    ss = jnp.sum(y * y, axis=1, keepdims=True)       # (Cout, 1)
    st_ref[...] = jnp.concatenate([s, ss], axis=1)[None]


def _bn_act_kernel(y_ref, scale_ref, shift_ref, o_ref):
    """Per-channel affine (folded BN) + LeakyReLU on one P-tile (f32 math)."""
    z = y_ref[...] * scale_ref[...] + shift_ref[...]
    o_ref[...] = jnp.where(z >= 0, z, NEG_SLOPE * z).astype(o_ref.dtype)


def _offset_head_kernel(x_ref, w1_ref, b1_ref, g_ref, bt_ref, w2_ref, b2_ref, o_ref):
    """Fused Linear -> BatchNorm1d (stats over this batch item) -> ReLU -> Linear."""
    x = x_ref[0]                                                       # (Cin+3, Npts)
    h = jnp.dot(w1_ref[...], x, preferred_element_type=jnp.float32) + b1_ref[...]
    mean = jnp.mean(h, axis=1, keepdims=True)
    var = jnp.mean(jnp.square(h - mean), axis=1, keepdims=True)
    hn = (h - mean) * jax.lax.rsqrt(var + BN_EPS) * g_ref[...] + bt_ref[...]
    hr = jnp.maximum(hn, 0.0)
    o_ref[...] = (jnp.dot(w2_ref[...], hr,
                          preferred_element_type=jnp.float32) + b2_ref[...])[None]


# ------------------------------ Pallas wrappers ------------------------------
def _pick_p_tile(P, preferred=512):
    t = preferred
    while t >= 128:
        if P % t == 0:
            return t
        t //= 2
    return P


def conv_pass(taps, w_r, *, p_tile):
    """taps (K*Cin, P), w_r (Cout, K*Cin) -> (y (Cout,P) f32, stats (nt,Cout,2))."""
    KC, P = taps.shape
    Cout = w_r.shape[0]
    nt = P // p_tile
    cost = pl.CostEstimate(
        flops=2 * P * KC * Cout,
        transcendentals=0,
        bytes_accessed=KC * P * 2 + Cout * KC * 2 + Cout * P * 4 + nt * Cout * 2 * 4)
    return pl.pallas_call(
        _conv_stats_kernel,
        out_shape=(jax.ShapeDtypeStruct((Cout, P), jnp.float32),
                   jax.ShapeDtypeStruct((nt, Cout, 2), jnp.float32)),
        grid_spec=pltpu.PrefetchScalarGridSpec(
            num_scalar_prefetch=0,
            grid=(nt,),
            in_specs=[pl.BlockSpec((KC, p_tile), lambda i: (0, i)),
                      pl.BlockSpec((Cout, KC), lambda i: (0, 0))],
            out_specs=[pl.BlockSpec((Cout, p_tile), lambda i: (0, i)),
                       pl.BlockSpec((1, Cout, 2), lambda i: (i, 0, 0))]),
        compiler_params=pltpu.CompilerParams(
            dimension_semantics=("parallel",),
            vmem_limit_bytes=VMEM_LIMIT),
        cost_estimate=cost,
    )(taps.astype(jnp.bfloat16), w_r.astype(jnp.bfloat16))


def bn_act(y, scale, shift, *, p_tile, out_dtype):
    Cout, P = y.shape
    nt = P // p_tile
    cost = pl.CostEstimate(
        flops=4 * P * Cout,
        transcendentals=0,
        bytes_accessed=Cout * P * 4 + Cout * P * jnp.dtype(out_dtype).itemsize + 2 * Cout * 4)
    return pl.pallas_call(
        _bn_act_kernel,
        out_shape=jax.ShapeDtypeStruct((Cout, P), out_dtype),
        grid_spec=pltpu.PrefetchScalarGridSpec(
            num_scalar_prefetch=0,
            grid=(nt,),
            in_specs=[pl.BlockSpec((Cout, p_tile), lambda i: (0, i)),
                      pl.BlockSpec((Cout, 1), lambda i: (0, 0)),
                      pl.BlockSpec((Cout, 1), lambda i: (0, 0))],
            out_specs=pl.BlockSpec((Cout, p_tile), lambda i: (0, i))),
        compiler_params=pltpu.CompilerParams(
            dimension_semantics=("parallel",),
            vmem_limit_bytes=VMEM_LIMIT),
        cost_estimate=cost,
    )(y, scale, shift)


def offset_head(x, w1, b1, g, bt, w2, b2):
    """x (Nb, Cin+3, Npts) -> (Nb, Emb, Npts); BN stats per batch item."""
    Nb, Cin_h, Npts = x.shape
    Ch = w1.shape[0]
    Emb = w2.shape[0]
    cost = pl.CostEstimate(
        flops=2 * Nb * Npts * (Cin_h * Ch + Ch * Emb) + 8 * Nb * Npts * Ch,
        transcendentals=Nb * Ch,
        bytes_accessed=x.size * 4 + Nb * Emb * Npts * 4)
    return pl.pallas_call(
        _offset_head_kernel,
        out_shape=jax.ShapeDtypeStruct((Nb, Emb, Npts), jnp.float32),
        grid_spec=pltpu.PrefetchScalarGridSpec(
            num_scalar_prefetch=0,
            grid=(Nb,),
            in_specs=[pl.BlockSpec((1, Cin_h, Npts), lambda b: (b, 0, 0)),
                      pl.BlockSpec((Ch, Cin_h), lambda b: (0, 0)),
                      pl.BlockSpec((Ch, 1), lambda b: (0, 0)),
                      pl.BlockSpec((Ch, 1), lambda b: (0, 0)),
                      pl.BlockSpec((Ch, 1), lambda b: (0, 0)),
                      pl.BlockSpec((Emb, Ch), lambda b: (0, 0)),
                      pl.BlockSpec((Emb, 1), lambda b: (0, 0))],
            out_specs=pl.BlockSpec((1, Emb, Npts), lambda b: (b, 0, 0))),
        compiler_params=pltpu.CompilerParams(
            dimension_semantics=("parallel",),
            vmem_limit_bytes=VMEM_LIMIT),
        cost_estimate=cost,
    )(x.astype(jnp.float32), w1, b1, g, bt, w2, b2)


# --------------------------------- JAX glue ----------------------------------
def im2col_cf(x_cndhw, ksize, pad, dtype=jnp.bfloat16):
    """Channels-first im2col: (C,N,D,H,W) -> (K*C, N*D*H*W); rows k-major/c-minor."""
    C, N, D, H, W = x_cndhw.shape
    kd, kh, kw = ksize
    pd, ph, pw = pad
    xp = jnp.pad(x_cndhw, ((0, 0), (0, 0), (pd, pd), (ph, ph), (pw, pw)))
    taps = []
    for i in range(kd):
        for j in range(kh):
            for l in range(kw):
                taps.append(xp[:, :, i:i + D, j:j + H, l:l + W]
                            .reshape(C, N * D * H * W))
    return jnp.concatenate(taps, axis=0).astype(dtype)


def conv_bn_act_layer(x_cf, w_r, gamma, beta, *, out_dtype):
    """SubMConv3d(k=3,p=1,no bias) -> BatchNorm1d(train batch stats) -> LeakyReLU."""
    C, N, D, H, W = x_cf.shape
    P = N * D * H * W
    Cout = w_r.shape[0]
    p_tile = _pick_p_tile(P)
    taps = im2col_cf(x_cf, (3, 3, 3), (1, 1, 1))             # (27*C, P) bf16
    y, stats = conv_pass(taps, w_r, p_tile=p_tile)           # (Cout,P) f32, (nt,Cout,2)
    s = jnp.sum(stats, axis=0)                               # (Cout, 2)
    mean = s[:, 0] / P
    var = s[:, 1] / P - mean * mean                          # biased var (PyTorch fwd)
    inv = jax.lax.rsqrt(var + BN_EPS)
    scale = (gamma * inv).reshape(-1, 1)
    shift = (beta - mean * gamma * inv).reshape(-1, 1)
    out = bn_act(y, scale, shift, p_tile=p_tile, out_dtype=out_dtype)
    return out.reshape(Cout, N, D, H, W)


def forward(x_ncdhw, grid_ind, xyz, params):
    """Returns (pt_pred_offsets_list, pt_ins_fea_list) like the PyTorch module."""
    N = x_ncdhw.shape[0]
    x_cf = jnp.transpose(x_ncdhw, (1, 0, 2, 3, 4))           # (C, N, D, H, W)

    f = conv_bn_act_layer(x_cf, params["w1"], params["bn1_g"], params["bn1_b"],
                          out_dtype=jnp.bfloat16)
    f = conv_bn_act_layer(f, params["w2"], params["bn2_g"], params["bn2_b"],
                          out_dtype=jnp.bfloat16)
    f = conv_bn_act_layer(f, params["w3"], params["bn3_g"], params["bn3_b"],
                          out_dtype=jnp.float32)             # (init_size, N, D, H, W)

    # dense()/permute + per-batch point gather (data-dependent -> JAX/XLA gather glue)
    fea_list = []
    for b in range(N):
        item = f[:, b]                                       # (init_size, D, H, W)
        gi = grid_ind[b]
        fea_list.append(item[:, gi[:, 0], gi[:, 1], gi[:, 2]])   # (init_size, Npts)

    head_in = jnp.stack(
        [jnp.concatenate([fea_list[b], xyz[b].T.astype(jnp.float32)], axis=0)
         for b in range(N)], axis=0)                         # (N, init_size+3, Npts)

    offs = offset_head(head_in, params["off_w1"], params["off_b1"],
                       params["off_bn_g"].reshape(-1, 1),
                       params["off_bn_b"].reshape(-1, 1),
                       params["off_w2"], params["off_b2"])   # (N, Emb, Npts)

    pt_pred_offsets_list = [offs[b].T for b in range(N)]     # (Npts, Emb)
    pt_ins_fea_list = [fea_list[b].T for b in range(N)]      # (Npts, init_size)
    return pt_pred_offsets_list, pt_ins_fea_list


# ----------------------------- synthetic params ------------------------------
def init_params(key, init_size, embedding_dim):
    pt_fea_dim = 4 * init_size
    ks = jax.random.split(key, 11)

    def conv_w(k, cin, cout):
        w = 0.1 * jax.random.normal(k, (3, 3, 3, cin, cout), jnp.float32)
        return w.reshape(27 * cin, cout).T          # (cout, 27*cin), k-major/c-minor

    def bn_par(k, c):
        g = 1.0 + 0.05 * jax.random.normal(k, (c,), jnp.float32)
        b = 0.05 * jax.random.normal(jax.random.fold_in(k, 1), (c,), jnp.float32)
        return g, b

    p = {}
    p["w1"] = conv_w(ks[0], pt_fea_dim, pt_fea_dim)
    p["w2"] = conv_w(ks[1], pt_fea_dim, 2 * init_size)
    p["w3"] = conv_w(ks[2], 2 * init_size, init_size)
    p["bn1_g"], p["bn1_b"] = bn_par(ks[3], pt_fea_dim)
    p["bn2_g"], p["bn2_b"] = bn_par(ks[4], 2 * init_size)
    p["bn3_g"], p["bn3_b"] = bn_par(ks[5], init_size)
    p["off_w1"] = 0.1 * jax.random.normal(ks[6], (init_size, init_size + 3), jnp.float32)
    p["off_b1"] = 0.05 * jax.random.normal(ks[7], (init_size, 1), jnp.float32)
    p["off_bn_g"], p["off_bn_b"] = bn_par(ks[8], init_size)
    p["off_w2"] = 0.1 * jax.random.normal(ks[9], (embedding_dim, init_size), jnp.float32)
    p["off_b2"] = 0.05 * jax.random.normal(ks[10], (embedding_dim, 1), jnp.float32)
    return p


# ------------------------- pure-JAX f32 reference ----------------------------
def reference_forward(x_ncdhw, grid_ind, xyz, params):
    def conv_layer(x_cf, w_r, gamma, beta):
        C, N, D, H, W = x_cf.shape
        taps = im2col_cf(x_cf, (3, 3, 3), (1, 1, 1), dtype=jnp.float32)
        y = jnp.dot(w_r, taps)                               # (Cout, P)
        mean = jnp.mean(y, axis=1, keepdims=True)
        var = jnp.mean(y * y, axis=1, keepdims=True) - mean * mean
        z = (y - mean) * jax.lax.rsqrt(var + BN_EPS) * gamma.reshape(-1, 1) \
            + beta.reshape(-1, 1)
        z = jnp.where(z >= 0, z, NEG_SLOPE * z)
        return z.reshape(w_r.shape[0], N, D, H, W)

    N = x_ncdhw.shape[0]
    x_cf = jnp.transpose(x_ncdhw, (1, 0, 2, 3, 4))
    f = conv_layer(x_cf, params["w1"], params["bn1_g"], params["bn1_b"])
    f = conv_layer(f, params["w2"], params["bn2_g"], params["bn2_b"])
    f = conv_layer(f, params["w3"], params["bn3_g"], params["bn3_b"])

    offs_list, fea_list = [], []
    for b in range(N):
        item = f[:, b]
        gi = grid_ind[b]
        g = item[:, gi[:, 0], gi[:, 1], gi[:, 2]]            # (init_size, Npts)
        xcat = jnp.concatenate([g, xyz[b].T], axis=0)
        h = params["off_w1"] @ xcat + params["off_b1"]
        mean = jnp.mean(h, axis=1, keepdims=True)
        var = jnp.mean(jnp.square(h - mean), axis=1, keepdims=True)
        hn = (h - mean) * jax.lax.rsqrt(var + BN_EPS) * params["off_bn_g"].reshape(-1, 1) \
             + params["off_bn_b"].reshape(-1, 1)
        hr = jnp.maximum(hn, 0.0)
        off = params["off_w2"] @ hr + params["off_b2"]
        offs_list.append(off.T)
        fea_list.append(g.T)
    return offs_list, fea_list


# ----------------------------------- main ------------------------------------
if __name__ == "__main__":
    key = jax.random.PRNGKey(0)
    k_x, k_g, k_xyz, k_p = jax.random.split(key, 4)

    # init_size=8 -> pt_fea_dim=32, conv2 out=16, conv3 out=8; embedding_dim=16
    # dense voxel grid (N, C, D, H, W) = (2, 32, 8, 8, 8); 256 points per sample
    INIT_SIZE, EMB = 8, 16
    N, D, H, W = 2, 8, 8, 8
    NPTS = 256
    PT_FEA = 4 * INIT_SIZE

    x = jax.random.normal(k_x, (N, PT_FEA, D, H, W), jnp.float32)
    grid_ind = jax.random.randint(k_g, (N, NPTS, 3), 0, D)       # D == H == W here
    xyz = jax.random.normal(k_xyz, (N, NPTS, 3), jnp.float32)
    params = init_params(k_p, INIT_SIZE, EMB)

    fwd = jax.jit(forward)
    offs_list, fea_list = jax.block_until_ready(fwd(x, grid_ind, xyz, params))

    assert offs_list[0].shape == (NPTS, EMB)
    assert fea_list[0].shape == (NPTS, INIT_SIZE)
    assert all(bool(jnp.all(jnp.isfinite(o))) for o in offs_list + fea_list)

    # loose check vs pure-f32 reference (kernel path uses bf16 taps/weights/activations)
    ref_offs, ref_fea = reference_forward(x, grid_ind, xyz, params)
    for a, b in zip(offs_list + fea_list, ref_offs + ref_fea):
        err = float(jnp.max(jnp.abs(a - b)))
        assert err < 0.2, f"mismatch vs reference: {err}"

    print("KERNEL_OK")
</pallas_src>

<mosaic_0001>
module attributes {stable_mosaic.version = 11 : i64} {
  func.func @_conv_stats_kernel(%arg0: i32, %arg1: memref<864x512xbf16, #tpu.memory_space<vmem>>, %arg2: memref<32x864xbf16, #tpu.memory_space<vmem>>, %arg3: memref<32x512xf32, #tpu.memory_space<vmem>>, %arg4: memref<1x32x2xf32, #tpu.memory_space<vmem>>) attributes {dimension_semantics = [#tpu.dimension_semantics<parallel>], iteration_bounds = array<i64: 2>, scalar_prefetch = 0 : i64, scratch_operands = 0 : i64, tpu.core_type = #tpu.core_type<tc>, window_params = [{transform_indices = @transform_0, window_bounds = array<i64: 864, 512>}, {pipeline_mode = #tpu.pipeline_mode<synchronous>, transform_indices = @transform_1, window_bounds = array<i64: 32, 864>}, {transform_indices = @transform_2, window_bounds = array<i64: 32, 512>}, {transform_indices = @transform_3, window_bounds = array<i64: 1, 32, 2>}]} {
    %c0 = arith.constant 0 : index
    %c0_0 = arith.constant 0 : index
    %0 = vector.load %arg2[%c0, %c0_0] : memref<32x864xbf16, #tpu.memory_space<vmem>>, vector<32x864xbf16>
    %c0_1 = arith.constant 0 : index
    %c0_2 = arith.constant 0 : index
    %1 = vector.load %arg1[%c0_1, %c0_2] : memref<864x512xbf16, #tpu.memory_space<vmem>>, vector<864x512xbf16>
    %cst = arith.constant dense<0.000000e+00> : vector<32x512xf32>
    %2 = tpu.matmul %0, %1, %cst {dimension_numbers = #tpu.dot_dimension_numbers<[1], [0], [0], [1], [0, 0, 1, 1], [], []>} : vector<32x864xbf16>, vector<864x512xbf16>, vector<32x512xf32> -> vector<32x512xf32>
    %c0_3 = arith.constant 0 : index
    %c0_4 = arith.constant 0 : index
    %3 = vector.load %arg3[%c0_3, %c0_4] : memref<32x512xf32, #tpu.memory_space<vmem>>, vector<32x512xf32>
    tpu.vector_store %arg3[%c0_3, %c0_4], %2 {strides = array<i32>} : memref<32x512xf32, #tpu.memory_space<vmem>>, vector<32x512xf32>,
    %cst_5 = arith.constant dense<0.000000e+00> : vector<32xf32>
    %4 = vector.multi_reduction <add>, %2, %cst_5 [1] : vector<32x512xf32> to vector<32xf32>
    %5 = vector.shape_cast %4 : vector<32xf32> to vector<32x1xf32>
    %6 = arith.mulf %2, %2 : vector<32x512xf32>
    %cst_6 = arith.constant dense<0.000000e+00> : vector<32xf32>
    %7 = vector.multi_reduction <add>, %6, %cst_6 [1] : vector<32x512xf32> to vector<32xf32>
    %8 = vector.shape_cast %7 : vector<32xf32> to vector<32x1xf32>
    %9 = tpu.concatenate %5, %8 in 1 : vector<32x1xf32>, vector<32x1xf32> -> vector<32x2xf32>
    %10 = vector.shape_cast %9 : vector<32x2xf32> to vector<1x32x2xf32>
    %c0_7 = arith.constant 0 : index
    %c0_8 = arith.constant 0 : index
    %c0_9 = arith.constant 0 : index
    %11 = vector.load %arg4[%c0_7, %c0_8, %c0_9] : memref<1x32x2xf32, #tpu.memory_space<vmem>>, vector<1x32x2xf32>
    tpu.vector_store %arg4[%c0_7, %c0_8, %c0_9], %10 {strides = array<i32>} : memref<1x32x2xf32, #tpu.memory_space<vmem>>, vector<1x32x2xf32>,
    return
  }
  func.func @transform_0(%arg0: i32) -> (i32, i32) {
    %c0_i32 = arith.constant 0 : i32
    %c0_i32_0 = arith.constant 0 : i32
    return %c0_i32, %arg0 : i32, i32
  }
  func.func @transform_1(%arg0: i32) -> (i32, i32) {
    %c0_i32 = arith.constant 0 : i32
    %c0_i32_0 = arith.constant 0 : i32
    %c0_i32_1 = arith.constant 0 : i32
    return %c0_i32, %c0_i32_0 : i32, i32
  }
  func.func @transform_2(%arg0: i32) -> (i32, i32) {
    %c0_i32 = arith.constant 0 : i32
    %c0_i32_0 = arith.constant 0 : i32
    return %c0_i32, %arg0 : i32, i32
  }
  func.func @transform_3(%arg0: i32) -> (i32, i32, i32) {
    %c0_i32 = arith.constant 0 : i32
    %c0_i32_0 = arith.constant 0 : i32
    %c0_i32_1 = arith.constant 0 : i32
    return %arg0, %c0_i32, %c0_i32_0 : i32, i32, i32
  }
}

module attributes {stable_mosaic.version = 11 : i64} {
  func.func @_bn_act_kernel(%arg0: i32, %arg1: memref<32x512xf32, #tpu.memory_space<vmem>>, %arg2: memref<32x1xf32, #tpu.memory_space<vmem>>, %arg3: memref<32x1xf32, #tpu.memory_space<vmem>>, %arg4: memref<32x512xbf16, #tpu.memory_space<vmem>>) attributes {dimension_semantics = [#tpu.dimension_semantics<parallel>], iteration_bounds = array<i64: 2>, scalar_prefetch = 0 : i64, scratch_operands = 0 : i64, tpu.core_type = #tpu.core_type<tc>, window_params = [{transform_indices = @transform_0, window_bounds = array<i64: 32, 512>}, {pipeline_mode = #tpu.pipeline_mode<synchronous>, transform_indices = @transform_1, window_bounds = array<i64: 32, 1>}, {pipeline_mode = #tpu.pipeline_mode<synchronous>, transform_indices = @transform_2, window_bounds = array<i64: 32, 1>}, {transform_indices = @transform_3, window_bounds = array<i64: 32, 512>}]} {
    %c0 = arith.constant 0 : index
    %c0_0 = arith.constant 0 : index
    %0 = vector.load %arg1[%c0, %c0_0] : memref<32x512xf32, #tpu.memory_space<vmem>>, vector<32x512xf32>
    %c0_1 = arith.constant 0 : index
    %c0_2 = arith.constant 0 : index
    %1 = vector.load %arg2[%c0_1, %c0_2] : memref<32x1xf32, #tpu.memory_space<vmem>>, vector<32x1xf32>
    %2 = vector.broadcast %1 : vector<32x1xf32> to vector<32x512xf32>
    %3 = arith.mulf %0, %2 : vector<32x512xf32>
    %c0_3 = arith.constant 0 : index
    %c0_4 = arith.constant 0 : index
    %4 = vector.load %arg3[%c0_3, %c0_4] : memref<32x1xf32, #tpu.memory_space<vmem>>, vector<32x1xf32>
    %5 = vector.broadcast %4 : vector<32x1xf32> to vector<32x512xf32>
    %6 = arith.addf %3, %5 : vector<32x512xf32>
    %cst = arith.constant 0.000000e+00 : f32
    %7 = vector.broadcast %cst : f32 to vector<32x512xf32>
    %8 = arith.cmpf oge, %6, %7 : vector<32x512xf32>
    %cst_5 = arith.constant 0.00999999977 : f32
    %9 = vector.broadcast %cst_5 : f32 to vector<32x512xf32>
    %10 = arith.mulf %9, %6 : vector<32x512xf32>
    %11 = arith.select %8, %6, %10 : vector<32x512xi1>, vector<32x512xf32>
    %12 = arith.truncf %11 : vector<32x512xf32> to vector<32x512xbf16>
    %c0_6 = arith.constant 0 : index
    %c0_7 = arith.constant 0 : index
    %13 = vector.load %arg4[%c0_6, %c0_7] : memref<32x512xbf16, #tpu.memory_space<vmem>>, vector<32x512xbf16>
    tpu.vector_store %arg4[%c0_6, %c0_7], %12 {strides = array<i32>} : memref<32x512xbf16, #tpu.memory_space<vmem>>, vector<32x512xbf16>,
    return
  }
  func.func @transform_0(%arg0: i32) -> (i32, i32) {
    %c0_i32 = arith.constant 0 : i32
    %c0_i32_0 = arith.constant 0 : i32
    return %c0_i32, %arg0 : i32, i32
  }
  func.func @transform_1(%arg0: i32) -> (i32, i32) {
    %c0_i32 = arith.constant 0 : i32
    %c0_i32_0 = arith.constant 0 : i32
    %c0_i32_1 = arith.constant 0 : i32
    return %c0_i32, %c0_i32_0 : i32, i32
  }
  func.func @transform_2(%arg0: i32) -> (i32, i32) {
    %c0_i32 = arith.constant 0 : i32
    %c0_i32_0 = arith.constant 0 : i32
    %c0_i32_1 = arith.constant 0 : i32
    return %c0_i32, %c0_i32_0 : i32, i32
  }
  func.func @transform_3(%arg0: i32) -> (i32, i32) {
    %c0_i32 = arith.constant 0 : i32
    %c0_i32_0 = arith.constant 0 : i32
    return %c0_i32, %arg0 : i32, i32
  }
}

module attributes {stable_mosaic.version = 11 : i64} {
  func.func @_conv_stats_kernel(%arg0: i32, %arg1: memref<864x512xbf16, #tpu.memory_space<vmem>>, %arg2: memref<16x864xbf16, #tpu.memory_space<vmem>>, %arg3: memref<16x512xf32, #tpu.memory_space<vmem>>, %arg4: memref<1x16x2xf32, #tpu.memory_space<vmem>>) attributes {dimension_semantics = [#tpu.dimension_semantics<parallel>], iteration_bounds = array<i64: 2>, scalar_prefetch = 0 : i64, scratch_operands = 0 : i64, tpu.core_type = #tpu.core_type<tc>, window_params = [{transform_indices = @transform_0, window_bounds = array<i64: 864, 512>}, {pipeline_mode = #tpu.pipeline_mode<synchronous>, transform_indices = @transform_1, window_bounds = array<i64: 16, 864>}, {transform_indices = @transform_2, window_bounds = array<i64: 16, 512>}, {transform_indices = @transform_3, window_bounds = array<i64: 1, 16, 2>}]} {
    %c0 = arith.constant 0 : index
    %c0_0 = arith.constant 0 : index
    %0 = vector.load %arg2[%c0, %c0_0] : memref<16x864xbf16, #tpu.memory_space<vmem>>, vector<16x864xbf16>
    %c0_1 = arith.constant 0 : index
    %c0_2 = arith.constant 0 : index
    %1 = vector.load %arg1[%c0_1, %c0_2] : memref<864x512xbf16, #tpu.memory_space<vmem>>, vector<864x512xbf16>
    %cst = arith.constant dense<0.000000e+00> : vector<16x512xf32>
    %2 = tpu.matmul %0, %1, %cst {dimension_numbers = #tpu.dot_dimension_numbers<[1], [0], [0], [1], [0, 0, 1, 1], [], []>} : vector<16x864xbf16>, vector<864x512xbf16>, vector<16x512xf32> -> vector<16x512xf32>
    %c0_3 = arith.constant 0 : index
    %c0_4 = arith.constant 0 : index
    %3 = vector.load %arg3[%c0_3, %c0_4] : memref<16x512xf32, #tpu.memory_space<vmem>>, vector<16x512xf32>
    tpu.vector_store %arg3[%c0_3, %c0_4], %2 {strides = array<i32>} : memref<16x512xf32, #tpu.memory_space<vmem>>, vector<16x512xf32>,
    %cst_5 = arith.constant dense<0.000000e+00> : vector<16xf32>
    %4 = vector.multi_reduction <add>, %2, %cst_5 [1] : vector<16x512xf32> to vector<16xf32>
    %5 = vector.shape_cast %4 : vector<16xf32> to vector<16x1xf32>
    %6 = arith.mulf %2, %2 : vector<16x512xf32>
    %cst_6 = arith.constant dense<0.000000e+00> : vector<16xf32>
    %7 = vector.multi_reduction <add>, %6, %cst_6 [1] : vector<16x512xf32> to vector<16xf32>
    %8 = vector.shape_cast %7 : vector<16xf32> to vector<16x1xf32>
    %9 = tpu.concatenate %5, %8 in 1 : vector<16x1xf32>, vector<16x1xf32> -> vector<16x2xf32>
    %10 = vector.shape_cast %9 : vector<16x2xf32> to vector<1x16x2xf32>
    %c0_7 = arith.constant 0 : index
    %c0_8 = arith.constant 0 : index
    %c0_9 = arith.constant 0 : index
    %11 = vector.load %arg4[%c0_7, %c0_8, %c0_9] : memref<1x16x2xf32, #tpu.memory_space<vmem>>, vector<1x16x2xf32>
    tpu.vector_store %arg4[%c0_7, %c0_8, %c0_9], %10 {strides = array<i32>} : memref<1x16x2xf32, #tpu.memory_space<vmem>>, vector<1x16x2xf32>,
    return
  }
  func.func @transform_0(%arg0: i32) -> (i32, i32) {
    %c0_i32 = arith.constant 0 : i32
    %c0_i32_0 = arith.constant 0 : i32
    return %c0_i32, %arg0 : i32, i32
  }
  func.func @transform_1(%arg0: i32) -> (i32, i32) {
    %c0_i32 = arith.constant 0 : i32
    %c0_i32_0 = arith.constant 0 : i32
    %c0_i32_1 = arith.constant 0 : i32
    return %c0_i32, %c0_i32_0 : i32, i32
  }
  func.func @transform_2(%arg0: i32) -> (i32, i32) {
    %c0_i32 = arith.constant 0 : i32
    %c0_i32_0 = arith.constant 0 : i32
    return %c0_i32, %arg0 : i32, i32
  }
  func.func @transform_3(%arg0: i32) -> (i32, i32, i32) {
    %c0_i32 = arith.constant 0 : i32
    %c0_i32_0 = arith.constant 0 : i32
    %c0_i32_1 = arith.constant 0 : i32
    return %arg0, %c0_i32, %c0_i32_0 : i32, i32, i32
  }
}

module attributes {stable_mosaic.version = 11 : i64} {
  func.func @_bn_act_kernel(%arg0: i32, %arg1: memref<16x512xf32, #tpu.memory_space<vmem>>, %arg2: memref<16x1xf32, #tpu.memory_space<vmem>>, %arg3: memref<16x1xf32, #tpu.memory_space<vmem>>, %arg4: memref<16x512xbf16, #tpu.memory_space<vmem>>) attributes {dimension_semantics = [#tpu.dimension_semantics<parallel>], iteration_bounds = array<i64: 2>, scalar_prefetch = 0 : i64, scratch_operands = 0 : i64, tpu.core_type = #tpu.core_type<tc>, window_params = [{transform_indices = @transform_0, window_bounds = array<i64: 16, 512>}, {pipeline_mode = #tpu.pipeline_mode<synchronous>, transform_indices = @transform_1, window_bounds = array<i64: 16, 1>}, {pipeline_mode = #tpu.pipeline_mode<synchronous>, transform_indices = @transform_2, window_bounds = array<i64: 16, 1>}, {transform_indices = @transform_3, window_bounds = array<i64: 16, 512>}]} {
    %c0 = arith.constant 0 : index
    %c0_0 = arith.constant 0 : index
    %0 = vector.load %arg1[%c0, %c0_0] : memref<16x512xf32, #tpu.memory_space<vmem>>, vector<16x512xf32>
    %c0_1 = arith.constant 0 : index
    %c0_2 = arith.constant 0 : index
    %1 = vector.load %arg2[%c0_1, %c0_2] : memref<16x1xf32, #tpu.memory_space<vmem>>, vector<16x1xf32>
    %2 = vector.broadcast %1 : vector<16x1xf32> to vector<16x512xf32>
    %3 = arith.mulf %0, %2 : vector<16x512xf32>
    %c0_3 = arith.constant 0 : index
    %c0_4 = arith.constant 0 : index
    %4 = vector.load %arg3[%c0_3, %c0_4] : memref<16x1xf32, #tpu.memory_space<vmem>>, vector<16x1xf32>
    %5 = vector.broadcast %4 : vector<16x1xf32> to vector<16x512xf32>
    %6 = arith.addf %3, %5 : vector<16x512xf32>
    %cst = arith.constant 0.000000e+00 : f32
    %7 = vector.broadcast %cst : f32 to vector<16x512xf32>
    %8 = arith.cmpf oge, %6, %7 : vector<16x512xf32>
    %cst_5 = arith.constant 0.00999999977 : f32
    %9 = vector.broadcast %cst_5 : f32 to vector<16x512xf32>
    %10 = arith.mulf %9, %6 : vector<16x512xf32>
    %11 = arith.select %8, %6, %10 : vector<16x512xi1>, vector<16x512xf32>
    %12 = arith.truncf %11 : vector<16x512xf32> to vector<16x512xbf16>
    %c0_6 = arith.constant 0 : index
    %c0_7 = arith.constant 0 : index
    %13 = vector.load %arg4[%c0_6, %c0_7] : memref<16x512xbf16, #tpu.memory_space<vmem>>, vector<16x512xbf16>
    tpu.vector_store %arg4[%c0_6, %c0_7], %12 {strides = array<i32>} : memref<16x512xbf16, #tpu.memory_space<vmem>>, vector<16x512xbf16>,
    return
  }
  func.func @transform_0(%arg0: i32) -> (i32, i32) {
    %c0_i32 = arith.constant 0 : i32
    %c0_i32_0 = arith.constant 0 : i32
    return %c0_i32, %arg0 : i32, i32
  }
  func.func @transform_1(%arg0: i32) -> (i32, i32) {
    %c0_i32 = arith.constant 0 : i32
    %c0_i32_0 = arith.constant 0 : i32
    %c0_i32_1 = arith.constant 0 : i32
    return %c0_i32, %c0_i32_0 : i32, i32
  }
  func.func @transform_2(%arg0: i32) -> (i32, i32) {
    %c0_i32 = arith.constant 0 : i32
    %c0_i32_0 = arith.constant 0 : i32
    %c0_i32_1 = arith.constant 0 : i32
    return %c0_i32, %c0_i32_0 : i32, i32
  }
  func.func @transform_3(%arg0: i32) -> (i32, i32) {
    %c0_i32 = arith.constant 0 : i32
    %c0_i32_0 = arith.constant 0 : i32
    return %c0_i32, %arg0 : i32, i32
  }
}

module attributes {stable_mosaic.version = 11 : i64} {
  func.func @_conv_stats_kernel(%arg0: i32, %arg1: memref<432x512xbf16, #tpu.memory_space<vmem>>, %arg2: memref<8x432xbf16, #tpu.memory_space<vmem>>, %arg3: memref<8x512xf32, #tpu.memory_space<vmem>>, %arg4: memref<1x8x2xf32, #tpu.memory_space<vmem>>) attributes {dimension_semantics = [#tpu.dimension_semantics<parallel>], iteration_bounds = array<i64: 2>, scalar_prefetch = 0 : i64, scratch_operands = 0 : i64, tpu.core_type = #tpu.core_type<tc>, window_params = [{transform_indices = @transform_0, window_bounds = array<i64: 432, 512>}, {pipeline_mode = #tpu.pipeline_mode<synchronous>, transform_indices = @transform_1, window_bounds = array<i64: 8, 432>}, {transform_indices = @transform_2, window_bounds = array<i64: 8, 512>}, {transform_indices = @transform_3, window_bounds = array<i64: 1, 8, 2>}]} {
    %c0 = arith.constant 0 : index
    %c0_0 = arith.constant 0 : index
    %0 = vector.load %arg2[%c0, %c0_0] : memref<8x432xbf16, #tpu.memory_space<vmem>>, vector<8x432xbf16>
    %c0_1 = arith.constant 0 : index
    %c0_2 = arith.constant 0 : index
    %1 = vector.load %arg1[%c0_1, %c0_2] : memref<432x512xbf16, #tpu.memory_space<vmem>>, vector<432x512xbf16>
    %cst = arith.constant dense<0.000000e+00> : vector<8x512xf32>
    %2 = tpu.matmul %0, %1, %cst {dimension_numbers = #tpu.dot_dimension_numbers<[1], [0], [0], [1], [0, 0, 1, 1], [], []>} : vector<8x432xbf16>, vector<432x512xbf16>, vector<8x512xf32> -> vector<8x512xf32>
    %c0_3 = arith.constant 0 : index
    %c0_4 = arith.constant 0 : index
    %3 = vector.load %arg3[%c0_3, %c0_4] : memref<8x512xf32, #tpu.memory_space<vmem>>, vector<8x512xf32>
    tpu.vector_store %arg3[%c0_3, %c0_4], %2 {strides = array<i32>} : memref<8x512xf32, #tpu.memory_space<vmem>>, vector<8x512xf32>,
    %cst_5 = arith.constant dense<0.000000e+00> : vector<8xf32>
    %4 = vector.multi_reduction <add>, %2, %cst_5 [1] : vector<8x512xf32> to vector<8xf32>
    %5 = vector.shape_cast %4 : vector<8xf32> to vector<8x1xf32>
    %6 = arith.mulf %2, %2 : vector<8x512xf32>
    %cst_6 = arith.constant dense<0.000000e+00> : vector<8xf32>
    %7 = vector.multi_reduction <add>, %6, %cst_6 [1] : vector<8x512xf32> to vector<8xf32>
    %8 = vector.shape_cast %7 : vector<8xf32> to vector<8x1xf32>
    %9 = tpu.concatenate %5, %8 in 1 : vector<8x1xf32>, vector<8x1xf32> -> vector<8x2xf32>
    %10 = vector.shape_cast %9 : vector<8x2xf32> to vector<1x8x2xf32>
    %c0_7 = arith.constant 0 : index
    %c0_8 = arith.constant 0 : index
    %c0_9 = arith.constant 0 : index
    %11 = vector.load %arg4[%c0_7, %c0_8, %c0_9] : memref<1x8x2xf32, #tpu.memory_space<vmem>>, vector<1x8x2xf32>
    tpu.vector_store %arg4[%c0_7, %c0_8, %c0_9], %10 {strides = array<i32>} : memref<1x8x2xf32, #tpu.memory_space<vmem>>, vector<1x8x2xf32>,
    return
  }
  func.func @transform_0(%arg0: i32) -> (i32, i32) {
    %c0_i32 = arith.constant 0 : i32
    %c0_i32_0 = arith.constant 0 : i32
    return %c0_i32, %arg0 : i32, i32
  }
  func.func @transform_1(%arg0: i32) -> (i32, i32) {
    %c0_i32 = arith.constant 0 : i32
    %c0_i32_0 = arith.constant 0 : i32
    %c0_i32_1 = arith.constant 0 : i32
    return %c0_i32, %c0_i32_0 : i32, i32
  }
  func.func @transform_2(%arg0: i32) -> (i32, i32) {
    %c0_i32 = arith.constant 0 : i32
    %c0_i32_0 = arith.constant 0 : i32
    return %c0_i32, %arg0 : i32, i32
  }
  func.func @transform_3(%arg0: i32) -> (i32, i32, i32) {
    %c0_i32 = arith.constant 0 : i32
    %c0_i32_0 = arith.constant 0 : i32
    %c0_i32_1 = arith.constant 0 : i32
    return %arg0, %c0_i32, %c0_i32_0 : i32, i32, i32
  }
}

module attributes {stable_mosaic.version = 11 : i64} {
  func.func @_bn_act_kernel(%arg0: i32, %arg1: memref<8x512xf32, #tpu.memory_space<vmem>>, %arg2: memref<8x1xf32, #tpu.memory_space<vmem>>, %arg3: memref<8x1xf32, #tpu.memory_space<vmem>>, %arg4: memref<8x512xf32, #tpu.memory_space<vmem>>) attributes {dimension_semantics = [#tpu.dimension_semantics<parallel>], iteration_bounds = array<i64: 2>, scalar_prefetch = 0 : i64, scratch_operands = 0 : i64, tpu.core_type = #tpu.core_type<tc>, window_params = [{transform_indices = @transform_0, window_bounds = array<i64: 8, 512>}, {pipeline_mode = #tpu.pipeline_mode<synchronous>, transform_indices = @transform_1, window_bounds = array<i64: 8, 1>}, {pipeline_mode = #tpu.pipeline_mode<synchronous>, transform_indices = @transform_2, window_bounds = array<i64: 8, 1>}, {transform_indices = @transform_3, window_bounds = array<i64: 8, 512>}]} {
    %c0 = arith.constant 0 : index
    %c0_0 = arith.constant 0 : index
    %0 = vector.load %arg1[%c0, %c0_0] : memref<8x512xf32, #tpu.memory_space<vmem>>, vector<8x512xf32>
    %c0_1 = arith.constant 0 : index
    %c0_2 = arith.constant 0 : index
    %1 = vector.load %arg2[%c0_1, %c0_2] : memref<8x1xf32, #tpu.memory_space<vmem>>, vector<8x1xf32>
    %2 = vector.broadcast %1 : vector<8x1xf32> to vector<8x512xf32>
    %3 = arith.mulf %0, %2 : vector<8x512xf32>
    %c0_3 = arith.constant 0 : index
    %c0_4 = arith.constant 0 : index
    %4 = vector.load %arg3[%c0_3, %c0_4] : memref<8x1xf32, #tpu.memory_space<vmem>>, vector<8x1xf32>
    %5 = vector.broadcast %4 : vector<8x1xf32> to vector<8x512xf32>
    %6 = arith.addf %3, %5 : vector<8x512xf32>
    %cst = arith.constant 0.000000e+00 : f32
    %7 = vector.broadcast %cst : f32 to vector<8x512xf32>
    %8 = arith.cmpf oge, %6, %7 : vector<8x512xf32>
    %cst_5 = arith.constant 0.00999999977 : f32
    %9 = vector.broadcast %cst_5 : f32 to vector<8x512xf32>
    %10 = arith.mulf %9, %6 : vector<8x512xf32>
    %11 = arith.select %8, %6, %10 : vector<8x512xi1>, vector<8x512xf32>
    %c0_6 = arith.constant 0 : index
    %c0_7 = arith.constant 0 : index
    %12 = vector.load %arg4[%c0_6, %c0_7] : memref<8x512xf32, #tpu.memory_space<vmem>>, vector<8x512xf32>
    tpu.vector_store %arg4[%c0_6, %c0_7], %11 {strides = array<i32>} : memref<8x512xf32, #tpu.memory_space<vmem>>, vector<8x512xf32>,
    return
  }
  func.func @transform_0(%arg0: i32) -> (i32, i32) {
    %c0_i32 = arith.constant 0 : i32
    %c0_i32_0 = arith.constant 0 : i32
    return %c0_i32, %arg0 : i32, i32
  }
  func.func @transform_1(%arg0: i32) -> (i32, i32) {
    %c0_i32 = arith.constant 0 : i32
    %c0_i32_0 = arith.constant 0 : i32
    %c0_i32_1 = arith.constant 0 : i32
    return %c0_i32, %c0_i32_0 : i32, i32
  }
  func.func @transform_2(%arg0: i32) -> (i32, i32) {
    %c0_i32 = arith.constant 0 : i32
    %c0_i32_0 = arith.constant 0 : i32
    %c0_i32_1 = arith.constant 0 : i32
    return %c0_i32, %c0_i32_0 : i32, i32
  }
  func.func @transform_3(%arg0: i32) -> (i32, i32) {
    %c0_i32 = arith.constant 0 : i32
    %c0_i32_0 = arith.constant 0 : i32
    return %c0_i32, %arg0 : i32, i32
  }
}

module attributes {stable_mosaic.version = 11 : i64} {
  func.func @_offset_head_kernel(%arg0: i32, %arg1: memref<1x11x256xf32, #tpu.memory_space<vmem>>, %arg2: memref<8x11xf32, #tpu.memory_space<vmem>>, %arg3: memref<8x1xf32, #tpu.memory_space<vmem>>, %arg4: memref<8x1xf32, #tpu.memory_space<vmem>>, %arg5: memref<8x1xf32, #tpu.memory_space<vmem>>, %arg6: memref<16x8xf32, #tpu.memory_space<vmem>>, %arg7: memref<16x1xf32, #tpu.memory_space<vmem>>, %arg8: memref<1x16x256xf32, #tpu.memory_space<vmem>>) attributes {dimension_semantics = [#tpu.dimension_semantics<parallel>], iteration_bounds = array<i64: 2>, scalar_prefetch = 0 : i64, scratch_operands = 0 : i64, tpu.core_type = #tpu.core_type<tc>, window_params = [{transform_indices = @transform_0, window_bounds = array<i64: 1, 11, 256>}, {pipeline_mode = #tpu.pipeline_mode<synchronous>, transform_indices = @transform_1, window_bounds = array<i64: 8, 11>}, {pipeline_mode = #tpu.pipeline_mode<synchronous>, transform_indices = @transform_2, window_bounds = array<i64: 8, 1>}, {pipeline_mode = #tpu.pipeline_mode<synchronous>, transform_indices = @transform_3, window_bounds = array<i64: 8, 1>}, {pipeline_mode = #tpu.pipeline_mode<synchronous>, transform_indices = @transform_4, window_bounds = array<i64: 8, 1>}, {pipeline_mode = #tpu.pipeline_mode<synchronous>, transform_indices = @transform_5, window_bounds = array<i64: 16, 8>}, {pipeline_mode = #tpu.pipeline_mode<synchronous>, transform_indices = @transform_6, window_bounds = array<i64: 16, 1>}, {transform_indices = @transform_7, window_bounds = array<i64: 1, 16, 256>}]} {
    %c0 = arith.constant 0 : index
    %c0_0 = arith.constant 0 : index
    %c0_1 = arith.constant 0 : index
    %0 = vector.load %arg1[%c0, %c0_0, %c0_1] : memref<1x11x256xf32, #tpu.memory_space<vmem>>, vector<1x11x256xf32>
    %1 = vector.shape_cast %0 : vector<1x11x256xf32> to vector<11x256xf32>
    %c0_2 = arith.constant 0 : index
    %c0_3 = arith.constant 0 : index
    %2 = vector.load %arg2[%c0_2, %c0_3] : memref<8x11xf32, #tpu.memory_space<vmem>>, vector<8x11xf32>
    %cst = arith.constant dense<0.000000e+00> : vector<8x256xf32>
    %3 = tpu.matmul %2, %1, %cst {dimension_numbers = #tpu.dot_dimension_numbers<[1], [0], [0], [1], [0, 0, 1, 1], [], []>} : vector<8x11xf32>, vector<11x256xf32>, vector<8x256xf32> -> vector<8x256xf32>
    %c0_4 = arith.constant 0 : index
    %c0_5 = arith.constant 0 : index
    %4 = vector.load %arg3[%c0_4, %c0_5] : memref<8x1xf32, #tpu.memory_space<vmem>>, vector<8x1xf32>
    %5 = vector.broadcast %4 : vector<8x1xf32> to vector<8x256xf32>
    %6 = arith.addf %3, %5 : vector<8x256xf32>
    %cst_6 = arith.constant dense<0.000000e+00> : vector<8xf32>
    %7 = vector.multi_reduction <add>, %6, %cst_6 [1] : vector<8x256xf32> to vector<8xf32>
    %8 = vector.shape_cast %7 : vector<8xf32> to vector<8x1xf32>
    %cst_7 = arith.constant 2.560000e+02 : f32
    %9 = vector.broadcast %cst_7 : f32 to vector<8x1xf32>
    %10 = arith.divf %8, %9 : vector<8x1xf32>
    %11 = vector.broadcast %10 : vector<8x1xf32> to vector<8x256xf32>
    %12 = arith.subf %6, %11 : vector<8x256xf32>
    %13 = arith.mulf %12, %12 : vector<8x256xf32>
    %cst_8 = arith.constant dense<0.000000e+00> : vector<8xf32>
    %14 = vector.multi_reduction <add>, %13, %cst_8 [1] : vector<8x256xf32> to vector<8xf32>
    %15 = vector.shape_cast %14 : vector<8xf32> to vector<8x1xf32>
    %cst_9 = arith.constant 2.560000e+02 : f32
    %16 = vector.broadcast %cst_9 : f32 to vector<8x1xf32>
    %17 = arith.divf %15, %16 : vector<8x1xf32>
    %18 = vector.broadcast %10 : vector<8x1xf32> to vector<8x256xf32>
    %19 = arith.subf %6, %18 : vector<8x256xf32>
    %cst_10 = arith.constant 9.99999974E-6 : f32
    %20 = vector.broadcast %cst_10 : f32 to vector<8x1xf32>
    %21 = arith.addf %17, %20 : vector<8x1xf32>
    %22 = math.rsqrt %21 : vector<8x1xf32>
    %23 = vector.broadcast %22 : vector<8x1xf32> to vector<8x256xf32>
    %24 = arith.mulf %19, %23 : vector<8x256xf32>
    %c0_11 = arith.constant 0 : index
    %c0_12 = arith.constant 0 : index
    %25 = vector.load %arg4[%c0_11, %c0_12] : memref<8x1xf32, #tpu.memory_space<vmem>>, vector<8x1xf32>
    %26 = vector.broadcast %25 : vector<8x1xf32> to vector<8x256xf32>
    %27 = arith.mulf %24, %26 : vector<8x256xf32>
    %c0_13 = arith.constant 0 : index
    %c0_14 = arith.constant 0 : index
    %28 = vector.load %arg5[%c0_13, %c0_14] : memref<8x1xf32, #tpu.memory_space<vmem>>, vector<8x1xf32>
    %29 = vector.broadcast %28 : vector<8x1xf32> to vector<8x256xf32>
    %30 = arith.addf %27, %29 : vector<8x256xf32>
    %cst_15 = arith.constant 0.000000e+00 : f32
    %31 = vector.broadcast %cst_15 : f32 to vector<8x256xf32>
    %32 = arith.maximumf %30, %31 : vector<8x256xf32>
    %c0_16 = arith.constant 0 : index
    %c0_17 = arith.constant 0 : index
    %33 = vector.load %arg6[%c0_16, %c0_17] : memref<16x8xf32, #tpu.memory_space<vmem>>, vector<16x8xf32>
    %cst_18 = arith.constant dense<0.000000e+00> : vector<16x256xf32>
    %34 = tpu.matmul %33, %32, %cst_18 {dimension_numbers = #tpu.dot_dimension_numbers<[1], [0], [0], [1], [0, 0, 1, 1], [], []>} : vector<16x8xf32>, vector<8x256xf32>, vector<16x256xf32> -> vector<16x256xf32>
    %c0_19 = arith.constant 0 : index
    %c0_20 = arith.constant 0 : index
    %35 = vector.load %arg7[%c0_19, %c0_20] : memref<16x1xf32, #tpu.memory_space<vmem>>, vector<16x1xf32>
    %36 = vector.broadcast %35 : vector<16x1xf32> to vector<16x256xf32>
    %37 = arith.addf %34, %36 : vector<16x256xf32>
    %38 = vector.shape_cast %37 : vector<16x256xf32> to vector<1x16x256xf32>
    %c0_21 = arith.constant 0 : index
    %c0_22 = arith.constant 0 : index
    %c0_23 = arith.constant 0 : index
    %39 = vector.load %arg8[%c0_21, %c0_22, %c0_23] : memref<1x16x256xf32, #tpu.memory_space<vmem>>, vector<1x16x256xf32>
    tpu.vector_store %arg8[%c0_21, %c0_22, %c0_23], %38 {strides = array<i32>} : memref<1x16x256xf32, #tpu.memory_space<vmem>>, vector<1x16x256xf32>,
    return
  }
  func.func @transform_0(%arg0: i32) -> (i32, i32, i32) {
    %c0_i32 = arith.constant 0 : i32
    %c0_i32_0 = arith.constant 0 : i32
    %c0_i32_1 = arith.constant 0 : i32
    return %arg0, %c0_i32, %c0_i32_0 : i32, i32, i32
  }
  func.func @transform_1(%arg0: i32) -> (i32, i32) {
    %c0_i32 = arith.constant 0 : i32
    %c0_i32_0 = arith.constant 0 : i32
    %c0_i32_1 = arith.constant 0 : i32
    return %c0_i32, %c0_i32_0 : i32, i32
  }
  func.func @transform_2(%arg0: i32) -> (i32, i32) {
    %c0_i32 = arith.constant 0 : i32
    %c0_i32_0 = arith.constant 0 : i32
    %c0_i32_1 = arith.constant 0 : i32
    return %c0_i32, %c0_i32_0 : i32, i32
  }
  func.func @transform_3(%arg0: i32) -> (i32, i32) {
    %c0_i32 = arith.constant 0 : i32
    %c0_i32_0 = arith.constant 0 : i32
    %c0_i32_1 = arith.constant 0 : i32
    return %c0_i32, %c0_i32_0 : i32, i32
  }
  func.func @transform_4(%arg0: i32) -> (i32, i32) {
    %c0_i32 = arith.constant 0 : i32
    %c0_i32_0 = arith.constant 0 : i32
    %c0_i32_1 = arith.constant 0 : i32
    return %c0_i32, %c0_i32_0 : i32, i32
  }
  func.func @transform_5(%arg0: i32) -> (i32, i32) {
    %c0_i32 = arith.constant 0 : i32
    %c0_i32_0 = arith.constant 0 : i32
    %c0_i32_1 = arith.constant 0 : i32
    return %c0_i32, %c0_i32_0 : i32, i32
  }
  func.func @transform_6(%arg0: i32) -> (i32, i32) {
    %c0_i32 = arith.constant 0 : i32
    %c0_i32_0 = arith.constant 0 : i32
    %c0_i32_1 = arith.constant 0 : i32
    return %c0_i32, %c0_i32_0 : i32, i32
  }
  func.func @transform_7(%arg0: i32) -> (i32, i32, i32) {
    %c0_i32 = arith.constant 0 : i32
    %c0_i32_0 = arith.constant 0 : i32
    %c0_i32_1 = arith.constant 0 : i32
    return %arg0, %c0_i32, %c0_i32_0 : i32, i32, i32
  }
}

</mosaic_0001>

<bundles_post_ra>
// kernel: forward.8
= control target key start
LH: loop header
LB: loop body
LE: loop exit
PB: predicated region body
PF: predicated region fallthrough
CT: control target
= control target key end

     0   :  { %s619_s12 = smov 0   ;;  %s621_s13 = smov 0   ;;  %s777_s0 = inlined_call_operand.vmem [shape: f32[32,1024], index: 0, kind: input, shape index: {}]   ;;  %s778_s1 = inlined_call_operand.vmem [shape: f32[32,1], index: 1, kind: input, shape index: {}]   ;;  %s779_s2 = inlined_call_operand.vmem [shape: f32[32,1], index: 2, kind: input, shape index: {}]   ;;  %s780_s3 = inlined_call_operand.vmem [shape: bf16[32,1024], index: 3, kind: output, shape index: {}]  }
   0x1   :  { %s623_s14 = smov 0  }
   0x2 LB: > { %s514_s15 = sadd.s32 4294967295, %s596_s14   ;;  %s636_s16 = sadd.s32 1, %s596_s14   ;;  %s596_s14 = sphi %s623_s14, %s784_s14   ;;  %s592_s13 = sphi %s621_s13, %s783_s13   ;;  %s588_s12 = sphi %s619_s12, %s782_s12  }
   0x3   : > { %s17_s17 = ssub.s32 %s596_s14, %s636_s16  ;;  %s20_s18 = sadd.s32 1, %s592_s13 }
   0x4   : > { %p18_p0 = scmp.eq.s32.totalorder %s17_s17, 0  ;;  %p27_p1 = scmp.ne.s32.totalorder %s592_s13, %s588_s12 }
   0x5   : > { %p28_p2 = scmp.eq.s32.totalorder %s596_s14, 0  ;;  %p99_p3 = scmp.eq.s32.totalorder %s514_s15, 1 }
   0x6   : > { %s647_s19 = scalar_select %p18_p0, %s592_s13, %s20_s18  }
   0x7   : > { %p29_p4 = por %p28_p2, %p27_p1  ;;  %p649_p5 = por %p99_p3, %p27_p1 }
   0x8   : > { %p517_p6 = scmp.ge.s32.totalorder %s596_s14, 2 }
   0xa   : > { %127 = sbr.rel (%p517_p6) target bundleno = 29 (0x1d), region = 24 }
  0x11   : > { %130 = sbr.rel (!%p29_p4) target bundleno = 29 (0x1d), region = 28  ;;  %s132_s21 = sand.u32 (%p29_p4), 1, %s592_s13  }
  0x12   : > { %s537_s22 = sshll.u32 (%p29_p4), %s596_s14, 5  ;;  %s518_s23 = sshll.u32 (%p29_p4), %s132_s21, 7 }
  0x13   : > { %s659_s26 = scalar_lea.vmem (%p29_p4), %s777_s0, %s537_s22  ;;  %s134_s27 = scalar_lea.vmem (%p29_p4), [#allocation2], %s518_s23 }
  0x14   : > { %v150_v0 = vld [vmem:[%s659_s26] sm:$0xff] (%p29_p4)  ;;  %v152_v1 = vld [vmem:[%s659_s26 + $0x8] sm:$0xff] (%p29_p4)  ;;  %v154_v2 = vld [vmem:[%s659_s26 + $0x10] sm:$0xff] (%p29_p4) }
  0x15   : > { %151 = vst [vmem:[%s134_s27] sm:$0xff] (%p29_p4), %v150_v0  ;;  %153 = vst [vmem:[%s134_s27 + $0x8] sm:$0xff] (%p29_p4), %v152_v1  ;;  %v156_v3 = vld [vmem:[%s659_s26 + $0x18] sm:$0xff] (%p29_p4)  ;;  %v158_v4 = vld [vmem:[%s659_s26 + $0x40] sm:$0xff] (%p29_p4) }
  0x16   : > { %155 = vst [vmem:[%s134_s27 + $0x10] sm:$0xff] (%p29_p4), %v154_v2  ;;  %v160_v5 = vld [vmem:[%s659_s26 + $0x48] sm:$0xff] (%p29_p4)  ;;  %157 = vst [vmem:[%s134_s27 + $0x18] sm:$0xff] (%p29_p4), %v156_v3  ;;  %v162_v6 = vld [vmem:[%s659_s26 + $0x50] sm:$0xff] (%p29_p4) }
  0x17   : > { %159 = vst [vmem:[%s134_s27 + $0x20] sm:$0xff] (%p29_p4), %v158_v4  ;;  %161 = vst [vmem:[%s134_s27 + $0x28] sm:$0xff] (%p29_p4), %v160_v5  ;;  %v164_v7 = vld [vmem:[%s659_s26 + $0x58] sm:$0xff] (%p29_p4)  ;;  %v166_v8 = vld [vmem:[%s659_s26 + $0x80] sm:$0xff] (%p29_p4) }
  0x18   : > { %163 = vst [vmem:[%s134_s27 + $0x30] sm:$0xff] %v162_v6  ;;  %165 = vst [vmem:[%s134_s27 + $0x38] sm:$0xff] %v164_v7  ;;  %v168_v9 = vld [vmem:[%s659_s26 + $0x88] sm:$0xff]  ;;  %v170_v10 = vld [vmem:[%s659_s26 + $0x90] sm:$0xff] }
  0x19   : > { %167 = vst [vmem:[%s134_s27 + $0x40] sm:$0xff] %v166_v8  ;;  %v172_v11 = vld [vmem:[%s659_s26 + $0x98] sm:$0xff]  ;;  %169 = vst [vmem:[%s134_s27 + $0x48] sm:$0xff] %v168_v9  ;;  %v174_v12 = vld [vmem:[%s659_s26 + $0xc0] sm:$0xff] }
  0x1a   : > { %171 = vst [vmem:[%s134_s27 + $0x50] sm:$0xff] %v170_v10  ;;  %173 = vst [vmem:[%s134_s27 + $0x58] sm:$0xff] %v172_v11  ;;  %v176_v13 = vld [vmem:[%s659_s26 + $0xc8] sm:$0xff]  ;;  %v178_v14 = vld [vmem:[%s659_s26 + $0xd0] sm:$0xff] }
  0x1b   : > { %175 = vst [vmem:[%s134_s27 + $0x60] sm:$0xff] %v174_v12  ;;  %177 = vst [vmem:[%s134_s27 + $0x68] sm:$0xff] %v176_v13  ;;  %v180_v15 = vld [vmem:[%s659_s26 + $0xd8] sm:$0xff] }
  0x1c   : > { %179 = vst [vmem:[%s134_s27 + $0x70] sm:$0xff] %v178_v14  ;;  %181 = vst [vmem:[%s134_s27 + $0x78] sm:$0xff] %v180_v15 }
  0x1d PF: > { %p521_p7 = scmp.ge.s32.totalorder %s596_s14, 1  ;;  %p186_p8 = scmp.lt.s32.totalorder %s596_s14, 3 }
  0x1f   : > { %p187_p9 = pnand %p521_p7, %p186_p8 }
  0x20   : > { %v235_v16 = vld [vmem:[%s778_s1 + $0x10] sm:$0xff] (!%p187_p9)  ;;  %v233_v17 = vld [vmem:[%s778_s1] sm:$0xff] (!%p187_p9)  ;;  %v598_v18 = vmov (!%p187_p9), 0   ;;  %v236_v19 = vld [vmem:[%s778_s1 + $0x18] sm:$0xff] (!%p187_p9)  ;;  %s193_s24 = sand.u32 (!%p187_p9), 1, %s588_s12  }
  0x21   : > { %190 = sbr.rel (%p187_p9) target bundleno = 201 (0xc9), region = 51  ;;  %573 = vset.pattern.permute.xlu1 (!%p187_p9), %v598_v18  ;;  %572 = vset.pattern.permute.xlu0 (!%p187_p9), %v598_v18  ;;  %v234_v20 = vld [vmem:[%s778_s1 + $0x8] sm:$0xff] (!%p187_p9)  ;;  %v273_v22 = vld [vmem:[%s779_s2] sm:$0xff] (!%p187_p9)  ;;  %v276_v23 = vld [vmem:[%s779_s2 + $0x18] sm:$0xff] (!%p187_p9)  ;;  %s522_s25 = sshll.u32 (!%p187_p9), %s193_s24, 7 }
  0x22   : > { %249 = vperm.xlu1 (!%p187_p9), %573, %v235_v16   ;;  %239 = vperm.xlu0 (!%p187_p9), %572, %v233_v17   ;;  %v274_v21 = vld [vmem:[%s779_s2 + $0x8] sm:$0xff] (!%p187_p9)  ;;  %v275_v24 = vld [vmem:[%s779_s2 + $0x10] sm:$0xff] (!%p187_p9)  ;;  %s706_s26 = scalar_lea.vmem (!%p187_p9), [#allocation2], %s522_s25  ;;  %s523_s27 = sshll.u32 (!%p187_p9), %s193_s24, 6 }
  0x23   : > { %v217_v27 = vld [vmem:[%s706_s26] sm:$0xff] (!%p187_p9)  ;;  %v218_v28 = vld [vmem:[%s706_s26 + $0x8] sm:$0xff] (!%p187_p9)  ;;  %v219_v29 = vld [vmem:[%s706_s26 + $0x10] sm:$0xff] (!%p187_p9)  ;;  %s734_s12 = scalar_lea.vmem (!%p187_p9), [#allocation3], %s523_s27 }
  0x24   : > { %v220_v30 = vld [vmem:[%s706_s26 + $0x18] sm:$0xff] (!%p187_p9)  ;;  %v221_v31 = vld [vmem:[%s706_s26 + $0x20] sm:$0xff] (!%p187_p9)  ;;  %v222_v32 = vld [vmem:[%s706_s26 + $0x28] sm:$0xff] (!%p187_p9) }
  0x25   : > { %v225_v33 = vld [vmem:[%s706_s26 + $0x40] sm:$0xff] (!%p187_p9)  ;;  %v226_v34 = vld [vmem:[%s706_s26 + $0x48] sm:$0xff] (!%p187_p9)  ;;  %v227_v35 = vld [vmem:[%s706_s26 + $0x50] sm:$0xff] (!%p187_p9) }
  0x26   : > { %254 = vperm.xlu1 (!%p187_p9), %573, %v236_v19   ;;  %244 = vperm.xlu0 (!%p187_p9), %572, %v234_v20   ;;  %v223_v38 = vld [vmem:[%s706_s26 + $0x30] sm:$0xff] (!%p187_p9)  ;;  %v224_v39 = vld [vmem:[%s706_s26 + $0x38] sm:$0xff] (!%p187_p9)  ;;  %v229_v44 = vld [vmem:[%s706_s26 + $0x60] sm:$0xff] (!%p187_p9) }
  0x27   : > { %v228_v40 = vld [vmem:[%s706_s26 + $0x58] sm:$0xff] (!%p187_p9)  ;;  %v230_v45 = vld [vmem:[%s706_s26 + $0x68] sm:$0xff] (!%p187_p9)  ;;  %v231_v46 = vld [vmem:[%s706_s26 + $0x70] sm:$0xff] (!%p187_p9) }
  0x28   : > { %v232_v1 = vld [vmem:[%s706_s26 + $0x78] sm:$0xff]  ;;  %s546_s28 = sshll.u32 (%p649_p5), %s514_s15, 4 }
  0x29   : > { %s426_s4 = scalar_lea.vmem (%p649_p5), %s780_s3, %s546_s28 }
  0x2a   : > { %284 = vperm.xlu1 %573, %v274_v21   ;;  %279 = vperm.xlu0 %572, %v273_v22  }
  0x2e   : > { %294 = vperm.xlu1 %573, %v276_v23   ;;  %289 = vperm.xlu0 %572, %v275_v24  }
  0xa1   : > { %v250_v25 = vpop.permute.xlu1 %249  ;;  %v240_v26 = vpop.permute.xlu0 %239 }
  0xa2   : > { %v257_v41 = vmul.f32 %v240_v26, %v217_v27  ;;  %v258_v42 = vmul.f32 %v240_v26, %v218_v28  ;;  %v259_v43 = vmul.f32 %v240_v26, %v219_v29  ;;  %v260_v47 = vmul.f32 %v240_v26, %v220_v30 }
  0xa3   : > { %v723_v48 = vmul.f32 %v250_v25, %v225_v33  ;;  %v725_v49 = vmul.f32 %v250_v25, %v226_v34  ;;  %v727_v50 = vmul.f32 %v250_v25, %v227_v35  ;;  %v729_v60 = vmul.f32 %v250_v25, %v228_v40 }
  0xa5   : > { %v255_v36 = vpop.permute.xlu1 %254  ;;  %v245_v37 = vpop.permute.xlu0 %244 }
  0xa6   : > { %v261_v51 = vmul.f32 %v245_v37, %v221_v31  ;;  %v262_v52 = vmul.f32 %v245_v37, %v222_v32  ;;  %v263_v53 = vmul.f32 %v245_v37, %v223_v38  ;;  %v264_v54 = vmul.f32 %v245_v37, %v224_v39 }
  0xa7   : > { %v269_v57 = vmul.f32 %v255_v36, %v229_v44  ;;  %v270_v58 = vmul.f32 %v255_v36, %v230_v45  ;;  %v271_v59 = vmul.f32 %v255_v36, %v231_v46  ;;  %v272_v9 = vmul.f32 %v255_v36, %v232_v1 }
  0xa9   : > { %v285_v55 = vpop.permute.xlu1 %284  ;;  %v280_v56 = vpop.permute.xlu0 %279 }
  0xaa   : > { %v301_v61 = vadd.f32 %v285_v55, %v261_v51  ;;  %v302_v62 = vadd.f32 %v285_v55, %v262_v52  ;;  %v303_v63 = vadd.f32 %v285_v55, %v263_v53  ;;  %v304_v0 = vadd.f32 %v285_v55, %v264_v54 }
  0xab   : > { %v297_v2 = vadd.f32 %v280_v56, %v257_v41  ;;  %v298_v3 = vadd.f32 %v280_v56, %v258_v42  ;;  %v299_v4 = vadd.f32 %v280_v56, %v259_v43  ;;  %v300_v5 = vadd.f32 %v280_v56, %v260_v47 }
  0xac   : > { %vm317_vm0 = vcmp.ge.f32.partialorder %v301_v61, 0.0  ;;  %vm318_vm1 = vcmp.ge.f32.partialorder %v302_v62, 0.0  ;;  %vm319_vm2 = vcmp.ge.f32.partialorder %v303_v63, 0.0  ;;  %vm320_vm3 = vcmp.ge.f32.partialorder %v304_v0, 0.0 }
  0xad   : > { %v333_v6 = vmul.f32 0.01, %v301_v61  ;;  %v334_v7 = vmul.f32 0.01, %v302_v62  ;;  %v335_v8 = vmul.f32 0.01, %v303_v63  ;;  %v295_v11 = vpop.permute.xlu1 %294  ;;  %v290_v27 = vpop.permute.xlu0 %289 }
  0xae   : > { %v336_v10 = vmul.f32 0.01, %v304_v0  ;;  %vm313_vm4 = vcmp.ge.f32.partialorder %v297_v2, 0.0  ;;  %vm314_vm5 = vcmp.ge.f32.partialorder %v298_v3, 0.0  ;;  %vm315_vm6 = vcmp.ge.f32.partialorder %v299_v4, 0.0 }
  0xaf   : > { %v349_v12 = vsel %vm317_vm0, %v301_v61, %v333_v6  ;;  %v350_v13 = vsel %vm318_vm1, %v302_v62, %v334_v7  ;;  %v351_v14 = vsel %vm319_vm2, %v303_v63, %v335_v8  ;;  %vm316_vm7 = vcmp.ge.f32.partialorder %v300_v5, 0.0 }
  0xb0   : > { %v352_v15 = vsel %vm320_vm3, %v304_v0, %v336_v10  ;;  %v540_v16 = vpack.c.bf16 %v350_v13, %v349_v12  ;;  %v329_v17 = vmul.f32 0.01, %v297_v2  ;;  %v330_v18 = vmul.f32 0.01, %v298_v3 }
  0xb1   : > { %v541_v19 = vpack.c.bf16 %v352_v15, %v351_v14  ;;  %v331_v20 = vmul.f32 0.01, %v299_v4  ;;  %v332_v21 = vmul.f32 0.01, %v300_v5  ;;  %v309_v22 = vadd.f32 %v295_v11, %v269_v57 }
  0xb2   : > { %411 = vst [vmem:[%s734_s12 + $0x10] sm:$0xff] %v540_v16  ;;  %v345_v23 = vsel %vm313_vm4, %v297_v2, %v329_v17  ;;  %v346_v24 = vsel %vm314_vm5, %v298_v3, %v330_v18  ;;  %v310_v25 = vadd.f32 %v295_v11, %v270_v58  ;;  %v311_v26 = vadd.f32 %v295_v11, %v271_v59 }
  0xb3   : > { %412 = vst [vmem:[%s734_s12 + $0x18] sm:$0xff] %v541_v19  ;;  %v347_v28 = vsel %vm315_vm6, %v299_v4, %v331_v20  ;;  %v348_v29 = vsel %vm316_vm7, %v300_v5, %v332_v21  ;;  %v538_v30 = vpack.c.bf16 %v346_v24, %v345_v23  ;;  %v312_v31 = vadd.f32 %v295_v11, %v272_v9 }
  0xb4   : > { %v539_v32 = vpack.c.bf16 %v348_v29, %v347_v28  ;;  %vm325_vm8 = vcmp.ge.f32.partialorder %v309_v22, 0.0  ;;  %vm326_vm9 = vcmp.ge.f32.partialorder %v310_v25, 0.0  ;;  %vm327_vm10 = vcmp.ge.f32.partialorder %v311_v26, 0.0 }
  0xb5   : > { %409 = vst [vmem:[%s734_s12] sm:$0xff] %v538_v30  ;;  %vm328_vm11 = vcmp.ge.f32.partialorder %v312_v31, 0.0  ;;  %v341_v33 = vmul.f32 0.01, %v309_v22  ;;  %v342_v34 = vmul.f32 0.01, %v310_v25  ;;  %v305_v35 = vadd.f32 %v290_v27, %v723_v48 }
  0xb6   : > { %410 = vst [vmem:[%s734_s12 + $0x8] sm:$0xff] %v539_v32  ;;  %v343_v36 = vmul.f32 0.01, %v311_v26  ;;  %v344_v37 = vmul.f32 0.01, %v312_v31  ;;  %v306_v38 = vadd.f32 %v290_v27, %v725_v49  ;;  %v307_v39 = vadd.f32 %v290_v27, %v727_v50 }
  0xb7   : > { %v357_v40 = vsel %vm325_vm8, %v309_v22, %v341_v33  ;;  %v358_v41 = vsel %vm326_vm9, %v310_v25, %v342_v34  ;;  %v308_v42 = vadd.f32 %v290_v27, %v729_v60  ;;  %vm321_vm12 = vcmp.ge.f32.partialorder %v305_v35, 0.0 }
  0xb8   : > { %v359_v43 = vsel %vm327_vm10, %v311_v26, %v343_v36  ;;  %v360_v44 = vsel %vm328_vm11, %v312_v31, %v344_v37  ;;  %v544_v45 = vpack.c.bf16 %v358_v41, %v357_v40  ;;  %vm322_vm13 = vcmp.ge.f32.partialorder %v306_v38, 0.0 }
  0xb9   : > { %v545_v46 = vpack.c.bf16 %v360_v44, %v359_v43  ;;  %vm323_vm14 = vcmp.ge.f32.partialorder %v307_v39, 0.0  ;;  %vm324_vm15 = vcmp.ge.f32.partialorder %v308_v42, 0.0  ;;  %v337_v47 = vmul.f32 0.01, %v305_v35  ;;  %v443_v59 = vld [vmem:[%s734_s12 + $0x10] sm:$0xff] (%p649_p5) }
  0xba   : > { %415 = vst [vmem:[%s734_s12 + $0x30] sm:$0xff] %v544_v45  ;;  %v338_v48 = vmul.f32 0.01, %v306_v38  ;;  %v339_v49 = vmul.f32 0.01, %v307_v39  ;;  %423 = sbr.rel (!%p649_p5) target bundleno = 201 (0xc9), region = 59 }
  0xbb   : > { %v340_v50 = vmul.f32 0.01, %v308_v42  ;;  %416 = vst [vmem:[%s734_s12 + $0x38] sm:$0xff] %v545_v46  ;;  %v353_v51 = vsel %vm321_vm12, %v305_v35, %v337_v47  ;;  %v445_v60 = vld [vmem:[%s734_s12 + $0x18] sm:$0xff] (%p649_p5)  ;;  %444 = vst [vmem:[%s426_s4 + $0x20] sm:$0xff] (%p649_p5), %v443_v59 }
  0xbc   : > { %v354_v52 = vsel %vm322_vm13, %v306_v38, %v338_v48  ;;  %v355_v53 = vsel %vm323_vm14, %v307_v39, %v339_v49  ;;  %v439_v57 = vld [vmem:[%s734_s12] sm:$0xff] (%p649_p5)  ;;  %446 = vst [vmem:[%s426_s4 + $0x28] sm:$0xff] (%p649_p5), %v445_v60 }
  0xbd   : > { %v356_v54 = vsel %vm324_vm15, %v308_v42, %v340_v50  ;;  %v542_v55 = vpack.c.bf16 %v354_v52, %v353_v51  ;;  %v441_v58 = vld [vmem:[%s734_s12 + $0x8] sm:$0xff] (%p649_p5)  ;;  %440 = vst [vmem:[%s426_s4] sm:$0xff] (%p649_p5), %v439_v57 }
  0xbe   : > { %v543_v56 = vpack.c.bf16 %v356_v54, %v355_v53  ;;  %442 = vst [vmem:[%s426_s4 + $0x8] sm:$0xff] (%p649_p5), %v441_v58 }
  0xbf   : > { %413 = vst [vmem:[%s734_s12 + $0x20] sm:$0xff] %v542_v55 }
  0xc0   : > { %414 = vst [vmem:[%s734_s12 + $0x28] sm:$0xff] %v543_v56 }
  0xc1   : > { %v451_v63 = vld [vmem:[%s734_s12 + $0x30] sm:$0xff] }
  0xc2   : > { %v453_v0 = vld [vmem:[%s734_s12 + $0x38] sm:$0xff]  ;;  %452 = vst [vmem:[%s426_s4 + $0x60] sm:$0xff] %v451_v63 }
  0xc3   : > { %454 = vst [vmem:[%s426_s4 + $0x68] sm:$0xff] %v453_v0 }
  0xc6   : > { %v447_v61 = vld [vmem:[%s734_s12 + $0x20] sm:$0xff] }
  0xc7   : > { %v449_v62 = vld [vmem:[%s734_s12 + $0x28] sm:$0xff]  ;;  %448 = vst [vmem:[%s426_s4 + $0x40] sm:$0xff] %v447_v61 }
  0xc8   : > { %450 = vst [vmem:[%s426_s4 + $0x48] sm:$0xff] %v449_v62 }
  0xc9 PF: > { %p10_p10 = scmp.ge.s32.totalorder %s636_s16, 4   ;;  %s782_s12 = smov %s592_s13 }
  0xca   : > { %s783_s13 = smov %s647_s19  ;;  %s784_s14 = smov %s636_s16 }
  0xcb   :  { %12 = sbr.rel (!%p10_p10) target bundleno = 2 (0x2), region = 113 }

// kernel: forward.7
= control target key start
LH: loop header
LB: loop body
LE: loop exit
PB: predicated region body
PF: predicated region fallthrough
CT: control target
= control target key end

     0   :  { %s3388_s12 = smov 0   ;;  %s3390_s13 = smov 0   ;;  %s4191_s0 = inlined_call_operand.vmem [shape: bf16[864,1024], index: 0, kind: input, shape index: {}]   ;;  %s4192_s1 = inlined_call_operand.vmem [shape: bf16[32,864], index: 1, kind: input, shape index: {}]   ;;  %s4193_s2 = inlined_call_operand.vmem [shape: f32[32,1024], index: 2, kind: output, shape index: {0}]   ;;  %s4194_s3 = inlined_call_operand.vmem [shape: f32[2,32,2], index: 3, kind: output, shape index: {1}]  }
   0x1   :  { %s3392_s14 = smov 0  }
   0x2 LB: > { %s3404_s15 = sadd.s32 4294967295, %s3365_s14   ;;  %s3407_s16 = sadd.s32 1, %s3365_s14   ;;  %s3365_s14 = sphi %s3392_s14, %s4198_s14   ;;  %s3361_s13 = sphi %s3390_s13, %s4197_s13   ;;  %s3357_s12 = sphi %s3388_s12, %s4196_s12  }
   0x3   : > { %s18_s17 = ssub.s32 %s3365_s14, %s3407_s16  ;;  %s21_s18 = sadd.s32 1, %s3361_s13 }
   0x4   : > { %p19_p0 = scmp.eq.s32.totalorder %s18_s17, 0  ;;  %p28_p1 = scmp.ne.s32.totalorder %s3361_s13, %s3357_s12 }
   0x5   : > { %p29_p2 = scmp.eq.s32.totalorder %s3365_s14, 0  ;;  %p79_p3 = scmp.eq.s32.totalorder %s3404_s15, 1 }
   0x6   : > { %s3417_s19 = scalar_select %p19_p0, %s3361_s13, %s21_s18  }
   0x7   : > { %p30_p4 = por %p29_p2, %p28_p1  ;;  %p3419_p5 = por %p79_p3, %p28_p1 }
   0x8   : > { %p2675_p6 = scmp.ge.s32.totalorder %s3365_s14, 2 }
   0xa   : > { %130 = sbr.rel (%p2675_p6) target bundleno = 129 (0x81), region = 20 }
  0x11   : > { %133 = sbr.rel (!%p30_p4) target bundleno = 129 (0x81), region = 24  ;;  %s135_s21 = sand.u32 (%p30_p4), 1, %s3361_s13  }
  0x12   : > { %s2921_s22 = sshll.u32 (%p30_p4), %s3365_s14, 4  ;;  %s2972_s23 = smul.u32 (%p30_p4), 1728, %s135_s21 }
  0x13   : > { %s3429_s26 = scalar_lea.vmem (%p30_p4), %s4191_s0, %s2921_s22 }
  0x14   : > { %v153_v0 = vld [vmem:[%s3429_s26] sm:$0xff] (%p30_p4)  ;;  %v155_v1 = vld [vmem:[%s3429_s26 + $0x8] sm:$0xff] (%p30_p4)  ;;  %s3437_s27 = scalar_lea.vmem (%p30_p4), [#allocation2], %s2972_s23 }
  0x15   : > { %v157_v2 = vld [vmem:[%s3429_s26 + $0x20] sm:$0xff] (%p30_p4)  ;;  %v159_v3 = vld [vmem:[%s3429_s26 + $0x28] sm:$0xff] (%p30_p4)  ;;  %154 = vst [vmem:[%s3437_s27] sm:$0xff] (%p30_p4), %v153_v0  ;;  %156 = vst [vmem:[%s3437_s27 + $0x8] sm:$0xff] (%p30_p4), %v155_v1 }
  0x16   : > { %v161_v4 = vld [vmem:[%s3429_s26 + $0x40] sm:$0xff] (%p30_p4)  ;;  %v163_v5 = vld [vmem:[%s3429_s26 + $0x48] sm:$0xff] (%p30_p4)  ;;  %158 = vst [vmem:[%s3437_s27 + $0x10] sm:$0xff] (%p30_p4), %v157_v2  ;;  %160 = vst [vmem:[%s3437_s27 + $0x18] sm:$0xff] (%p30_p4), %v159_v3 }
  0x17   : > { %162 = vst [vmem:[%s3437_s27 + $0x20] sm:$0xff] (%p30_p4), %v161_v4  ;;  %164 = vst [vmem:[%s3437_s27 + $0x28] sm:$0xff] (%p30_p4), %v163_v5  ;;  %v165_v6 = vld [vmem:[%s3429_s26 + $0x60] sm:$0xff] (%p30_p4)  ;;  %v167_v7 = vld [vmem:[%s3429_s26 + $0x68] sm:$0xff] (%p30_p4) }
  0x18   : > { %v169_v8 = vld [vmem:[%s3429_s26 + $0x80] sm:$0xff]  ;;  %166 = vst [vmem:[%s3437_s27 + $0x30] sm:$0xff] %v165_v6  ;;  %168 = vst [vmem:[%s3437_s27 + $0x38] sm:$0xff] %v167_v7  ;;  %v171_v9 = vld [vmem:[%s3429_s26 + $0x88] sm:$0xff] }
  0x19   : > { %170 = vst [vmem:[%s3437_s27 + $0x40] sm:$0xff] %v169_v8  ;;  %v173_v10 = vld [vmem:[%s3429_s26 + $0xa0] sm:$0xff]  ;;  %v175_v11 = vld [vmem:[%s3429_s26 + $0xa8] sm:$0xff]  ;;  %172 = vst [vmem:[%s3437_s27 + $0x48] sm:$0xff] %v171_v9 }
  0x1a   : > { %174 = vst [vmem:[%s3437_s27 + $0x50] sm:$0xff] %v173_v10  ;;  %176 = vst [vmem:[%s3437_s27 + $0x58] sm:$0xff] %v175_v11  ;;  %v177_v12 = vld [vmem:[%s3429_s26 + $0xc0] sm:$0xff]  ;;  %v179_v13 = vld [vmem:[%s3429_s26 + $0xc8] sm:$0xff] }
  0x1b   : > { %v181_v14 = vld [vmem:[%s3429_s26 + $0xe0] sm:$0xff]  ;;  %178 = vst [vmem:[%s3437_s27 + $0x60] sm:$0xff] %v177_v12  ;;  %180 = vst [vmem:[%s3437_s27 + $0x68] sm:$0xff] %v179_v13  ;;  %v183_v15 = vld [vmem:[%s3429_s26 + $0xe8] sm:$0xff] }
  0x1c   : > { %182 = vst [vmem:[%s3437_s27 + $0x70] sm:$0xff] %v181_v14  ;;  %v185_v16 = vld [vmem:[%s3429_s26 + $0x100] sm:$0xff]  ;;  %v187_v17 = vld [vmem:[%s3429_s26 + $0x108] sm:$0xff]  ;;  %184 = vst [vmem:[%s3437_s27 + $0x78] sm:$0xff] %v183_v15 }
  0x1d   : > { %186 = vst [vmem:[%s3437_s27 + $0x80] sm:$0xff] %v185_v16  ;;  %188 = vst [vmem:[%s3437_s27 + $0x88] sm:$0xff] %v187_v17  ;;  %v189_v18 = vld [vmem:[%s3429_s26 + $0x120] sm:$0xff]  ;;  %v191_v19 = vld [vmem:[%s3429_s26 + $0x128] sm:$0xff] }
  0x1e   : > { %v193_v20 = vld [vmem:[%s3429_s26 + $0x140] sm:$0xff]  ;;  %190 = vst [vmem:[%s3437_s27 + $0x90] sm:$0xff] %v189_v18  ;;  %192 = vst [vmem:[%s3437_s27 + $0x98] sm:$0xff] %v191_v19  ;;  %v195_v21 = vld [vmem:[%s3429_s26 + $0x148] sm:$0xff] }
  0x1f   : > { %194 = vst [vmem:[%s3437_s27 + $0xa0] sm:$0xff] %v193_v20  ;;  %v197_v22 = vld [vmem:[%s3429_s26 + $0x160] sm:$0xff]  ;;  %v199_v23 = vld [vmem:[%s3429_s26 + $0x168] sm:$0xff]  ;;  %196 = vst [vmem:[%s3437_s27 + $0xa8] sm:$0xff] %v195_v21 }
  0x20   : > { %198 = vst [vmem:[%s3437_s27 + $0xb0] sm:$0xff] %v197_v22  ;;  %200 = vst [vmem:[%s3437_s27 + $0xb8] sm:$0xff] %v199_v23  ;;  %v201_v24 = vld [vmem:[%s3429_s26 + $0x180] sm:$0xff]  ;;  %v203_v25 = vld [vmem:[%s3429_s26 + $0x188] sm:$0xff] }
  0x21   : > { %v205_v26 = vld [vmem:[%s3429_s26 + $0x1a0] sm:$0xff]  ;;  %202 = vst [vmem:[%s3437_s27 + $0xc0] sm:$0xff] %v201_v24  ;;  %204 = vst [vmem:[%s3437_s27 + $0xc8] sm:$0xff] %v203_v25  ;;  %v207_v27 = vld [vmem:[%s3429_s26 + $0x1a8] sm:$0xff] }
  0x22   : > { %206 = vst [vmem:[%s3437_s27 + $0xd0] sm:$0xff] %v205_v26  ;;  %v209_v28 = vld [vmem:[%s3429_s26 + $0x1c0] sm:$0xff]  ;;  %v211_v29 = vld [vmem:[%s3429_s26 + $0x1c8] sm:$0xff]  ;;  %208 = vst [vmem:[%s3437_s27 + $0xd8] sm:$0xff] %v207_v27 }
  0x23   : > { %210 = vst [vmem:[%s3437_s27 + $0xe0] sm:$0xff] %v209_v28  ;;  %212 = vst [vmem:[%s3437_s27 + $0xe8] sm:$0xff] %v211_v29  ;;  %v213_v30 = vld [vmem:[%s3429_s26 + $0x1e0] sm:$0xff]  ;;  %v215_v31 = vld [vmem:[%s3429_s26 + $0x1e8] sm:$0xff] }
  0x24   : > { %v217_v32 = vld [vmem:[%s3429_s26 + $0x200] sm:$0xff]  ;;  %214 = vst [vmem:[%s3437_s27 + $0xf0] sm:$0xff] %v213_v30  ;;  %216 = vst [vmem:[%s3437_s27 + $0xf8] sm:$0xff] %v215_v31  ;;  %v219_v33 = vld [vmem:[%s3429_s26 + $0x208] sm:$0xff] }
  0x25   : > { %218 = vst [vmem:[%s3437_s27 + $0x100] sm:$0xff] %v217_v32  ;;  %v221_v34 = vld [vmem:[%s3429_s26 + $0x220] sm:$0xff]  ;;  %v223_v35 = vld [vmem:[%s3429_s26 + $0x228] sm:$0xff]  ;;  %220 = vst [vmem:[%s3437_s27 + $0x108] sm:$0xff] %v219_v33 }
  0x26   : > { %222 = vst [vmem:[%s3437_s27 + $0x110] sm:$0xff] %v221_v34  ;;  %224 = vst [vmem:[%s3437_s27 + $0x118] sm:$0xff] %v223_v35  ;;  %v225_v36 = vld [vmem:[%s3429_s26 + $0x240] sm:$0xff]  ;;  %v227_v37 = vld [vmem:[%s3429_s26 + $0x248] sm:$0xff] }
  0x27   : > { %v229_v38 = vld [vmem:[%s3429_s26 + $0x260] sm:$0xff]  ;;  %226 = vst [vmem:[%s3437_s27 + $0x120] sm:$0xff] %v225_v36  ;;  %228 = vst [vmem:[%s3437_s27 + $0x128] sm:$0xff] %v227_v37  ;;  %v231_v39 = vld [vmem:[%s3429_s26 + $0x268] sm:$0xff] }
  0x28   : > { %230 = vst [vmem:[%s3437_s27 + $0x130] sm:$0xff] %v229_v38  ;;  %v233_v40 = vld [vmem:[%s3429_s26 + $0x280] sm:$0xff]  ;;  %v235_v41 = vld [vmem:[%s3429_s26 + $0x288] sm:$0xff]  ;;  %232 = vst [vmem:[%s3437_s27 + $0x138] sm:$0xff] %v231_v39 }
  0x29   : > { %234 = vst [vmem:[%s3437_s27 + $0x140] sm:$0xff] %v233_v40  ;;  %236 = vst [vmem:[%s3437_s27 + $0x148] sm:$0xff] %v235_v41  ;;  %v237_v42 = vld [vmem:[%s3429_s26 + $0x2a0] sm:$0xff]  ;;  %v239_v43 = vld [vmem:[%s3429_s26 + $0x2a8] sm:$0xff] }
  0x2a   : > { %v241_v44 = vld [vmem:[%s3429_s26 + $0x2c0] sm:$0xff]  ;;  %238 = vst [vmem:[%s3437_s27 + $0x150] sm:$0xff] %v237_v42  ;;  %240 = vst [vmem:[%s3437_s27 + $0x158] sm:$0xff] %v239_v43  ;;  %v243_v45 = vld [vmem:[%s3429_s26 + $0x2c8] sm:$0xff] }
  0x2b   : > { %242 = vst [vmem:[%s3437_s27 + $0x160] sm:$0xff] %v241_v44  ;;  %v245_v46 = vld [vmem:[%s3429_s26 + $0x2e0] sm:$0xff]  ;;  %v247_v47 = vld [vmem:[%s3429_s26 + $0x2e8] sm:$0xff]  ;;  %244 = vst [vmem:[%s3437_s27 + $0x168] sm:$0xff] %v243_v45 }
  0x2c   : > { %246 = vst [vmem:[%s3437_s27 + $0x170] sm:$0xff] %v245_v46  ;;  %248 = vst [vmem:[%s3437_s27 + $0x178] sm:$0xff] %v247_v47  ;;  %v249_v48 = vld [vmem:[%s3429_s26 + $0x300] sm:$0xff]  ;;  %v251_v49 = vld [vmem:[%s3429_s26 + $0x308] sm:$0xff] }
  0x2d   : > { %v253_v50 = vld [vmem:[%s3429_s26 + $0x320] sm:$0xff]  ;;  %250 = vst [vmem:[%s3437_s27 + $0x180] sm:$0xff] %v249_v48  ;;  %252 = vst [vmem:[%s3437_s27 + $0x188] sm:$0xff] %v251_v49  ;;  %v255_v51 = vld [vmem:[%s3429_s26 + $0x328] sm:$0xff] }
  0x2e   : > { %254 = vst [vmem:[%s3437_s27 + $0x190] sm:$0xff] %v253_v50  ;;  %v257_v52 = vld [vmem:[%s3429_s26 + $0x340] sm:$0xff]  ;;  %v259_v53 = vld [vmem:[%s3429_s26 + $0x348] sm:$0xff]  ;;  %256 = vst [vmem:[%s3437_s27 + $0x198] sm:$0xff] %v255_v51 }
  0x2f   : > { %258 = vst [vmem:[%s3437_s27 + $0x1a0] sm:$0xff] %v257_v52  ;;  %260 = vst [vmem:[%s3437_s27 + $0x1a8] sm:$0xff] %v259_v53  ;;  %v261_v54 = vld [vmem:[%s3429_s26 + $0x360] sm:$0xff]  ;;  %v263_v55 = vld [vmem:[%s3429_s26 + $0x368] sm:$0xff] }
  0x30   : > { %v265_v56 = vld [vmem:[%s3429_s26 + $0x380] sm:$0xff]  ;;  %262 = vst [vmem:[%s3437_s27 + $0x1b0] sm:$0xff] %v261_v54  ;;  %264 = vst [vmem:[%s3437_s27 + $0x1b8] sm:$0xff] %v263_v55  ;;  %v267_v57 = vld [vmem:[%s3429_s26 + $0x388] sm:$0xff] }
  0x31   : > { %266 = vst [vmem:[%s3437_s27 + $0x1c0] sm:$0xff] %v265_v56  ;;  %v269_v58 = vld [vmem:[%s3429_s26 + $0x3a0] sm:$0xff]  ;;  %v271_v59 = vld [vmem:[%s3429_s26 + $0x3a8] sm:$0xff]  ;;  %268 = vst [vmem:[%s3437_s27 + $0x1c8] sm:$0xff] %v267_v57 }
  0x32   : > { %270 = vst [vmem:[%s3437_s27 + $0x1d0] sm:$0xff] %v269_v58  ;;  %272 = vst [vmem:[%s3437_s27 + $0x1d8] sm:$0xff] %v271_v59  ;;  %v273_v60 = vld [vmem:[%s3429_s26 + $0x3c0] sm:$0xff]  ;;  %v275_v61 = vld [vmem:[%s3429_s26 + $0x3c8] sm:$0xff] }
  0x33   : > { %v277_v62 = vld [vmem:[%s3429_s26 + $0x3e0] sm:$0xff]  ;;  %274 = vst [vmem:[%s3437_s27 + $0x1e0] sm:$0xff] %v273_v60  ;;  %276 = vst [vmem:[%s3437_s27 + $0x1e8] sm:$0xff] %v275_v61  ;;  %v279_v63 = vld [vmem:[%s3429_s26 + $0x3e8] sm:$0xff] }
  0x34   : > { %278 = vst [vmem:[%s3437_s27 + $0x1f0] sm:$0xff] %v277_v62  ;;  %v281_v0 = vld [vmem:[%s3429_s26 + $0x400] sm:$0xff]  ;;  %v283_v1 = vld [vmem:[%s3429_s26 + $0x408] sm:$0xff]  ;;  %280 = vst [vmem:[%s3437_s27 + $0x1f8] sm:$0xff] %v279_v63 }
  0x35   : > { %282 = vst [vmem:[%s3437_s27 + $0x200] sm:$0xff] %v281_v0  ;;  %284 = vst [vmem:[%s3437_s27 + $0x208] sm:$0xff] %v283_v1  ;;  %v285_v2 = vld [vmem:[%s3429_s26 + $0x420] sm:$0xff]  ;;  %v287_v3 = vld [vmem:[%s3429_s26 + $0x428] sm:$0xff] }
  0x36   : > { %v289_v4 = vld [vmem:[%s3429_s26 + $0x440] sm:$0xff]  ;;  %286 = vst [vmem:[%s3437_s27 + $0x210] sm:$0xff] %v285_v2  ;;  %288 = vst [vmem:[%s3437_s27 + $0x218] sm:$0xff] %v287_v3  ;;  %v291_v5 = vld [vmem:[%s3429_s26 + $0x448] sm:$0xff] }
  0x37   : > { %290 = vst [vmem:[%s3437_s27 + $0x220] sm:$0xff] %v289_v4  ;;  %v293_v6 = vld [vmem:[%s3429_s26 + $0x460] sm:$0xff]  ;;  %v295_v7 = vld [vmem:[%s3429_s26 + $0x468] sm:$0xff]  ;;  %292 = vst [vmem:[%s3437_s27 + $0x228] sm:$0xff] %v291_v5 }
  0x38   : > { %294 = vst [vmem:[%s3437_s27 + $0x230] sm:$0xff] %v293_v6  ;;  %296 = vst [vmem:[%s3437_s27 + $0x238] sm:$0xff] %v295_v7  ;;  %v297_v8 = vld [vmem:[%s3429_s26 + $0x480] sm:$0xff]  ;;  %v299_v9 = vld [vmem:[%s3429_s26 + $0x488] sm:$0xff] }
  0x39   : > { %v301_v10 = vld [vmem:[%s3429_s26 + $0x4a0] sm:$0xff]  ;;  %298 = vst [vmem:[%s3437_s27 + $0x240] sm:$0xff] %v297_v8  ;;  %300 = vst [vmem:[%s3437_s27 + $0x248] sm:$0xff] %v299_v9  ;;  %v303_v11 = vld [vmem:[%s3429_s26 + $0x4a8] sm:$0xff] }
  0x3a   : > { %302 = vst [vmem:[%s3437_s27 + $0x250] sm:$0xff] %v301_v10  ;;  %v305_v12 = vld [vmem:[%s3429_s26 + $0x4c0] sm:$0xff]  ;;  %v307_v13 = vld [vmem:[%s3429_s26 + $0x4c8] sm:$0xff]  ;;  %304 = vst [vmem:[%s3437_s27 + $0x258] sm:$0xff] %v303_v11 }
  0x3b   : > { %306 = vst [vmem:[%s3437_s27 + $0x260] sm:$0xff] %v305_v12  ;;  %308 = vst [vmem:[%s3437_s27 + $0x268] sm:$0xff] %v307_v13  ;;  %v309_v14 = vld [vmem:[%s3429_s26 + $0x4e0] sm:$0xff]  ;;  %v311_v15 = vld [vmem:[%s3429_s26 + $0x4e8] sm:$0xff] }
  0x3c   : > { %v313_v16 = vld [vmem:[%s3429_s26 + $0x500] sm:$0xff]  ;;  %310 = vst [vmem:[%s3437_s27 + $0x270] sm:$0xff] %v309_v14  ;;  %312 = vst [vmem:[%s3437_s27 + $0x278] sm:$0xff] %v311_v15  ;;  %v315_v17 = vld [vmem:[%s3429_s26 + $0x508] sm:$0xff] }
  0x3d   : > { %314 = vst [vmem:[%s3437_s27 + $0x280] sm:$0xff] %v313_v16  ;;  %v317_v18 = vld [vmem:[%s3429_s26 + $0x520] sm:$0xff]  ;;  %v319_v19 = vld [vmem:[%s3429_s26 + $0x528] sm:$0xff]  ;;  %316 = vst [vmem:[%s3437_s27 + $0x288] sm:$0xff] %v315_v17 }
  0x3e   : > { %318 = vst [vmem:[%s3437_s27 + $0x290] sm:$0xff] %v317_v18  ;;  %320 = vst [vmem:[%s3437_s27 + $0x298] sm:$0xff] %v319_v19  ;;  %v321_v20 = vld [vmem:[%s3429_s26 + $0x540] sm:$0xff]  ;;  %v323_v21 = vld [vmem:[%s3429_s26 + $0x548] sm:$0xff] }
  0x3f   : > { %v325_v22 = vld [vmem:[%s3429_s26 + $0x560] sm:$0xff]  ;;  %322 = vst [vmem:[%s3437_s27 + $0x2a0] sm:$0xff] %v321_v20  ;;  %324 = vst [vmem:[%s3437_s27 + $0x2a8] sm:$0xff] %v323_v21  ;;  %v327_v23 = vld [vmem:[%s3429_s26 + $0x568] sm:$0xff] }
  0x40   : > { %326 = vst [vmem:[%s3437_s27 + $0x2b0] sm:$0xff] %v325_v22  ;;  %v329_v24 = vld [vmem:[%s3429_s26 + $0x580] sm:$0xff]  ;;  %v331_v25 = vld [vmem:[%s3429_s26 + $0x588] sm:$0xff]  ;;  %328 = vst [vmem:[%s3437_s27 + $0x2b8] sm:$0xff] %v327_v23 }
  0x41   : > { %330 = vst [vmem:[%s3437_s27 + $0x2c0] sm:$0xff] %v329_v24  ;;  %332 = vst [vmem:[%s3437_s27 + $0x2c8] sm:$0xff] %v331_v25  ;;  %v333_v26 = vld [vmem:[%s3429_s26 + $0x5a0] sm:$0xff]  ;;  %v335_v27 = vld [vmem:[%s3429_s26 + $0x5a8] sm:$0xff] }
  0x42   : > { %v337_v28 = vld [vmem:[%s3429_s26 + $0x5c0] sm:$0xff]  ;;  %334 = vst [vmem:[%s3437_s27 + $0x2d0] sm:$0xff] %v333_v26  ;;  %336 = vst [vmem:[%s3437_s27 + $0x2d8] sm:$0xff] %v335_v27  ;;  %v339_v29 = vld [vmem:[%s3429_s26 + $0x5c8] sm:$0xff] }
  0x43   : > { %338 = vst [vmem:[%s3437_s27 + $0x2e0] sm:$0xff] %v337_v28  ;;  %v341_v30 = vld [vmem:[%s3429_s26 + $0x5e0] sm:$0xff]  ;;  %v343_v31 = vld [vmem:[%s3429_s26 + $0x5e8] sm:$0xff]  ;;  %340 = vst [vmem:[%s3437_s27 + $0x2e8] sm:$0xff] %v339_v29 }
  0x44   : > { %342 = vst [vmem:[%s3437_s27 + $0x2f0] sm:$0xff] %v341_v30  ;;  %344 = vst [vmem:[%s3437_s27 + $0x2f8] sm:$0xff] %v343_v31  ;;  %v345_v32 = vld [vmem:[%s3429_s26 + $0x600] sm:$0xff]  ;;  %v347_v33 = vld [vmem:[%s3429_s26 + $0x608] sm:$0xff] }
  0x45   : > { %v349_v34 = vld [vmem:[%s3429_s26 + $0x620] sm:$0xff]  ;;  %346 = vst [vmem:[%s3437_s27 + $0x300] sm:$0xff] %v345_v32  ;;  %348 = vst [vmem:[%s3437_s27 + $0x308] sm:$0xff] %v347_v33  ;;  %v351_v35 = vld [vmem:[%s3429_s26 + $0x628] sm:$0xff] }
  0x46   : > { %350 = vst [vmem:[%s3437_s27 + $0x310] sm:$0xff] %v349_v34  ;;  %v353_v36 = vld [vmem:[%s3429_s26 + $0x640] sm:$0xff]  ;;  %v355_v37 = vld [vmem:[%s3429_s26 + $0x648] sm:$0xff]  ;;  %352 = vst [vmem:[%s3437_s27 + $0x318] sm:$0xff] %v351_v35 }
  0x47   : > { %354 = vst [vmem:[%s3437_s27 + $0x320] sm:$0xff] %v353_v36  ;;  %356 = vst [vmem:[%s3437_s27 + $0x328] sm:$0xff] %v355_v37  ;;  %v357_v38 = vld [vmem:[%s3429_s26 + $0x660] sm:$0xff]  ;;  %v359_v39 = vld [vmem:[%s3429_s26 + $0x668] sm:$0xff] }
  0x48   : > { %v361_v40 = vld [vmem:[%s3429_s26 + $0x680] sm:$0xff]  ;;  %358 = vst [vmem:[%s3437_s27 + $0x330] sm:$0xff] %v357_v38  ;;  %360 = vst [vmem:[%s3437_s27 + $0x338] sm:$0xff] %v359_v39  ;;  %v363_v41 = vld [vmem:[%s3429_s26 + $0x688] sm:$0xff] }
  0x49   : > { %362 = vst [vmem:[%s3437_s27 + $0x340] sm:$0xff] %v361_v40  ;;  %v365_v42 = vld [vmem:[%s3429_s26 + $0x6a0] sm:$0xff]  ;;  %v367_v43 = vld [vmem:[%s3429_s26 + $0x6a8] sm:$0xff]  ;;  %364 = vst [vmem:[%s3437_s27 + $0x348] sm:$0xff] %v363_v41 }
  0x4a   : > { %366 = vst [vmem:[%s3437_s27 + $0x350] sm:$0xff] %v365_v42  ;;  %368 = vst [vmem:[%s3437_s27 + $0x358] sm:$0xff] %v367_v43  ;;  %v369_v44 = vld [vmem:[%s3429_s26 + $0x6c0] sm:$0xff]  ;;  %v371_v45 = vld [vmem:[%s3429_s26 + $0x6c8] sm:$0xff] }
  0x4b   : > { %v373_v46 = vld [vmem:[%s3429_s26 + $0x6e0] sm:$0xff]  ;;  %370 = vst [vmem:[%s3437_s27 + $0x360] sm:$0xff] %v369_v44  ;;  %372 = vst [vmem:[%s3437_s27 + $0x368] sm:$0xff] %v371_v45  ;;  %v375_v47 = vld [vmem:[%s3429_s26 + $0x6e8] sm:$0xff] }
  0x4c   : > { %374 = vst [vmem:[%s3437_s27 + $0x370] sm:$0xff] %v373_v46  ;;  %v377_v48 = vld [vmem:[%s3429_s26 + $0x700] sm:$0xff]  ;;  %v379_v49 = vld [vmem:[%s3429_s26 + $0x708] sm:$0xff]  ;;  %376 = vst [vmem:[%s3437_s27 + $0x378] sm:$0xff] %v375_v47 }
  0x4d   : > { %378 = vst [vmem:[%s3437_s27 + $0x380] sm:$0xff] %v377_v48  ;;  %380 = vst [vmem:[%s3437_s27 + $0x388] sm:$0xff] %v379_v49  ;;  %v381_v50 = vld [vmem:[%s3429_s26 + $0x720] sm:$0xff]  ;;  %v383_v51 = vld [vmem:[%s3429_s26 + $0x728] sm:$0xff] }
  0x4e   : > { %v385_v52 = vld [vmem:[%s3429_s26 + $0x740] sm:$0xff]  ;;  %382 = vst [vmem:[%s3437_s27 + $0x390] sm:$0xff] %v381_v50  ;;  %384 = vst [vmem:[%s3437_s27 + $0x398] sm:$0xff] %v383_v51  ;;  %v387_v53 = vld [vmem:[%s3429_s26 + $0x748] sm:$0xff] }
  0x4f   : > { %386 = vst [vmem:[%s3437_s27 + $0x3a0] sm:$0xff] %v385_v52  ;;  %v389_v54 = vld [vmem:[%s3429_s26 + $0x760] sm:$0xff]  ;;  %v391_v55 = vld [vmem:[%s3429_s26 + $0x768] sm:$0xff]  ;;  %388 = vst [vmem:[%s3437_s27 + $0x3a8] sm:$0xff] %v387_v53 }
  0x50   : > { %390 = vst [vmem:[%s3437_s27 + $0x3b0] sm:$0xff] %v389_v54  ;;  %392 = vst [vmem:[%s3437_s27 + $0x3b8] sm:$0xff] %v391_v55  ;;  %v393_v56 = vld [vmem:[%s3429_s26 + $0x780] sm:$0xff]  ;;  %v395_v57 = vld [vmem:[%s3429_s26 + $0x788] sm:$0xff] }
  0x51   : > { %v397_v58 = vld [vmem:[%s3429_s26 + $0x7a0] sm:$0xff]  ;;  %394 = vst [vmem:[%s3437_s27 + $0x3c0] sm:$0xff] %v393_v56  ;;  %396 = vst [vmem:[%s3437_s27 + $0x3c8] sm:$0xff] %v395_v57  ;;  %v399_v59 = vld [vmem:[%s3429_s26 + $0x7a8] sm:$0xff] }
  0x52   : > { %398 = vst [vmem:[%s3437_s27 + $0x3d0] sm:$0xff] %v397_v58  ;;  %v401_v60 = vld [vmem:[%s3429_s26 + $0x7c0] sm:$0xff]  ;;  %v403_v61 = vld [vmem:[%s3429_s26 + $0x7c8] sm:$0xff]  ;;  %400 = vst [vmem:[%s3437_s27 + $0x3d8] sm:$0xff] %v399_v59 }
  0x53   : > { %402 = vst [vmem:[%s3437_s27 + $0x3e0] sm:$0xff] %v401_v60  ;;  %404 = vst [vmem:[%s3437_s27 + $0x3e8] sm:$0xff] %v403_v61  ;;  %v405_v62 = vld [vmem:[%s3429_s26 + $0x7e0] sm:$0xff]  ;;  %v407_v63 = vld [vmem:[%s3429_s26 + $0x7e8] sm:$0xff] }
  0x54   : > { %v409_v0 = vld [vmem:[%s3429_s26 + $0x800] sm:$0xff]  ;;  %406 = vst [vmem:[%s3437_s27 + $0x3f0] sm:$0xff] %v405_v62  ;;  %408 = vst [vmem:[%s3437_s27 + $0x3f8] sm:$0xff] %v407_v63  ;;  %v411_v1 = vld [vmem:[%s3429_s26 + $0x808] sm:$0xff] }
  0x55   : > { %410 = vst [vmem:[%s3437_s27 + $0x400] sm:$0xff] %v409_v0  ;;  %v413_v2 = vld [vmem:[%s3429_s26 + $0x820] sm:$0xff]  ;;  %v415_v3 = vld [vmem:[%s3429_s26 + $0x828] sm:$0xff]  ;;  %412 = vst [vmem:[%s3437_s27 + $0x408] sm:$0xff] %v411_v1 }
  0x56   : > { %414 = vst [vmem:[%s3437_s27 + $0x410] sm:$0xff] %v413_v2  ;;  %416 = vst [vmem:[%s3437_s27 + $0x418] sm:$0xff] %v415_v3  ;;  %v417_v4 = vld [vmem:[%s3429_s26 + $0x840] sm:$0xff]  ;;  %v419_v5 = vld [vmem:[%s3429_s26 + $0x848] sm:$0xff] }
  0x57   : > { %v421_v6 = vld [vmem:[%s3429_s26 + $0x860] sm:$0xff]  ;;  %418 = vst [vmem:[%s3437_s27 + $0x420] sm:$0xff] %v417_v4  ;;  %420 = vst [vmem:[%s3437_s27 + $0x428] sm:$0xff] %v419_v5  ;;  %v423_v7 = vld [vmem:[%s3429_s26 + $0x868] sm:$0xff] }
  0x58   : > { %422 = vst [vmem:[%s3437_s27 + $0x430] sm:$0xff] %v421_v6  ;;  %v425_v8 = vld [vmem:[%s3429_s26 + $0x880] sm:$0xff]  ;;  %v427_v9 = vld [vmem:[%s3429_s26 + $0x888] sm:$0xff]  ;;  %424 = vst [vmem:[%s3437_s27 + $0x438] sm:$0xff] %v423_v7 }
  0x59   : > { %426 = vst [vmem:[%s3437_s27 + $0x440] sm:$0xff] %v425_v8  ;;  %428 = vst [vmem:[%s3437_s27 + $0x448] sm:$0xff] %v427_v9  ;;  %v429_v10 = vld [vmem:[%s3429_s26 + $0x8a0] sm:$0xff]  ;;  %v431_v11 = vld [vmem:[%s3429_s26 + $0x8a8] sm:$0xff] }
  0x5a   : > { %v433_v12 = vld [vmem:[%s3429_s26 + $0x8c0] sm:$0xff]  ;;  %430 = vst [vmem:[%s3437_s27 + $0x450] sm:$0xff] %v429_v10  ;;  %432 = vst [vmem:[%s3437_s27 + $0x458] sm:$0xff] %v431_v11  ;;  %v435_v13 = vld [vmem:[%s3429_s26 + $0x8c8] sm:$0xff] }
  0x5b   : > { %434 = vst [vmem:[%s3437_s27 + $0x460] sm:$0xff] %v433_v12  ;;  %v437_v14 = vld [vmem:[%s3429_s26 + $0x8e0] sm:$0xff]  ;;  %v439_v15 = vld [vmem:[%s3429_s26 + $0x8e8] sm:$0xff]  ;;  %436 = vst [vmem:[%s3437_s27 + $0x468] sm:$0xff] %v435_v13 }
  0x5c   : > { %438 = vst [vmem:[%s3437_s27 + $0x470] sm:$0xff] %v437_v14  ;;  %440 = vst [vmem:[%s3437_s27 + $0x478] sm:$0xff] %v439_v15  ;;  %v441_v16 = vld [vmem:[%s3429_s26 + $0x900] sm:$0xff]  ;;  %v443_v17 = vld [vmem:[%s3429_s26 + $0x908] sm:$0xff] }
  0x5d   : > { %v445_v18 = vld [vmem:[%s3429_s26 + $0x920] sm:$0xff]  ;;  %442 = vst [vmem:[%s3437_s27 + $0x480] sm:$0xff] %v441_v16  ;;  %444 = vst [vmem:[%s3437_s27 + $0x488] sm:$0xff] %v443_v17  ;;  %v447_v19 = vld [vmem:[%s3429_s26 + $0x928] sm:$0xff] }
  0x5e   : > { %446 = vst [vmem:[%s3437_s27 + $0x490] sm:$0xff] %v445_v18  ;;  %v449_v20 = vld [vmem:[%s3429_s26 + $0x940] sm:$0xff]  ;;  %v451_v21 = vld [vmem:[%s3429_s26 + $0x948] sm:$0xff]  ;;  %448 = vst [vmem:[%s3437_s27 + $0x498] sm:$0xff] %v447_v19 }
  0x5f   : > { %450 = vst [vmem:[%s3437_s27 + $0x4a0] sm:$0xff] %v449_v20  ;;  %452 = vst [vmem:[%s3437_s27 + $0x4a8] sm:$0xff] %v451_v21  ;;  %v453_v22 = vld [vmem:[%s3429_s26 + $0x960] sm:$0xff]  ;;  %v455_v23 = vld [vmem:[%s3429_s26 + $0x968] sm:$0xff] }
  0x60   : > { %v457_v24 = vld [vmem:[%s3429_s26 + $0x980] sm:$0xff]  ;;  %454 = vst [vmem:[%s3437_s27 + $0x4b0] sm:$0xff] %v453_v22  ;;  %456 = vst [vmem:[%s3437_s27 + $0x4b8] sm:$0xff] %v455_v23  ;;  %v459_v25 = vld [vmem:[%s3429_s26 + $0x988] sm:$0xff] }
  0x61   : > { %458 = vst [vmem:[%s3437_s27 + $0x4c0] sm:$0xff] %v457_v24  ;;  %v461_v26 = vld [vmem:[%s3429_s26 + $0x9a0] sm:$0xff]  ;;  %v463_v27 = vld [vmem:[%s3429_s26 + $0x9a8] sm:$0xff]  ;;  %460 = vst [vmem:[%s3437_s27 + $0x4c8] sm:$0xff] %v459_v25 }
  0x62   : > { %462 = vst [vmem:[%s3437_s27 + $0x4d0] sm:$0xff] %v461_v26  ;;  %464 = vst [vmem:[%s3437_s27 + $0x4d8] sm:$0xff] %v463_v27  ;;  %v465_v28 = vld [vmem:[%s3429_s26 + $0x9c0] sm:$0xff]  ;;  %v467_v29 = vld [vmem:[%s3429_s26 + $0x9c8] sm:$0xff] }
  0x63   : > { %v469_v30 = vld [vmem:[%s3429_s26 + $0x9e0] sm:$0xff]  ;;  %466 = vst [vmem:[%s3437_s27 + $0x4e0] sm:$0xff] %v465_v28  ;;  %468 = vst [vmem:[%s3437_s27 + $0x4e8] sm:$0xff] %v467_v29  ;;  %v471_v31 = vld [vmem:[%s3429_s26 + $0x9e8] sm:$0xff] }
  0x64   : > { %470 = vst [vmem:[%s3437_s27 + $0x4f0] sm:$0xff] %v469_v30  ;;  %v473_v32 = vld [vmem:[%s3429_s26 + $0xa00] sm:$0xff]  ;;  %v475_v33 = vld [vmem:[%s3429_s26 + $0xa08] sm:$0xff]  ;;  %472 = vst [vmem:[%s3437_s27 + $0x4f8] sm:$0xff] %v471_v31 }
  0x65   : > { %474 = vst [vmem:[%s3437_s27 + $0x500] sm:$0xff] %v473_v32  ;;  %476 = vst [vmem:[%s3437_s27 + $0x508] sm:$0xff] %v475_v33  ;;  %v477_v34 = vld [vmem:[%s3429_s26 + $0xa20] sm:$0xff]  ;;  %v479_v35 = vld [vmem:[%s3429_s26 + $0xa28] sm:$0xff] }
  0x66   : > { %v481_v36 = vld [vmem:[%s3429_s26 + $0xa40] sm:$0xff]  ;;  %478 = vst [vmem:[%s3437_s27 + $0x510] sm:$0xff] %v477_v34  ;;  %480 = vst [vmem:[%s3437_s27 + $0x518] sm:$0xff] %v479_v35  ;;  %v483_v37 = vld [vmem:[%s3429_s26 + $0xa48] sm:$0xff] }
  0x67   : > { %482 = vst [vmem:[%s3437_s27 + $0x520] sm:$0xff] %v481_v36  ;;  %v485_v38 = vld [vmem:[%s3429_s26 + $0xa60] sm:$0xff]  ;;  %v487_v39 = vld [vmem:[%s3429_s26 + $0xa68] sm:$0xff]  ;;  %484 = vst [vmem:[%s3437_s27 + $0x528] sm:$0xff] %v483_v37 }
  0x68   : > { %486 = vst [vmem:[%s3437_s27 + $0x530] sm:$0xff] %v485_v38  ;;  %488 = vst [vmem:[%s3437_s27 + $0x538] sm:$0xff] %v487_v39  ;;  %v489_v40 = vld [vmem:[%s3429_s26 + $0xa80] sm:$0xff]  ;;  %v491_v41 = vld [vmem:[%s3429_s26 + $0xa88] sm:$0xff] }
  0x69   : > { %v493_v42 = vld [vmem:[%s3429_s26 + $0xaa0] sm:$0xff]  ;;  %490 = vst [vmem:[%s3437_s27 + $0x540] sm:$0xff] %v489_v40  ;;  %492 = vst [vmem:[%s3437_s27 + $0x548] sm:$0xff] %v491_v41  ;;  %v495_v43 = vld [vmem:[%s3429_s26 + $0xaa8] sm:$0xff] }
  0x6a   : > { %494 = vst [vmem:[%s3437_s27 + $0x550] sm:$0xff] %v493_v42  ;;  %v497_v44 = vld [vmem:[%s3429_s26 + $0xac0] sm:$0xff]  ;;  %v499_v45 = vld [vmem:[%s3429_s26 + $0xac8] sm:$0xff]  ;;  %496 = vst [vmem:[%s3437_s27 + $0x558] sm:$0xff] %v495_v43 }
  0x6b   : > { %498 = vst [vmem:[%s3437_s27 + $0x560] sm:$0xff] %v497_v44  ;;  %500 = vst [vmem:[%s3437_s27 + $0x568] sm:$0xff] %v499_v45  ;;  %v501_v46 = vld [vmem:[%s3429_s26 + $0xae0] sm:$0xff]  ;;  %v503_v47 = vld [vmem:[%s3429_s26 + $0xae8] sm:$0xff] }
  0x6c   : > { %v505_v48 = vld [vmem:[%s3429_s26 + $0xb00] sm:$0xff]  ;;  %502 = vst [vmem:[%s3437_s27 + $0x570] sm:$0xff] %v501_v46  ;;  %504 = vst [vmem:[%s3437_s27 + $0x578] sm:$0xff] %v503_v47  ;;  %v507_v49 = vld [vmem:[%s3429_s26 + $0xb08] sm:$0xff] }
  0x6d   : > { %506 = vst [vmem:[%s3437_s27 + $0x580] sm:$0xff] %v505_v48  ;;  %v509_v50 = vld [vmem:[%s3429_s26 + $0xb20] sm:$0xff]  ;;  %v511_v51 = vld [vmem:[%s3429_s26 + $0xb28] sm:$0xff]  ;;  %508 = vst [vmem:[%s3437_s27 + $0x588] sm:$0xff] %v507_v49 }
  0x6e   : > { %510 = vst [vmem:[%s3437_s27 + $0x590] sm:$0xff] %v509_v50  ;;  %512 = vst [vmem:[%s3437_s27 + $0x598] sm:$0xff] %v511_v51  ;;  %v513_v52 = vld [vmem:[%s3429_s26 + $0xb40] sm:$0xff]  ;;  %v515_v53 = vld [vmem:[%s3429_s26 + $0xb48] sm:$0xff] }
  0x6f   : > { %v517_v54 = vld [vmem:[%s3429_s26 + $0xb60] sm:$0xff]  ;;  %514 = vst [vmem:[%s3437_s27 + $0x5a0] sm:$0xff] %v513_v52  ;;  %516 = vst [vmem:[%s3437_s27 + $0x5a8] sm:$0xff] %v515_v53  ;;  %v519_v55 = vld [vmem:[%s3429_s26 + $0xb68] sm:$0xff] }
  0x70   : > { %518 = vst [vmem:[%s3437_s27 + $0x5b0] sm:$0xff] %v517_v54  ;;  %v521_v56 = vld [vmem:[%s3429_s26 + $0xb80] sm:$0xff]  ;;  %v523_v57 = vld [vmem:[%s3429_s26 + $0xb88] sm:$0xff]  ;;  %520 = vst [vmem:[%s3437_s27 + $0x5b8] sm:$0xff] %v519_v55 }
  0x71   : > { %522 = vst [vmem:[%s3437_s27 + $0x5c0] sm:$0xff] %v521_v56  ;;  %524 = vst [vmem:[%s3437_s27 + $0x5c8] sm:$0xff] %v523_v57  ;;  %v525_v58 = vld [vmem:[%s3429_s26 + $0xba0] sm:$0xff]  ;;  %v527_v59 = vld [vmem:[%s3429_s26 + $0xba8] sm:$0xff] }
  0x72   : > { %v529_v60 = vld [vmem:[%s3429_s26 + $0xbc0] sm:$0xff]  ;;  %526 = vst [vmem:[%s3437_s27 + $0x5d0] sm:$0xff] %v525_v58  ;;  %528 = vst [vmem:[%s3437_s27 + $0x5d8] sm:$0xff] %v527_v59  ;;  %v531_v61 = vld [vmem:[%s3429_s26 + $0xbc8] sm:$0xff] }
  0x73   : > { %530 = vst [vmem:[%s3437_s27 + $0x5e0] sm:$0xff] %v529_v60  ;;  %v533_v62 = vld [vmem:[%s3429_s26 + $0xbe0] sm:$0xff]  ;;  %v535_v63 = vld [vmem:[%s3429_s26 + $0xbe8] sm:$0xff]  ;;  %532 = vst [vmem:[%s3437_s27 + $0x5e8] sm:$0xff] %v531_v61 }
  0x74   : > { %534 = vst [vmem:[%s3437_s27 + $0x5f0] sm:$0xff] %v533_v62  ;;  %536 = vst [vmem:[%s3437_s27 + $0x5f8] sm:$0xff] %v535_v63  ;;  %v537_v0 = vld [vmem:[%s3429_s26 + $0xc00] sm:$0xff]  ;;  %v539_v1 = vld [vmem:[%s3429_s26 + $0xc08] sm:$0xff] }
  0x75   : > { %v541_v2 = vld [vmem:[%s3429_s26 + $0xc20] sm:$0xff]  ;;  %538 = vst [vmem:[%s3437_s27 + $0x600] sm:$0xff] %v537_v0  ;;  %540 = vst [vmem:[%s3437_s27 + $0x608] sm:$0xff] %v539_v1  ;;  %v543_v3 = vld [vmem:[%s3429_s26 + $0xc28] sm:$0xff] }
  0x76   : > { %542 = vst [vmem:[%s3437_s27 + $0x610] sm:$0xff] %v541_v2  ;;  %v545_v4 = vld [vmem:[%s3429_s26 + $0xc40] sm:$0xff]  ;;  %v547_v5 = vld [vmem:[%s3429_s26 + $0xc48] sm:$0xff]  ;;  %544 = vst [vmem:[%s3437_s27 + $0x618] sm:$0xff] %v543_v3 }
  0x77   : > { %546 = vst [vmem:[%s3437_s27 + $0x620] sm:$0xff] %v545_v4  ;;  %548 = vst [vmem:[%s3437_s27 + $0x628] sm:$0xff] %v547_v5  ;;  %v549_v6 = vld [vmem:[%s3429_s26 + $0xc60] sm:$0xff]  ;;  %v551_v7 = vld [vmem:[%s3429_s26 + $0xc68] sm:$0xff] }
  0x78   : > { %v553_v8 = vld [vmem:[%s3429_s26 + $0xc80] sm:$0xff]  ;;  %550 = vst [vmem:[%s3437_s27 + $0x630] sm:$0xff] %v549_v6  ;;  %552 = vst [vmem:[%s3437_s27 + $0x638] sm:$0xff] %v551_v7  ;;  %v555_v9 = vld [vmem:[%s3429_s26 + $0xc88] sm:$0xff] }
  0x79   : > { %554 = vst [vmem:[%s3437_s27 + $0x640] sm:$0xff] %v553_v8  ;;  %v557_v10 = vld [vmem:[%s3429_s26 + $0xca0] sm:$0xff]  ;;  %v559_v11 = vld [vmem:[%s3429_s26 + $0xca8] sm:$0xff]  ;;  %556 = vst [vmem:[%s3437_s27 + $0x648] sm:$0xff] %v555_v9 }
  0x7a   : > { %558 = vst [vmem:[%s3437_s27 + $0x650] sm:$0xff] %v557_v10  ;;  %560 = vst [vmem:[%s3437_s27 + $0x658] sm:$0xff] %v559_v11  ;;  %v561_v12 = vld [vmem:[%s3429_s26 + $0xcc0] sm:$0xff]  ;;  %v563_v13 = vld [vmem:[%s3429_s26 + $0xcc8] sm:$0xff] }
  0x7b   : > { %v565_v14 = vld [vmem:[%s3429_s26 + $0xce0] sm:$0xff]  ;;  %562 = vst [vmem:[%s3437_s27 + $0x660] sm:$0xff] %v561_v12  ;;  %564 = vst [vmem:[%s3437_s27 + $0x668] sm:$0xff] %v563_v13  ;;  %v567_v15 = vld [vmem:[%s3429_s26 + $0xce8] sm:$0xff] }
  0x7c   : > { %566 = vst [vmem:[%s3437_s27 + $0x670] sm:$0xff] %v565_v14  ;;  %v569_v16 = vld [vmem:[%s3429_s26 + $0xd00] sm:$0xff]  ;;  %v571_v17 = vld [vmem:[%s3429_s26 + $0xd08] sm:$0xff]  ;;  %568 = vst [vmem:[%s3437_s27 + $0x678] sm:$0xff] %v567_v15 }
  0x7d   : > { %570 = vst [vmem:[%s3437_s27 + $0x680] sm:$0xff] %v569_v16  ;;  %572 = vst [vmem:[%s3437_s27 + $0x688] sm:$0xff] %v571_v17  ;;  %v573_v18 = vld [vmem:[%s3429_s26 + $0xd20] sm:$0xff]  ;;  %v575_v19 = vld [vmem:[%s3429_s26 + $0xd28] sm:$0xff] }
  0x7e   : > { %v577_v20 = vld [vmem:[%s3429_s26 + $0xd40] sm:$0xff]  ;;  %574 = vst [vmem:[%s3437_s27 + $0x690] sm:$0xff] %v573_v18  ;;  %576 = vst [vmem:[%s3437_s27 + $0x698] sm:$0xff] %v575_v19  ;;  %v579_v21 = vld [vmem:[%s3429_s26 + $0xd48] sm:$0xff] }
  0x7f   : > { %578 = vst [vmem:[%s3437_s27 + $0x6a0] sm:$0xff] %v577_v20  ;;  %v581_v22 = vld [vmem:[%s3429_s26 + $0xd60] sm:$0xff]  ;;  %v583_v23 = vld [vmem:[%s3429_s26 + $0xd68] sm:$0xff]  ;;  %580 = vst [vmem:[%s3437_s27 + $0x6a8] sm:$0xff] %v579_v21 }
  0x80   : > { %582 = vst [vmem:[%s3437_s27 + $0x6b0] sm:$0xff] %v581_v22  ;;  %584 = vst [vmem:[%s3437_s27 + $0x6b8] sm:$0xff] %v583_v23 }
  0x81 PF: > { %p2678_p7 = scmp.ge.s32.totalorder %s3365_s14, 1  ;;  %p589_p8 = scmp.lt.s32.totalorder %s3365_s14, 3 }
  0x83   : > { %p590_p9 = pnand %p2678_p7, %p589_p8 }
  0x84   : > { %s596_s28 = sand.u32 (!%p590_p9), 1, %s3357_s12   ;;  %v3097_v24 = vld [vmem:[%s4192_s1 + $0x4] ss:$28 sps:$4 sm:$0xff] (!%p590_p9)   ;;  %vm2013_vm0 = vcmask (!%p590_p9), 785408   ;;  %p625_p10 = scmp.lt.s32.totalorder (!%p590_p9), %s3404_s15, 1  ;;  %vm2516_vm1 = vcmask (!%p590_p9), 7168  }
  0x85   : > { %593 = sbr.rel (%p590_p9) target bundleno = 734 (0x2de), region = 47  ;;  %2052 = vmatprep.mubr.bf16.mxu0 (!%p590_p9), %v3097_v24  ;;  %2264 = vmatprep.mubr.bf16.mxu1 (!%p590_p9), %v3097_v24  ;;  %vm2521_vm2 = vcmask (!%p590_p9), 15360  }
  0x86   : > { %s2973_s29 = smul.u32 (!%p590_p9), 1728, %s596_s28 }
  0x88   : > { %s3873_s5 = scalar_lea.vmem (!%p590_p9), [#allocation2], %s2973_s29 }
  0x89   : > { %v2999_v25 = vld [vmem:[%s3873_s5 + $0x4] ss:$16 sps:$4 sm:$0xff] (!%p590_p9)   ;;  %v3001_v26 = vld [vmem:[%s3873_s5 + $0xc] ss:$16 sps:$4 sm:$0xff] (!%p590_p9)   ;;  %v3003_v27 = vld [vmem:[%s3873_s5] ss:$16 sps:$4 sm:$0xff] (!%p590_p9)  }
  0x8a   : > { %2020 = vmatprep.subr.bf16.mxu0 (!%p590_p9), %v2999_v25  ;;  %v3004_v28 = vld [vmem:[%s3873_s5 + $0x8] ss:$16 sps:$4 sm:$0xff] (!%p590_p9)   ;;  %2232 = vmatprep.subr.bf16.mxu1 (!%p590_p9), %v3001_v26  ;;  %v3005_v29 = vld [vmem:[%s3873_s5 + $0x24] ss:$16 sps:$4 sm:$0xff] (!%p590_p9)   ;;  %v3007_v30 = vld [vmem:[%s3873_s5 + $0x2c] ss:$16 sps:$4 sm:$0xff] (!%p590_p9)  }
  0x8b   : > { %2021 = vmatpush1.bf16.msra.mxu0 (!%p590_p9), %v3003_v27  ;;  %2233 = vmatpush1.bf16.msra.mxu1 (!%p590_p9), %v3004_v28  ;;  %v3009_v31 = vld [vmem:[%s3873_s5 + $0x20] ss:$16 sps:$4 sm:$0xff] (!%p590_p9)   ;;  %v3010_v32 = vld [vmem:[%s3873_s5 + $0x28] ss:$16 sps:$4 sm:$0xff] (!%p590_p9)   ;;  %v3011_v33 = vld [vmem:[%s3873_s5 + $0x44] ss:$16 sps:$4 sm:$0xff] (!%p590_p9)  }
  0x8c   : > { %2022 = vmatprep.subr.bf16.mxu0 %v3005_v29  ;;  %2234 = vmatprep.subr.bf16.mxu1 %v3007_v30  ;;  %v3013_v34 = vld [vmem:[%s3873_s5 + $0x4c] ss:$16 sps:$4 sm:$0xff]   ;;  %v3015_v35 = vld [vmem:[%s3873_s5 + $0x40] ss:$16 sps:$4 sm:$0xff]   ;;  %v3016_v36 = vld [vmem:[%s3873_s5 + $0x48] ss:$16 sps:$4 sm:$0xff]  }
  0x8d   : > { %v3017_v37 = vld [vmem:[%s3873_s5 + $0x64] ss:$16 sps:$4 sm:$0xff]   ;;  %v3019_v38 = vld [vmem:[%s3873_s5 + $0x6c] ss:$16 sps:$4 sm:$0xff]   ;;  %v3021_v39 = vld [vmem:[%s3873_s5 + $0x60] ss:$16 sps:$4 sm:$0xff]  }
  0x8e   : > { %v3022_v40 = vld [vmem:[%s3873_s5 + $0x68] ss:$16 sps:$4 sm:$0xff]   ;;  %v3023_v41 = vld [vmem:[%s3873_s5 + $0x84] ss:$16 sps:$4 sm:$0xff]   ;;  %v3025_v42 = vld [vmem:[%s3873_s5 + $0x8c] ss:$16 sps:$4 sm:$0xff]  }
  0x8f   : > { %2023 = vmatpush1.bf16.msra.mxu0 %v3009_v31  ;;  %2235 = vmatpush1.bf16.msra.mxu1 %v3010_v32  ;;  %v3027_v43 = vld [vmem:[%s3873_s5 + $0x80] ss:$16 sps:$4 sm:$0xff]   ;;  %v3028_v44 = vld [vmem:[%s3873_s5 + $0x88] ss:$16 sps:$4 sm:$0xff]   ;;  %v3029_v45 = vld [vmem:[%s3873_s5 + $0xa4] ss:$16 sps:$4 sm:$0xff]  }
  0x90   : > { %2024 = vmatprep.subr.bf16.mxu0 %v3011_v33  ;;  %2236 = vmatprep.subr.bf16.mxu1 %v3013_v34  ;;  %v3031_v46 = vld [vmem:[%s3873_s5 + $0xac] ss:$16 sps:$4 sm:$0xff]   ;;  %v3033_v47 = vld [vmem:[%s3873_s5 + $0xa0] ss:$16 sps:$4 sm:$0xff]   ;;  %v3034_v48 = vld [vmem:[%s3873_s5 + $0xa8] ss:$16 sps:$4 sm:$0xff]  }
  0x91   : > { %v3035_v49 = vld [vmem:[%s3873_s5 + $0xc4] ss:$16 sps:$4 sm:$0xff]   ;;  %v3037_v50 = vld [vmem:[%s3873_s5 + $0xcc] ss:$16 sps:$4 sm:$0xff]   ;;  %v3039_v51 = vld [vmem:[%s3873_s5 + $0xc0] ss:$16 sps:$4 sm:$0xff]  }
  0x92   : > { %v3040_v52 = vld [vmem:[%s3873_s5 + $0xc8] ss:$16 sps:$4 sm:$0xff]   ;;  %v3041_v53 = vld [vmem:[%s3873_s5 + $0xe4] ss:$16 sps:$4 sm:$0xff]   ;;  %v3043_v54 = vld [vmem:[%s3873_s5 + $0xec] ss:$16 sps:$4 sm:$0xff]  }
  0x93   : > { %2025 = vmatpush1.bf16.msra.mxu0 %v3015_v35  ;;  %2237 = vmatpush1.bf16.msra.mxu1 %v3016_v36  ;;  %v3045_v55 = vld [vmem:[%s3873_s5 + $0xe0] ss:$16 sps:$4 sm:$0xff]   ;;  %v3046_v56 = vld [vmem:[%s3873_s5 + $0xe8] ss:$16 sps:$4 sm:$0xff]   ;;  %v3047_v57 = vld [vmem:[%s3873_s5 + $0x104] ss:$16 sps:$4 sm:$0xff]  }
  0x94   : > { %2026 = vmatprep.subr.bf16.mxu0 %v3017_v37  ;;  %2238 = vmatprep.subr.bf16.mxu1 %v3019_v38  ;;  %v3049_v58 = vld [vmem:[%s3873_s5 + $0x10c] ss:$16 sps:$4 sm:$0xff]   ;;  %v3051_v59 = vld [vmem:[%s3873_s5 + $0x100] ss:$16 sps:$4 sm:$0xff]   ;;  %v3052_v60 = vld [vmem:[%s3873_s5 + $0x108] ss:$16 sps:$4 sm:$0xff]  }
  0x95   : > { %v3053_v61 = vld [vmem:[%s3873_s5 + $0x124] ss:$16 sps:$4 sm:$0xff]   ;;  %v3055_v62 = vld [vmem:[%s3873_s5 + $0x12c] ss:$16 sps:$4 sm:$0xff]   ;;  %v3057_v63 = vld [vmem:[%s3873_s5 + $0x120] ss:$16 sps:$4 sm:$0xff]  }
  0x96   : > { %v3058_v0 = vld [vmem:[%s3873_s5 + $0x128] ss:$16 sps:$4 sm:$0xff]   ;;  %v3059_v1 = vld [vmem:[%s3873_s5 + $0x144] ss:$16 sps:$4 sm:$0xff]   ;;  %v3061_v2 = vld [vmem:[%s3873_s5 + $0x14c] ss:$16 sps:$4 sm:$0xff]  }
  0x97   : > { %2027 = vmatpush1.bf16.msra.mxu0 %v3021_v39  ;;  %2239 = vmatpush1.bf16.msra.mxu1 %v3022_v40  ;;  %v3063_v3 = vld [vmem:[%s3873_s5 + $0x140] ss:$16 sps:$4 sm:$0xff]   ;;  %v3064_v4 = vld [vmem:[%s3873_s5 + $0x148] ss:$16 sps:$4 sm:$0xff]   ;;  %v3065_v5 = vld [vmem:[%s3873_s5 + $0x164] ss:$16 sps:$4 sm:$0xff]  }
  0x98   : > { %2028 = vmatprep.subr.bf16.mxu0 %v3023_v41  ;;  %2240 = vmatprep.subr.bf16.mxu1 %v3025_v42  ;;  %v3067_v6 = vld [vmem:[%s3873_s5 + $0x16c] ss:$16 sps:$4 sm:$0xff]   ;;  %v3069_v7 = vld [vmem:[%s3873_s5 + $0x160] ss:$16 sps:$4 sm:$0xff]   ;;  %v3070_v8 = vld [vmem:[%s3873_s5 + $0x168] ss:$16 sps:$4 sm:$0xff]  }
  0x99   : > { %v3071_v9 = vld [vmem:[%s3873_s5 + $0x184] ss:$16 sps:$4 sm:$0xff]   ;;  %v3073_v10 = vld [vmem:[%s3873_s5 + $0x18c] ss:$16 sps:$4 sm:$0xff]   ;;  %v3075_v11 = vld [vmem:[%s3873_s5 + $0x180] ss:$16 sps:$4 sm:$0xff]  }
  0x9a   : > { %v3076_v12 = vld [vmem:[%s3873_s5 + $0x188] ss:$16 sps:$4 sm:$0xff]   ;;  %v3077_v13 = vld [vmem:[%s3873_s5 + $0x1a4] ss:$16 sps:$4 sm:$0xff]   ;;  %v3079_v14 = vld [vmem:[%s3873_s5 + $0x1ac] ss:$16 sps:$4 sm:$0xff]  }
  0x9b   : > { %2029 = vmatpush1.bf16.msra.mxu0 %v3027_v43  ;;  %2241 = vmatpush1.bf16.msra.mxu1 %v3028_v44  ;;  %v3081_v15 = vld [vmem:[%s3873_s5 + $0x1a0] ss:$16 sps:$4 sm:$0xff]   ;;  %v3082_v16 = vld [vmem:[%s3873_s5 + $0x1a8] ss:$16 sps:$4 sm:$0xff]   ;;  %v3083_v17 = vld [vmem:[%s3873_s5 + $0x1c4] ss:$16 sps:$4 sm:$0xff]  }
  0x9c   : > { %2030 = vmatprep.subr.bf16.mxu0 %v3029_v45  ;;  %2242 = vmatprep.subr.bf16.mxu1 %v3031_v46  ;;  %v3085_v18 = vld [vmem:[%s3873_s5 + $0x1cc] ss:$16 sps:$4 sm:$0xff]   ;;  %v3087_v19 = vld [vmem:[%s3873_s5 + $0x1c0] ss:$16 sps:$4 sm:$0xff]   ;;  %v3088_v20 = vld [vmem:[%s3873_s5 + $0x1c8] ss:$16 sps:$4 sm:$0xff]  }
  0x9d   : > { %v3089_v21 = vld [vmem:[%s3873_s5 + $0x1e4] ss:$16 sps:$4 sm:$0xff]   ;;  %v3091_v22 = vld [vmem:[%s3873_s5 + $0x1ec] ss:$16 sps:$4 sm:$0xff]   ;;  %v3093_v23 = vld [vmem:[%s3873_s5 + $0x1e0] ss:$16 sps:$4 sm:$0xff]  }
  0x9e   : > { %v3094_v24 = vld [vmem:[%s3873_s5 + $0x1e8] ss:$16 sps:$4 sm:$0xff]   ;;  %v3100_v25 = vld [vmem:[%s3873_s5 + $0x204] ss:$16 sps:$4 sm:$0xff]   ;;  %v3103_v26 = vld [vmem:[%s3873_s5 + $0x20c] ss:$16 sps:$4 sm:$0xff]  }
  0x9f   : > { %2031 = vmatpush1.bf16.msra.mxu0 %v3033_v47  ;;  %2243 = vmatpush1.bf16.msra.mxu1 %v3034_v48  ;;  %v3095_v27 = vld [vmem:[%s4192_s1] ss:$28 sps:$4 sm:$0xff]   ;;  %v3101_v29 = vld [vmem:[%s3873_s5 + $0x208] ss:$16 sps:$4 sm:$0xff]   ;;  %v3106_v30 = vld [vmem:[%s3873_s5 + $0x224] ss:$16 sps:$4 sm:$0xff]  }
  0xa0   : > { %2032 = vmatprep.subr.bf16.mxu0 %v3035_v49  ;;  %2244 = vmatprep.subr.bf16.mxu1 %v3037_v50  ;;  %v3098_v28 = vld [vmem:[%s3873_s5 + $0x200] ss:$16 sps:$4 sm:$0xff]   ;;  %v3109_v31 = vld [vmem:[%s3873_s5 + $0x22c] ss:$16 sps:$4 sm:$0xff]   ;;  %v3107_v34 = vld [vmem:[%s3873_s5 + $0x228] ss:$16 sps:$4 sm:$0xff]  }
  0xa1   : > { %v3182_v32 = vld [vmem:[%s4192_s1 + $0x3c] ss:$28 sps:$4 sm:$0xff]   ;;  %v3104_v33 = vld [vmem:[%s3873_s5 + $0x220] ss:$16 sps:$4 sm:$0xff]   ;;  %v3112_v35 = vld [vmem:[%s3873_s5 + $0x244] ss:$16 sps:$4 sm:$0xff]  }
  0xa2   : > { %v3115_v36 = vld [vmem:[%s3873_s5 + $0x24c] ss:$16 sps:$4 sm:$0xff]   ;;  %v3190_v37 = vld [vmem:[%s4192_s1 + $0x38] ss:$28 sps:$4 sm:$0xff]   ;;  %v3110_v38 = vld [vmem:[%s3873_s5 + $0x240] ss:$16 sps:$4 sm:$0xff]  }
  0xa3   : > { %2033 = vmatpush1.bf16.msra.mxu0 %v3039_v51  ;;  %2245 = vmatpush1.bf16.msra.mxu1 %v3040_v52  ;;  %v3113_v39 = vld [vmem:[%s3873_s5 + $0x248] ss:$16 sps:$4 sm:$0xff]   ;;  %v3118_v40 = vld [vmem:[%s3873_s5 + $0x264] ss:$16 sps:$4 sm:$0xff]   ;;  %v3121_v41 = vld [vmem:[%s3873_s5 + $0x26c] ss:$16 sps:$4 sm:$0xff]  }
  0xa4   : > { %2034 = vmatprep.subr.bf16.mxu0 %v3041_v53  ;;  %2246 = vmatprep.subr.bf16.mxu1 %v3043_v54  ;;  %v3116_v42 = vld [vmem:[%s3873_s5 + $0x260] ss:$16 sps:$4 sm:$0xff]   ;;  %v3119_v43 = vld [vmem:[%s3873_s5 + $0x268] ss:$16 sps:$4 sm:$0xff]   ;;  %v3124_v44 = vld [vmem:[%s3873_s5 + $0x284] ss:$16 sps:$4 sm:$0xff]  }
  0xa5   : > { %v3127_v45 = vld [vmem:[%s3873_s5 + $0x28c] ss:$16 sps:$4 sm:$0xff]   ;;  %v3122_v46 = vld [vmem:[%s3873_s5 + $0x280] ss:$16 sps:$4 sm:$0xff]   ;;  %v3125_v47 = vld [vmem:[%s3873_s5 + $0x288] ss:$16 sps:$4 sm:$0xff]  }
  0xa6   : > { %v3130_v48 = vld [vmem:[%s3873_s5 + $0x2a4] ss:$16 sps:$4 sm:$0xff]   ;;  %v3133_v49 = vld [vmem:[%s3873_s5 + $0x2ac] ss:$16 sps:$4 sm:$0xff]   ;;  %v3128_v50 = vld [vmem:[%s3873_s5 + $0x2a0] ss:$16 sps:$4 sm:$0xff]  }
  0xa7   : > { %2035 = vmatpush1.bf16.msra.mxu0 %v3045_v55  ;;  %2247 = vmatpush1.bf16.msra.mxu1 %v3046_v56  ;;  %v3131_v51 = vld [vmem:[%s3873_s5 + $0x2a8] ss:$16 sps:$4 sm:$0xff]   ;;  %v3136_v52 = vld [vmem:[%s3873_s5 + $0x2c4] ss:$16 sps:$4 sm:$0xff]   ;;  %v3139_v53 = vld [vmem:[%s3873_s5 + $0x2cc] ss:$16 sps:$4 sm:$0xff]  }
  0xa8   : > { %2036 = vmatprep.subr.bf16.mxu0 %v3047_v57  ;;  %2248 = vmatprep.subr.bf16.mxu1 %v3049_v58  ;;  %v3199_v54 = vld [vmem:[%s4192_s1 + $0xc] ss:$28 sps:$4 sm:$0xff]   ;;  %v3134_v55 = vld [vmem:[%s3873_s5 + $0x2c0] ss:$16 sps:$4 sm:$0xff]   ;;  %v3142_v57 = vld [vmem:[%s3873_s5 + $0x2e4] ss:$16 sps:$4 sm:$0xff]  }
  0xa9   : > { %v3137_v56 = vld [vmem:[%s3873_s5 + $0x2c8] ss:$16 sps:$4 sm:$0xff]   ;;  %v3145_v58 = vld [vmem:[%s3873_s5 + $0x2ec] ss:$16 sps:$4 sm:$0xff]   ;;  %s626_s12 = scalar_select %p625_p10, %s3404_s15, 1 }
  0xaa   : > { %s2923_s23 = sshll.u32 (%p3419_p5), %s3404_s15, 5 }
  0xab   : > { %2037 = vmatpush1.bf16.msra.mxu0 %v3051_v59  ;;  %2249 = vmatpush1.bf16.msra.mxu1 %v3052_v60  ;;  %v3140_v59 = vld [vmem:[%s3873_s5 + $0x2e0] ss:$16 sps:$4 sm:$0xff]   ;;  %v3143_v60 = vld [vmem:[%s3873_s5 + $0x2e8] ss:$16 sps:$4 sm:$0xff]   ;;  %s2540_s26 = scalar_lea.vmem (%p3419_p5), %s4193_s2, %s2923_s23 }
  0xac   : > { %2038 = vmatprep.subr.bf16.mxu0 %v3053_v61  ;;  %2250 = vmatprep.subr.bf16.mxu1 %v3055_v62  ;;  %v3148_v61 = vld [vmem:[%s3873_s5 + $0x304] ss:$16 sps:$4 sm:$0xff]   ;;  %v3151_v62 = vld [vmem:[%s3873_s5 + $0x30c] ss:$16 sps:$4 sm:$0xff]  }
  0xaf   : > { %2039 = vmatpush1.bf16.msra.mxu0 %v3057_v63  ;;  %2251 = vmatpush1.bf16.msra.mxu1 %v3058_v0  ;;  %v3146_v63 = vld [vmem:[%s3873_s5 + $0x300] ss:$16 sps:$4 sm:$0xff]   ;;  %v3149_v0 = vld [vmem:[%s3873_s5 + $0x308] ss:$16 sps:$4 sm:$0xff]  }
  0xb0   : > { %2040 = vmatprep.subr.bf16.mxu0 %v3059_v1  ;;  %2252 = vmatprep.subr.bf16.mxu1 %v3061_v2  ;;  %v3154_v1 = vld [vmem:[%s3873_s5 + $0x324] ss:$16 sps:$4 sm:$0xff]   ;;  %v3157_v2 = vld [vmem:[%s3873_s5 + $0x32c] ss:$16 sps:$4 sm:$0xff]  }
  0xb3   : > { %2041 = vmatpush1.bf16.msra.mxu0 %v3063_v3  ;;  %2253 = vmatpush1.bf16.msra.mxu1 %v3064_v4  ;;  %v3152_v3 = vld [vmem:[%s3873_s5 + $0x320] ss:$16 sps:$4 sm:$0xff]   ;;  %v3155_v4 = vld [vmem:[%s3873_s5 + $0x328] ss:$16 sps:$4 sm:$0xff]  }
  0xb4   : > { %2042 = vmatprep.subr.bf16.mxu0 %v3065_v5  ;;  %2254 = vmatprep.subr.bf16.mxu1 %v3067_v6  ;;  %v3160_v5 = vld [vmem:[%s3873_s5 + $0x344] ss:$16 sps:$4 sm:$0xff]   ;;  %v3163_v6 = vld [vmem:[%s3873_s5 + $0x34c] ss:$16 sps:$4 sm:$0xff]  }
  0xb7   : > { %2043 = vmatpush1.bf16.msra.mxu0 %v3069_v7  ;;  %2255 = vmatpush1.bf16.msra.mxu1 %v3070_v8  ;;  %v3158_v7 = vld [vmem:[%s3873_s5 + $0x340] ss:$16 sps:$4 sm:$0xff]   ;;  %v3161_v8 = vld [vmem:[%s3873_s5 + $0x348] ss:$16 sps:$4 sm:$0xff]  }
  0xb8   : > { %2044 = vmatprep.subr.bf16.mxu0 %v3071_v9  ;;  %2256 = vmatprep.subr.bf16.mxu1 %v3073_v10  ;;  %v3166_v9 = vld [vmem:[%s3873_s5 + $0x364] ss:$16 sps:$4 sm:$0xff]   ;;  %v3169_v10 = vld [vmem:[%s3873_s5 + $0x36c] ss:$16 sps:$4 sm:$0xff]  }
  0xbb   : > { %2045 = vmatpush1.bf16.msra.mxu0 %v3075_v11  ;;  %2257 = vmatpush1.bf16.msra.mxu1 %v3076_v12  ;;  %v3164_v11 = vld [vmem:[%s3873_s5 + $0x360] ss:$16 sps:$4 sm:$0xff]   ;;  %v3167_v12 = vld [vmem:[%s3873_s5 + $0x368] ss:$16 sps:$4 sm:$0xff]  }
  0xbc   : > { %2046 = vmatprep.subr.bf16.mxu0 %v3077_v13  ;;  %2258 = vmatprep.subr.bf16.mxu1 %v3079_v14  ;;  %v3172_v13 = vld [vmem:[%s3873_s5 + $0x384] ss:$16 sps:$4 sm:$0xff]   ;;  %v3175_v14 = vld [vmem:[%s3873_s5 + $0x38c] ss:$16 sps:$4 sm:$0xff]  }
  0xbf   : > { %2047 = vmatpush1.bf16.msra.mxu0 %v3081_v15  ;;  %2259 = vmatpush1.bf16.msra.mxu1 %v3082_v16  ;;  %v3170_v15 = vld [vmem:[%s3873_s5 + $0x380] ss:$16 sps:$4 sm:$0xff]   ;;  %v3173_v16 = vld [vmem:[%s3873_s5 + $0x388] ss:$16 sps:$4 sm:$0xff]  }
  0xc0   : > { %2048 = vmatprep.subr.bf16.mxu0 %v3083_v17  ;;  %2260 = vmatprep.subr.bf16.mxu1 %v3085_v18  ;;  %v3178_v17 = vld [vmem:[%s3873_s5 + $0x3a4] ss:$16 sps:$4 sm:$0xff]   ;;  %v3181_v18 = vld [vmem:[%s3873_s5 + $0x3ac] ss:$16 sps:$4 sm:$0xff]  }
  0xc3   : > { %2049 = vmatpush1.bf16.msra.mxu0 %v3087_v19  ;;  %2261 = vmatpush1.bf16.msra.mxu1 %v3088_v20  ;;  %v3176_v19 = vld [vmem:[%s3873_s5 + $0x3a0] ss:$16 sps:$4 sm:$0xff]   ;;  %v3179_v20 = vld [vmem:[%s3873_s5 + $0x3a8] ss:$16 sps:$4 sm:$0xff]  }
  0xc4   : > { %2050 = vmatprep.subr.bf16.mxu0 %v3089_v21  ;;  %2262 = vmatprep.subr.bf16.mxu1 %v3091_v22  ;;  %v3186_v21 = vld [vmem:[%s3873_s5 + $0x3c4] ss:$16 sps:$4 sm:$0xff]   ;;  %v3189_v22 = vld [vmem:[%s3873_s5 + $0x3cc] ss:$16 sps:$4 sm:$0xff]  }
  0xc7   : > { %2051 = vmatpush1.bf16.msra.mxu0 %v3093_v23  ;;  %2263 = vmatpush1.bf16.msra.mxu1 %v3094_v24  ;;  %v3184_v23 = vld [vmem:[%s3873_s5 + $0x3c0] ss:$16 sps:$4 sm:$0xff]   ;;  %v3187_v24 = vld [vmem:[%s3873_s5 + $0x3c8] ss:$16 sps:$4 sm:$0xff]  }
  0xc8   : > { %2073 = vmatprep.subr.bf16.mxu0 %v3100_v25  ;;  %2285 = vmatprep.subr.bf16.mxu1 %v3103_v26  ;;  %v3193_v25 = vld [vmem:[%s3873_s5 + $0x3e4] ss:$16 sps:$4 sm:$0xff]   ;;  %v3196_v26 = vld [vmem:[%s3873_s5 + $0x3ec] ss:$16 sps:$4 sm:$0xff]  }
  0xca   : > { %2053 = vmatmul.mubr.bf16.vlgmr.msra.gmra.mrb[0].mxu0 %v3095_v27  ;;  %2265 = vmatmul.mubr.bf16.vlgmr.msra.gmra.mrb[0].mxu1 %v3095_v27  ;;  %v3191_v27 = vld [vmem:[%s3873_s5 + $0x3e0] ss:$16 sps:$4 sm:$0xff]  }
  0xcb   : > { %2074 = vmatpush1.bf16.msra.mxu0 %v3098_v28  ;;  %2286 = vmatpush1.bf16.msra.mxu1 %v3101_v29  ;;  %v3194_v28 = vld [vmem:[%s3873_s5 + $0x3e8] ss:$16 sps:$4 sm:$0xff]   ;;  %v3202_v29 = vld [vmem:[%s3873_s5 + $0x404] ss:$16 sps:$4 sm:$0xff]  }
  0xcc   : > { %2075 = vmatprep.subr.bf16.mxu0 %v3106_v30  ;;  %2287 = vmatprep.subr.bf16.mxu1 %v3109_v31  ;;  %v3205_v30 = vld [vmem:[%s3873_s5 + $0x40c] ss:$16 sps:$4 sm:$0xff]   ;;  %v3197_v31 = vld [vmem:[%s4192_s1 + $0x8] ss:$28 sps:$4 sm:$0xff]  }
  0xcd   : > { %2062 = vmatprep.mubr.bf16.mxu0 %v3182_v32  ;;  %2274 = vmatprep.mubr.bf16.mxu1 %v3182_v32  ;;  %v3200_v32 = vld [vmem:[%s3873_s5 + $0x400] ss:$16 sps:$4 sm:$0xff]  }
  0xcf   : > { %2076 = vmatpush1.bf16.msra.mxu0 %v3104_v33  ;;  %2288 = vmatpush1.bf16.msra.mxu1 %v3107_v34  ;;  %v3203_v33 = vld [vmem:[%s3873_s5 + $0x408] ss:$16 sps:$4 sm:$0xff]   ;;  %v3208_v34 = vld [vmem:[%s3873_s5 + $0x424] ss:$16 sps:$4 sm:$0xff]  }
  0xd0   : > { %2077 = vmatprep.subr.bf16.mxu0 %v3112_v35  ;;  %2289 = vmatprep.subr.bf16.mxu1 %v3115_v36  ;;  %v3211_v35 = vld [vmem:[%s3873_s5 + $0x42c] ss:$16 sps:$4 sm:$0xff]   ;;  %v3284_v36 = vld [vmem:[%s4192_s1 + $0x44] ss:$28 sps:$4 sm:$0xff]  }
  0xd2   : > { %2063 = vmatmul.mubr.bf16.gmra.mrb[4].mxu0 %v3190_v37  ;;  %2275 = vmatmul.mubr.bf16.gmra.mrb[4].mxu1 %v3190_v37  ;;  %v3206_v37 = vld [vmem:[%s3873_s5 + $0x420] ss:$16 sps:$4 sm:$0xff]  }
  0xd3   : > { %2078 = vmatpush1.bf16.msra.mxu0 %v3110_v38  ;;  %2290 = vmatpush1.bf16.msra.mxu1 %v3113_v39  ;;  %v3209_v38 = vld [vmem:[%s3873_s5 + $0x428] ss:$16 sps:$4 sm:$0xff]   ;;  %v3214_v39 = vld [vmem:[%s3873_s5 + $0x444] ss:$16 sps:$4 sm:$0xff]  }
  0xd4   : > { %2079 = vmatprep.subr.bf16.mxu0 %v3118_v40  ;;  %2291 = vmatprep.subr.bf16.mxu1 %v3121_v41  ;;  %v3217_v40 = vld [vmem:[%s3873_s5 + $0x44c] ss:$16 sps:$4 sm:$0xff]   ;;  %v3212_v41 = vld [vmem:[%s3873_s5 + $0x440] ss:$16 sps:$4 sm:$0xff]  }
  0xd5   : > { %2105 = vmatprep.mubr.bf16.mxu0 %v3199_v54  ;;  %2317 = vmatprep.mubr.bf16.mxu1 %v3199_v54  ;;  %v3235_v54 = vld [vmem:[%s3873_s5 + $0x4ac] ss:$16 sps:$4 sm:$0xff]  }
  0xd7   : > { %2080 = vmatpush1.bf16.msra.mxu0 %v3116_v42  ;;  %2292 = vmatpush1.bf16.msra.mxu1 %v3119_v43  ;;  %v3215_v42 = vld [vmem:[%s3873_s5 + $0x448] ss:$16 sps:$4 sm:$0xff]   ;;  %v3292_v43 = vld [vmem:[%s4192_s1 + $0x40] ss:$28 sps:$4 sm:$0xff]  }
  0xd8   : > { %2081 = vmatprep.subr.bf16.mxu0 %v3124_v44  ;;  %2293 = vmatprep.subr.bf16.mxu1 %v3127_v45  ;;  %v3220_v44 = vld [vmem:[%s3873_s5 + $0x464] ss:$16 sps:$4 sm:$0xff]   ;;  %v3223_v45 = vld [vmem:[%s3873_s5 + $0x46c] ss:$16 sps:$4 sm:$0xff]  }
  0xdb   : > { %2082 = vmatpush1.bf16.msra.mxu0 %v3122_v46  ;;  %2294 = vmatpush1.bf16.msra.mxu1 %v3125_v47  ;;  %v3301_v46 = vld [vmem:[%s4192_s1 + $0x14] ss:$28 sps:$4 sm:$0xff]  }
  0xdc   : > { %2083 = vmatprep.subr.bf16.mxu0 %v3130_v48  ;;  %2295 = vmatprep.subr.bf16.mxu1 %v3133_v49  ;;  %v3218_v47 = vld [vmem:[%s3873_s5 + $0x460] ss:$16 sps:$4 sm:$0xff]   ;;  %v3221_v48 = vld [vmem:[%s3873_s5 + $0x468] ss:$16 sps:$4 sm:$0xff]   ;;  %v3226_v49 = vld [vmem:[%s3873_s5 + $0x484] ss:$16 sps:$4 sm:$0xff]  }
  0xdf   : > { %2084 = vmatpush1.bf16.msra.mxu0 %v3128_v50  ;;  %2296 = vmatpush1.bf16.msra.mxu1 %v3131_v51  ;;  %v3229_v50 = vld [vmem:[%s3873_s5 + $0x48c] ss:$16 sps:$4 sm:$0xff]   ;;  %v3224_v51 = vld [vmem:[%s3873_s5 + $0x480] ss:$16 sps:$4 sm:$0xff]  }
  0xe0   : > { %2085 = vmatprep.subr.bf16.mxu0 %v3136_v52  ;;  %2297 = vmatprep.subr.bf16.mxu1 %v3139_v53  ;;  %v3227_v52 = vld [vmem:[%s3873_s5 + $0x488] ss:$16 sps:$4 sm:$0xff]   ;;  %v3232_v53 = vld [vmem:[%s3873_s5 + $0x4a4] ss:$16 sps:$4 sm:$0xff]  }
  0xe3   : > { %2086 = vmatpush1.bf16.msra.mxu0 %v3134_v55  ;;  %2298 = vmatpush1.bf16.msra.mxu1 %v3137_v56  ;;  %v3230_v55 = vld [vmem:[%s3873_s5 + $0x4a0] ss:$16 sps:$4 sm:$0xff]   ;;  %v3233_v56 = vld [vmem:[%s3873_s5 + $0x4a8] ss:$16 sps:$4 sm:$0xff]  }
  0xe4   : > { %2087 = vmatprep.subr.bf16.mxu0 %v3142_v57  ;;  %2299 = vmatprep.subr.bf16.mxu1 %v3145_v58  ;;  %v3238_v57 = vld [vmem:[%s3873_s5 + $0x4c4] ss:$16 sps:$4 sm:$0xff]   ;;  %v3241_v58 = vld [vmem:[%s3873_s5 + $0x4cc] ss:$16 sps:$4 sm:$0xff]  }
  0xe7   : > { %2088 = vmatpush1.bf16.msra.mxu0 %v3140_v59  ;;  %2300 = vmatpush1.bf16.msra.mxu1 %v3143_v60  ;;  %v3236_v59 = vld [vmem:[%s3873_s5 + $0x4c0] ss:$16 sps:$4 sm:$0xff]   ;;  %v3239_v60 = vld [vmem:[%s3873_s5 + $0x4c8] ss:$16 sps:$4 sm:$0xff]  }
  0xe8   : > { %2089 = vmatprep.subr.bf16.mxu0 %v3148_v61  ;;  %2301 = vmatprep.subr.bf16.mxu1 %v3151_v62  ;;  %v3244_v61 = vld [vmem:[%s3873_s5 + $0x4e4] ss:$16 sps:$4 sm:$0xff]   ;;  %v3247_v62 = vld [vmem:[%s3873_s5 + $0x4ec] ss:$16 sps:$4 sm:$0xff]  }
  0xeb   : > { %2090 = vmatpush1.bf16.msra.mxu0 %v3146_v63  ;;  %2302 = vmatpush1.bf16.msra.mxu1 %v3149_v0  ;;  %v3242_v63 = vld [vmem:[%s3873_s5 + $0x4e0] ss:$16 sps:$4 sm:$0xff]   ;;  %v3245_v0 = vld [vmem:[%s3873_s5 + $0x4e8] ss:$16 sps:$4 sm:$0xff]  }
  0xec   : > { %2091 = vmatprep.subr.bf16.mxu0 %v3154_v1  ;;  %2303 = vmatprep.subr.bf16.mxu1 %v3157_v2  ;;  %v3250_v1 = vld [vmem:[%s3873_s5 + $0x504] ss:$16 sps:$4 sm:$0xff]   ;;  %v3253_v2 = vld [vmem:[%s3873_s5 + $0x50c] ss:$16 sps:$4 sm:$0xff]  }
  0xef   : > { %2092 = vmatpush1.bf16.msra.mxu0 %v3152_v3  ;;  %2304 = vmatpush1.bf16.msra.mxu1 %v3155_v4  ;;  %v3248_v3 = vld [vmem:[%s3873_s5 + $0x500] ss:$16 sps:$4 sm:$0xff]   ;;  %v3251_v4 = vld [vmem:[%s3873_s5 + $0x508] ss:$16 sps:$4 sm:$0xff]  }
  0xf0   : > { %2093 = vmatprep.subr.bf16.mxu0 %v3160_v5  ;;  %2305 = vmatprep.subr.bf16.mxu1 %v3163_v6  ;;  %v3256_v5 = vld [vmem:[%s3873_s5 + $0x524] ss:$16 sps:$4 sm:$0xff]   ;;  %v3259_v6 = vld [vmem:[%s3873_s5 + $0x52c] ss:$16 sps:$4 sm:$0xff]  }
  0xf3   : > { %2094 = vmatpush1.bf16.msra.mxu0 %v3158_v7  ;;  %2306 = vmatpush1.bf16.msra.mxu1 %v3161_v8  ;;  %v3254_v7 = vld [vmem:[%s3873_s5 + $0x520] ss:$16 sps:$4 sm:$0xff]   ;;  %v3257_v8 = vld [vmem:[%s3873_s5 + $0x528] ss:$16 sps:$4 sm:$0xff]  }
  0xf4   : > { %2095 = vmatprep.subr.bf16.mxu0 %v3166_v9  ;;  %2307 = vmatprep.subr.bf16.mxu1 %v3169_v10  ;;  %v3262_v9 = vld [vmem:[%s3873_s5 + $0x544] ss:$16 sps:$4 sm:$0xff]   ;;  %v3265_v10 = vld [vmem:[%s3873_s5 + $0x54c] ss:$16 sps:$4 sm:$0xff]  }
  0xf7   : > { %2096 = vmatpush1.bf16.msra.mxu0 %v3164_v11  ;;  %2308 = vmatpush1.bf16.msra.mxu1 %v3167_v12  ;;  %v3260_v11 = vld [vmem:[%s3873_s5 + $0x540] ss:$16 sps:$4 sm:$0xff]   ;;  %v3263_v12 = vld [vmem:[%s3873_s5 + $0x548] ss:$16 sps:$4 sm:$0xff]  }
  0xf8   : > { %2097 = vmatprep.subr.bf16.mxu0 %v3172_v13  ;;  %2309 = vmatprep.subr.bf16.mxu1 %v3175_v14  ;;  %v3268_v13 = vld [vmem:[%s3873_s5 + $0x564] ss:$16 sps:$4 sm:$0xff]   ;;  %v3271_v14 = vld [vmem:[%s3873_s5 + $0x56c] ss:$16 sps:$4 sm:$0xff]  }
  0xfb   : > { %2098 = vmatpush1.bf16.msra.mxu0 %v3170_v15  ;;  %2310 = vmatpush1.bf16.msra.mxu1 %v3173_v16  ;;  %v3266_v15 = vld [vmem:[%s3873_s5 + $0x560] ss:$16 sps:$4 sm:$0xff]   ;;  %v3269_v16 = vld [vmem:[%s3873_s5 + $0x568] ss:$16 sps:$4 sm:$0xff]  }
  0xfc   : > { %2099 = vmatprep.subr.bf16.mxu0 %v3178_v17  ;;  %2311 = vmatprep.subr.bf16.mxu1 %v3181_v18  ;;  %v3274_v17 = vld [vmem:[%s3873_s5 + $0x584] ss:$16 sps:$4 sm:$0xff]   ;;  %v3277_v18 = vld [vmem:[%s3873_s5 + $0x58c] ss:$16 sps:$4 sm:$0xff]  }
  0xff   : > { %2100 = vmatpush1.bf16.msra.mxu0 %v3176_v19  ;;  %2312 = vmatpush1.bf16.msra.mxu1 %v3179_v20  ;;  %v3272_v19 = vld [vmem:[%s3873_s5 + $0x580] ss:$16 sps:$4 sm:$0xff]   ;;  %v3275_v20 = vld [vmem:[%s3873_s5 + $0x588] ss:$16 sps:$4 sm:$0xff]  }
 0x100   : > { %2101 = vmatprep.subr.bf16.mxu0 %v3186_v21  ;;  %2313 = vmatprep.subr.bf16.mxu1 %v3189_v22  ;;  %v3280_v21 = vld [vmem:[%s3873_s5 + $0x5a4] ss:$16 sps:$4 sm:$0xff]   ;;  %v3283_v22 = vld [vmem:[%s3873_s5 + $0x5ac] ss:$16 sps:$4 sm:$0xff]  }
 0x103   : > { %2102 = vmatpush1.bf16.msra.mxu0 %v3184_v23  ;;  %2314 = vmatpush1.bf16.msra.mxu1 %v3187_v24  ;;  %v3278_v23 = vld [vmem:[%s3873_s5 + $0x5a0] ss:$16 sps:$4 sm:$0xff]   ;;  %v3281_v24 = vld [vmem:[%s3873_s5 + $0x5a8] ss:$16 sps:$4 sm:$0xff]  }
 0x104   : > { %2103 = vmatprep.subr.bf16.mxu0 %v3193_v25  ;;  %2315 = vmatprep.subr.bf16.mxu1 %v3196_v26  ;;  %v3288_v25 = vld [vmem:[%s3873_s5 + $0x5c4] ss:$16 sps:$4 sm:$0xff]   ;;  %v3291_v26 = vld [vmem:[%s3873_s5 + $0x5cc] ss:$16 sps:$4 sm:$0xff]  }
 0x107   : > { %2104 = vmatpush1.bf16.msra.mxu0 %v3191_v27  ;;  %2316 = vmatpush1.bf16.msra.mxu1 %v3194_v28  ;;  %v3286_v27 = vld [vmem:[%s3873_s5 + $0x5c0] ss:$16 sps:$4 sm:$0xff]   ;;  %v3289_v28 = vld [vmem:[%s3873_s5 + $0x5c8] ss:$16 sps:$4 sm:$0xff]  }
 0x108   : > { %2126 = vmatprep.subr.bf16.mxu0 %v3202_v29  ;;  %2338 = vmatprep.subr.bf16.mxu1 %v3205_v30  ;;  %v3295_v29 = vld [vmem:[%s3873_s5 + $0x5e4] ss:$16 sps:$4 sm:$0xff]   ;;  %v3298_v30 = vld [vmem:[%s3873_s5 + $0x5ec] ss:$16 sps:$4 sm:$0xff]  }
 0x10a   : > { %2106 = vmatmul.mubr.bf16.vlgmr.msra.gmra.mrb[0].mxu0 %v3197_v31  ;;  %2318 = vmatmul.mubr.bf16.vlgmr.msra.gmra.mrb[0].mxu1 %v3197_v31  ;;  %v3293_v31 = vld [vmem:[%s3873_s5 + $0x5e0] ss:$16 sps:$4 sm:$0xff]  }
 0x10b   : > { %2127 = vmatpush1.bf16.msra.mxu0 %v3200_v32  ;;  %2339 = vmatpush1.bf16.msra.mxu1 %v3203_v33  ;;  %v3296_v32 = vld [vmem:[%s3873_s5 + $0x5e8] ss:$16 sps:$4 sm:$0xff]   ;;  %v3304_v33 = vld [vmem:[%s3873_s5 + $0x604] ss:$16 sps:$4 sm:$0xff]  }
 0x10c   : > { %2128 = vmatprep.subr.bf16.mxu0 %v3208_v34  ;;  %2340 = vmatprep.subr.bf16.mxu1 %v3211_v35  ;;  %v3307_v34 = vld [vmem:[%s3873_s5 + $0x60c] ss:$16 sps:$4 sm:$0xff]  }
 0x10d   : > { %2115 = vmatprep.mubr.bf16.mxu0 %v3284_v36  ;;  %2327 = vmatprep.mubr.bf16.mxu1 %v3284_v36  ;;  %v3299_v35 = vld [vmem:[%s4192_s1 + $0x10] ss:$28 sps:$4 sm:$0xff]  }
 0x10e   : > { %v3302_v36 = vld [vmem:[%s3873_s5 + $0x600] ss:$16 sps:$4 sm:$0xff]  }
 0x10f   : > { %2129 = vmatpush1.bf16.msra.mxu0 %v3206_v37  ;;  %2341 = vmatpush1.bf16.msra.mxu1 %v3209_v38  ;;  %v3305_v37 = vld [vmem:[%s3873_s5 + $0x608] ss:$16 sps:$4 sm:$0xff]   ;;  %v3310_v38 = vld [vmem:[%s3873_s5 + $0x624] ss:$16 sps:$4 sm:$0xff]  }
 0x110   : > { %2130 = vmatprep.subr.bf16.mxu0 %v3214_v39  ;;  %2342 = vmatprep.subr.bf16.mxu1 %v3217_v40  ;;  %v3313_v39 = vld [vmem:[%s3873_s5 + $0x62c] ss:$16 sps:$4 sm:$0xff]  }
 0x111   : > { %v3326_v40 = vld [vmem:[%s4192_s1 + $0x4c] ss:$28 sps:$4 sm:$0xff]  }
 0x112   : > { %2116 = vmatmul.mubr.bf16.gmra.mrb[4].mxu0 %v3292_v43  ;;  %2328 = vmatmul.mubr.bf16.gmra.mrb[4].mxu1 %v3292_v43  ;;  %v3316_v43 = vld [vmem:[%s3873_s5 + $0x644] ss:$16 sps:$4 sm:$0xff]  }
 0x113   : > { %2131 = vmatpush1.bf16.msra.mxu0 %v3212_v41  ;;  %2343 = vmatpush1.bf16.msra.mxu1 %v3215_v42  ;;  %v3308_v41 = vld [vmem:[%s3873_s5 + $0x620] ss:$16 sps:$4 sm:$0xff]   ;;  %v3311_v42 = vld [vmem:[%s3873_s5 + $0x628] ss:$16 sps:$4 sm:$0xff]  }
 0x114   : > { %2132 = vmatprep.subr.bf16.mxu0 %v3220_v44  ;;  %2344 = vmatprep.subr.bf16.mxu1 %v3223_v45  ;;  %v3319_v44 = vld [vmem:[%s3873_s5 + $0x64c] ss:$16 sps:$4 sm:$0xff]   ;;  %v3328_v45 = vld [vmem:[%s4192_s1 + $0x48] ss:$28 sps:$4 sm:$0xff]  }
 0x115   : > { %2158 = vmatprep.mubr.bf16.mxu0 %v3301_v46  ;;  %2370 = vmatprep.mubr.bf16.mxu1 %v3301_v46  ;;  %v3314_v46 = vld [vmem:[%s3873_s5 + $0x640] ss:$16 sps:$4 sm:$0xff]  }
 0x117   : > { %2133 = vmatpush1.bf16.msra.mxu0 %v3218_v47  ;;  %2345 = vmatpush1.bf16.msra.mxu1 %v3221_v48  ;;  %v3317_v47 = vld [vmem:[%s3873_s5 + $0x648] ss:$16 sps:$4 sm:$0xff]   ;;  %v3322_v48 = vld [vmem:[%s3873_s5 + $0x664] ss:$16 sps:$4 sm:$0xff]  }
 0x118   : > { %2134 = vmatprep.subr.bf16.mxu0 %v3226_v49  ;;  %2346 = vmatprep.subr.bf16.mxu1 %v3229_v50  ;;  %v3325_v49 = vld [vmem:[%s3873_s5 + $0x66c] ss:$16 sps:$4 sm:$0xff]   ;;  %v3320_v50 = vld [vmem:[%s3873_s5 + $0x660] ss:$16 sps:$4 sm:$0xff]  }
 0x11b   : > { %2135 = vmatpush1.bf16.msra.mxu0 %v3224_v51  ;;  %2347 = vmatpush1.bf16.msra.mxu1 %v3227_v52  ;;  %v3323_v51 = vld [vmem:[%s3873_s5 + $0x668] ss:$16 sps:$4 sm:$0xff]   ;;  %v3331_v52 = vld [vmem:[%s3873_s5 + $0x684] ss:$16 sps:$4 sm:$0xff]  }
 0x11c   : > { %2136 = vmatprep.subr.bf16.mxu0 %v3232_v53  ;;  %2348 = vmatprep.subr.bf16.mxu1 %v3235_v54  ;;  %v3334_v53 = vld [vmem:[%s3873_s5 + $0x68c] ss:$16 sps:$4 sm:$0xff]   ;;  %v3367_v54 = vmov 0  }
 0x11f   : > { %2137 = vmatpush1.bf16.msra.mxu0 %v3230_v55  ;;  %2349 = vmatpush1.bf16.msra.mxu1 %v3233_v56  ;;  %v3329_v55 = vld [vmem:[%s3873_s5 + $0x680] ss:$16 sps:$4 sm:$0xff]   ;;  %v3332_v56 = vld [vmem:[%s3873_s5 + $0x688] ss:$16 sps:$4 sm:$0xff]  }
 0x120   : > { %2138 = vmatprep.subr.bf16.mxu0 %v3238_v57  ;;  %2350 = vmatprep.subr.bf16.mxu1 %v3241_v58  ;;  %v3337_v57 = vld [vmem:[%s3873_s5 + $0x6a4] ss:$16 sps:$4 sm:$0xff]   ;;  %v3340_v58 = vld [vmem:[%s3873_s5 + $0x6ac] ss:$16 sps:$4 sm:$0xff]  }
 0x123   : > { %2139 = vmatpush1.bf16.msra.mxu0 %v3236_v59  ;;  %2351 = vmatpush1.bf16.msra.mxu1 %v3239_v60  ;;  %v3335_v59 = vld [vmem:[%s3873_s5 + $0x6a0] ss:$16 sps:$4 sm:$0xff]   ;;  %v3338_v60 = vld [vmem:[%s3873_s5 + $0x6a8] ss:$16 sps:$4 sm:$0xff]   ;;  %s2679_s5 = sshll.u32 %s596_s28, 7  ;;  %s2922_s28 = sshll.u32 %s626_s12, 5 }
 0x124   : > { %2140 = vmatprep.subr.bf16.mxu0 %v3244_v61  ;;  %2352 = vmatprep.subr.bf16.mxu1 %v3247_v62  ;;  %v3341_v61 = vld [vmem:[%s4192_s1 + $0x18] ss:$28 sps:$4 sm:$0xff]   ;;  %v3342_v62 = vld [vmem:[%s4192_s1 + $0x50] ss:$28 sps:$4 sm:$0xff]   ;;  %s4132_s17 = scalar_lea.vmem [#allocation3], %s2679_s5  ;;  %s629_s22 = scalar_lea.vmem %s4194_s3, %s2922_s28 }
 0x127   : > { %2141 = vmatpush1.bf16.msra.mxu0 %v3242_v63  ;;  %2353 = vmatpush1.bf16.msra.mxu1 %v3245_v0 }
 0x128   : > { %2142 = vmatprep.subr.bf16.mxu0 %v3250_v1  ;;  %2354 = vmatprep.subr.bf16.mxu1 %v3253_v2 }
 0x12b   : > { %2143 = vmatpush1.bf16.msra.mxu0 %v3248_v3  ;;  %2355 = vmatpush1.bf16.msra.mxu1 %v3251_v4 }
 0x12c   : > { %2144 = vmatprep.subr.bf16.mxu0 %v3256_v5  ;;  %2356 = vmatprep.subr.bf16.mxu1 %v3259_v6 }
 0x12f   : > { %2145 = vmatpush1.bf16.msra.mxu0 %v3254_v7  ;;  %2357 = vmatpush1.bf16.msra.mxu1 %v3257_v8 }
 0x130   : > { %2146 = vmatprep.subr.bf16.mxu0 %v3262_v9  ;;  %2358 = vmatprep.subr.bf16.mxu1 %v3265_v10 }
 0x133   : > { %2147 = vmatpush1.bf16.msra.mxu0 %v3260_v11  ;;  %2359 = vmatpush1.bf16.msra.mxu1 %v3263_v12 }
 0x134   : > { %2148 = vmatprep.subr.bf16.mxu0 %v3268_v13  ;;  %2360 = vmatprep.subr.bf16.mxu1 %v3271_v14 }
 0x137   : > { %2149 = vmatpush1.bf16.msra.mxu0 %v3266_v15  ;;  %2361 = vmatpush1.bf16.msra.mxu1 %v3269_v16 }
 0x138   : > { %2150 = vmatprep.subr.bf16.mxu0 %v3274_v17  ;;  %2362 = vmatprep.subr.bf16.mxu1 %v3277_v18 }
 0x13b   : > { %2151 = vmatpush1.bf16.msra.mxu0 %v3272_v19  ;;  %2363 = vmatpush1.bf16.msra.mxu1 %v3275_v20 }
 0x13c   : > { %2152 = vmatprep.subr.bf16.mxu0 %v3280_v21  ;;  %2364 = vmatprep.subr.bf16.mxu1 %v3283_v22 }
 0x13f   : > { %2153 = vmatpush1.bf16.msra.mxu0 %v3278_v23  ;;  %2365 = vmatpush1.bf16.msra.mxu1 %v3281_v24 }
 0x140   : > { %2154 = vmatprep.subr.bf16.mxu0 %v3288_v25  ;;  %2366 = vmatprep.subr.bf16.mxu1 %v3291_v26 }
 0x143   : > { %2155 = vmatpush1.bf16.msra.mxu0 %v3286_v27  ;;  %2367 = vmatpush1.bf16.msra.mxu1 %v3289_v28 }
 0x144   : > { %2156 = vmatprep.subr.bf16.mxu0 %v3295_v29  ;;  %2368 = vmatprep.subr.bf16.mxu1 %v3298_v30 }
 0x147   : > { %2157 = vmatpush1.bf16.msra.mxu0 %v3293_v31  ;;  %2369 = vmatpush1.bf16.msra.mxu1 %v3296_v32 }
 0x148   : > { %2179 = vmatprep.subr.bf16.mxu0 %v3304_v33  ;;  %2391 = vmatprep.subr.bf16.mxu1 %v3307_v34 }
 0x14a   : > { %2159 = vmatmul.mubr.bf16.vlgmr.msra.gmra.mrb[0].mxu0 %v3299_v35  ;;  %2371 = vmatmul.mubr.bf16.vlgmr.msra.gmra.mrb[0].mxu1 %v3299_v35 }
 0x14b   : > { %2180 = vmatpush1.bf16.msra.mxu0 %v3302_v36  ;;  %2392 = vmatpush1.bf16.msra.mxu1 %v3305_v37 }
 0x14c   : > { %2181 = vmatprep.subr.bf16.mxu0 %v3310_v38  ;;  %2393 = vmatprep.subr.bf16.mxu1 %v3313_v39 }
 0x14d   : > { %2168 = vmatprep.mubr.bf16.mxu0 %v3326_v40  ;;  %2380 = vmatprep.mubr.bf16.mxu1 %v3326_v40 }
 0x14f   : > { %2182 = vmatpush1.bf16.msra.mxu0 %v3308_v41  ;;  %2394 = vmatpush1.bf16.msra.mxu1 %v3311_v42 }
 0x150   : > { %2183 = vmatprep.subr.bf16.mxu0 %v3316_v43  ;;  %2395 = vmatprep.subr.bf16.mxu1 %v3319_v44 }
 0x152   : > { %2169 = vmatmul.mubr.bf16.gmra.mrb[4].mxu0 %v3328_v45  ;;  %2381 = vmatmul.mubr.bf16.gmra.mrb[4].mxu1 %v3328_v45 }
 0x153   : > { %2184 = vmatpush1.bf16.msra.mxu0 %v3314_v46  ;;  %2396 = vmatpush1.bf16.msra.mxu1 %v3317_v47 }
 0x154   : > { %2185 = vmatprep.subr.bf16.mxu0 %v3322_v48  ;;  %2397 = vmatprep.subr.bf16.mxu1 %v3325_v49 }
 0x155   : > { %2211 = vmatprep.mubr.bf16.mxu0 %v3367_v54  ;;  %2423 = vmatprep.mubr.bf16.mxu1 %v3367_v54 }
 0x157   : > { %2186 = vmatpush1.bf16.msra.mxu0 %v3320_v50  ;;  %2398 = vmatpush1.bf16.msra.mxu1 %v3323_v51 }
 0x158   : > { %2187 = vmatprep.subr.bf16.mxu0 %v3331_v52  ;;  %2399 = vmatprep.subr.bf16.mxu1 %v3334_v53 }
 0x15b   : > { %2188 = vmatpush1.bf16.msra.mxu0 %v3329_v55  ;;  %2400 = vmatpush1.bf16.msra.mxu1 %v3332_v56 }
 0x15c   : > { %2189 = vmatprep.subr.bf16.mxu0 %v3337_v57  ;;  %2401 = vmatprep.subr.bf16.mxu1 %v3340_v58 }
 0x15f   : > { %2190 = vmatpush1.bf16.msra.mxu0 %v3335_v59  ;;  %2402 = vmatpush1.bf16.msra.mxu1 %v3338_v60 }
 0x162   : > { %2912 = vmatmul.mubr.msk.bf16.vlgmr.msra.gmra.mrb[0].mxu0 %vm2013_vm0, %v3341_v61  ;;  %2914 = vmatmul.mubr.msk.bf16.vlgmr.msra.gmra.mrb[0].mxu1 %vm2013_vm0, %v3341_v61 }
 0x163   : > { %2221 = vmatprep.mubr.bf16.mxu0 %v3367_v54  ;;  %2433 = vmatprep.mubr.bf16.mxu1 %v3367_v54 }
 0x16a   : > { %2913 = vmatmul.mubr.msk.bf16.gmra.mrb[4].mxu0 %vm2013_vm0, %v3342_v62  ;;  %2915 = vmatmul.mubr.msk.bf16.gmra.mrb[4].mxu1 %vm2013_vm0, %v3342_v62 }
 0x235   : > { %v2213_v63 = vpop.f32.mrb[0].mxu0  ;;  %v2425_v0 = vpop.f32.mrb[0].mxu1 }
 0x236   : > { %2444 = vst [vmem:[%s4132_s17] sm:$0xff] %v2213_v63  ;;  %v2480_v1 = vmul.f32 %v2213_v63, %v2213_v63  ;;  %2446 = vst [vmem:[%s4132_s17 + $0x10] sm:$0xff] %v2425_v0  ;;  %v2215_v2 = vpop.f32.mrb[1].mxu0  ;;  %v2427_v3 = vpop.f32.mrb[1].mxu1  ;;  %v2482_v14 = vmul.f32 %v2425_v0, %v2425_v0 }
 0x237   : > { %2445 = vst [vmem:[%s4132_s17 + $0x8] sm:$0xff] %v2215_v2  ;;  %v2460_v4 = vadd.f32 %v2215_v2, %v2213_v63  ;;  %v2481_v5 = vmul.f32 %v2215_v2, %v2215_v2  ;;  %2447 = vst [vmem:[%s4132_s17 + $0x18] sm:$0xff] %v2427_v3  ;;  %v2217_v6 = vpop.f32.mrb[2].mxu0  ;;  %v2429_v7 = vpop.f32.mrb[2].mxu1  ;;  %v2483_v20 = vmul.f32 %v2427_v3, %v2427_v3 }
 0x238   : > { %2448 = vst [vmem:[%s4132_s17 + $0x20] sm:$0xff] %v2217_v6  ;;  %v2484_v8 = vmul.f32 %v2217_v6, %v2217_v6  ;;  %2450 = vst [vmem:[%s4132_s17 + $0x30] sm:$0xff] %v2429_v7  ;;  %v2219_v9 = vpop.f32.mrb[3].mxu0  ;;  %v2431_v10 = vpop.f32.mrb[3].mxu1  ;;  %v2486_v16 = vmul.f32 %v2429_v7, %v2429_v7 }
 0x239   : > { %2449 = vst [vmem:[%s4132_s17 + $0x28] sm:$0xff] %v2219_v9  ;;  %v2465_v11 = vadd.f32 %v2219_v9, %v2217_v6  ;;  %v2485_v12 = vmul.f32 %v2219_v9, %v2219_v9  ;;  %2451 = vst [vmem:[%s4132_s17 + $0x38] sm:$0xff] %v2431_v10  ;;  %v2461_v13 = vadd.f32 %v2460_v4, %v2425_v0 }
 0x23a   : > { %v2496_v15 = vadd.f32 %v2481_v5, %v2480_v1  ;;  %v2487_v24 = vmul.f32 %v2431_v10, %v2431_v10 }
 0x23b   : > { %v2462_v17 = vadd.f32 %v2461_v13, %v2427_v3  ;;  %v2501_v18 = vadd.f32 %v2485_v12, %v2484_v8  ;;  %v2466_v19 = vadd.f32 %v2465_v11, %v2429_v7 }
 0x23c   : > { %v2497_v21 = vadd.f32 %v2496_v15, %v2482_v14 }
 0x23d   : > { %v2435_v22 = vpop.f32.mrb[4].mxu1  ;;  %2463 = vadd.xlane.f32.xlu0 %v2462_v17  ;;  %v2223_v23 = vpop.f32.mrb[4].mxu0  ;;  %v2502_v25 = vadd.f32 %v2501_v18, %v2486_v16  ;;  %v2467_v26 = vadd.f32 %v2466_v19, %v2431_v10  ;;  %v2553_v3 = vld [vmem:[%s4132_s17] sm:$0xff] (%p3419_p5)  ;;  %v2557_v5 = vld [vmem:[%s4132_s17 + $0x10] sm:$0xff] (%p3419_p5) }
 0x23e   : > { %2454 = vst [vmem:[%s4132_s17 + $0x50] sm:$0xff] %v2435_v22  ;;  %2452 = vst [vmem:[%s4132_s17 + $0x40] sm:$0xff] %v2223_v23  ;;  %v2488_v27 = vmul.f32 %v2223_v23, %v2223_v23  ;;  %v2225_v28 = vpop.f32.mrb[5].mxu0  ;;  %v2437_v29 = vpop.f32.mrb[5].mxu1  ;;  %v2498_v30 = vadd.f32 %v2497_v21, %v2483_v20  ;;  %v2490_v41 = vmul.f32 %v2435_v22, %v2435_v22  ;;  %v2555_v4 = vld [vmem:[%s4132_s17 + $0x8] sm:$0xff] (%p3419_p5)  ;;  %v2559_v6 = vld [vmem:[%s4132_s17 + $0x18] sm:$0xff] (%p3419_p5) }
 0x23f   : > { %2453 = vst [vmem:[%s4132_s17 + $0x48] sm:$0xff] %v2225_v28  ;;  %v2470_v31 = vadd.f32 %v2225_v28, %v2223_v23  ;;  %v2489_v32 = vmul.f32 %v2225_v28, %v2225_v28  ;;  %2455 = vst [vmem:[%s4132_s17 + $0x58] sm:$0xff] %v2437_v29  ;;  %v2227_v33 = vpop.f32.mrb[6].mxu0  ;;  %v2439_v34 = vpop.f32.mrb[6].mxu1  ;;  %v2503_v35 = vadd.f32 %v2502_v25, %v2487_v24  ;;  %v2561_v7 = vld [vmem:[%s4132_s17 + $0x20] sm:$0xff] (%p3419_p5)  ;;  %v2565_v9 = vld [vmem:[%s4132_s17 + $0x30] sm:$0xff] (%p3419_p5) }
 0x240   : > { %2456 = vst [vmem:[%s4132_s17 + $0x60] sm:$0xff] %v2227_v33  ;;  %v2492_v36 = vmul.f32 %v2227_v33, %v2227_v33  ;;  %2458 = vst [vmem:[%s4132_s17 + $0x70] sm:$0xff] %v2439_v34  ;;  %v2229_v37 = vpop.f32.mrb[7].mxu0  ;;  %v2441_v38 = vpop.f32.mrb[7].mxu1  ;;  %v2494_v44 = vmul.f32 %v2439_v34, %v2439_v34  ;;  %v2491_v48 = vmul.f32 %v2437_v29, %v2437_v29  ;;  %v2563_v8 = vld [vmem:[%s4132_s17 + $0x28] sm:$0xff] (%p3419_p5)  ;;  %v2567_v10 = vld [vmem:[%s4132_s17 + $0x38] sm:$0xff] (%p3419_p5) }
 0x241   : > { %2457 = vst [vmem:[%s4132_s17 + $0x68] sm:$0xff] %v2229_v37  ;;  %v2475_v39 = vadd.f32 %v2229_v37, %v2227_v33  ;;  %v2493_v40 = vmul.f32 %v2229_v37, %v2229_v37  ;;  %2459 = vst [vmem:[%s4132_s17 + $0x78] sm:$0xff] %v2441_v38  ;;  %2504 = vadd.xlane.f32.xlu1 %v2503_v35  ;;  %2468 = vadd.xlane.f32.xlu0 %v2467_v26 }
 0x242   : > { %v2471_v42 = vadd.f32 %v2470_v31, %v2435_v22  ;;  %v2506_v43 = vadd.f32 %v2489_v32, %v2488_v27  ;;  %v2495_v50 = vmul.f32 %v2441_v38, %v2441_v38  ;;  %2554 = vst [vmem:[%s2540_s26] sm:$0xff] (%p3419_p5), %v2553_v3  ;;  %2556 = vst [vmem:[%s2540_s26 + $0x8] sm:$0xff] (%p3419_p5), %v2555_v4 }
 0x243   : > { %v2511_v45 = vadd.f32 %v2493_v40, %v2492_v36  ;;  %v2476_v46 = vadd.f32 %v2475_v39, %v2439_v34  ;;  %2558 = vst [vmem:[%s2540_s26 + $0x10] sm:$0xff] (%p3419_p5), %v2557_v5  ;;  %2560 = vst [vmem:[%s2540_s26 + $0x18] sm:$0xff] (%p3419_p5), %v2559_v6 }
 0x244   : > { %v2472_v47 = vadd.f32 %v2471_v42, %v2437_v29  ;;  %v2507_v49 = vadd.f32 %v2506_v43, %v2490_v41  ;;  %2562 = vst [vmem:[%s2540_s26 + $0x40] sm:$0xff] (%p3419_p5), %v2561_v7  ;;  %2564 = vst [vmem:[%s2540_s26 + $0x48] sm:$0xff] (%p3419_p5), %v2563_v8 }
 0x245   : > { %2499 = vadd.xlane.f32.xlu0 %v2498_v30  ;;  %v2477_v51 = vadd.f32 %v2476_v46, %v2441_v38  ;;  %v2512_v52 = vadd.f32 %v2511_v45, %v2494_v44  ;;  %v2569_v11 = vld [vmem:[%s4132_s17 + $0x40] sm:$0xff] (%p3419_p5)  ;;  %2566 = vst [vmem:[%s2540_s26 + $0x50] sm:$0xff] (%p3419_p5), %v2565_v9  ;;  %2568 = vst [vmem:[%s2540_s26 + $0x58] sm:$0xff] (%p3419_p5), %v2567_v10  ;;  %v2573_v13 = vld [vmem:[%s4132_s17 + $0x50] sm:$0xff] (%p3419_p5) }
 0x246   : > { %2473 = vadd.xlane.f32.xlu1 %v2472_v47  ;;  %v2508_v53 = vadd.f32 %v2507_v49, %v2491_v48  ;;  %2570 = vst [vmem:[%s2540_s26 + $0x80] sm:$0xff] (%p3419_p5), %v2569_v11  ;;  %v2571_v12 = vld [vmem:[%s4132_s17 + $0x48] sm:$0xff] (%p3419_p5)  ;;  %v2575_v14 = vld [vmem:[%s4132_s17 + $0x58] sm:$0xff] (%p3419_p5)  ;;  %2574 = vst [vmem:[%s2540_s26 + $0x90] sm:$0xff] (%p3419_p5), %v2573_v13 }
 0x247   : > { %v2513_v54 = vadd.f32 %v2512_v52, %v2495_v50  ;;  %2572 = vst [vmem:[%s2540_s26 + $0x88] sm:$0xff] (%p3419_p5), %v2571_v12  ;;  %2576 = vst [vmem:[%s2540_s26 + $0x98] sm:$0xff] (%p3419_p5), %v2575_v14  ;;  %v2577_v15 = vld [vmem:[%s4132_s17 + $0x60] sm:$0xff] (%p3419_p5)  ;;  %v2581_v17 = vld [vmem:[%s4132_s17 + $0x70] sm:$0xff] (%p3419_p5) }
 0x248   : > { %v2579_v16 = vld [vmem:[%s4132_s17 + $0x68] sm:$0xff] (%p3419_p5)  ;;  %2578 = vst [vmem:[%s2540_s26 + $0xc0] sm:$0xff] (%p3419_p5), %v2577_v15  ;;  %2582 = vst [vmem:[%s2540_s26 + $0xd0] sm:$0xff] (%p3419_p5), %v2581_v17  ;;  %v2583_v18 = vld [vmem:[%s4132_s17 + $0x78] sm:$0xff] (%p3419_p5) }
 0x249   : > { %2509 = vadd.xlane.f32.xlu0 %v2508_v53  ;;  %2580 = vst [vmem:[%s2540_s26 + $0xc8] sm:$0xff] (%p3419_p5), %v2579_v16  ;;  %2584 = vst [vmem:[%s2540_s26 + $0xd8] sm:$0xff] (%p3419_p5), %v2583_v18 }
 0x24a   : > { %2478 = vadd.xlane.f32.xlu1 %v2477_v51 }
 0x24e   : > { %2514 = vadd.xlane.f32.xlu1 %v2513_v54 }
 0x2ca   : > { %v2464_v55 = vpop.xlane.xlu0 %2463 }
 0x2ce   : > { %v2505_v56 = vpop.xlane.xlu1 %2504  ;;  %v2469_v57 = vpop.xlane.xlu0 %2468 }
 0x2cf   : > { %v2518_v58 = vsel %vm2516_vm1, %v2469_v57, %v2505_v56 }
 0x2d0   : > { %2523 = vst.msk [vmem:[%s629_s22 + $0x8] sm:$0xff] %vm2521_vm2, %v2518_v58 }
 0x2d2   : > { %v2500_v59 = vpop.xlane.xlu0 %2499 }
 0x2d3   : > { %v2517_v60 = vsel %vm2516_vm1, %v2464_v55, %v2500_v59  ;;  %v2474_v61 = vpop.xlane.xlu1 %2473 }
 0x2d4   : > { %2522 = vst.msk [vmem:[%s629_s22] sm:$0xff] %vm2521_vm2, %v2517_v60 }
 0x2d6   : > { %v2510_v62 = vpop.xlane.xlu0 %2509 }
 0x2d7   : > { %v2519_v63 = vsel %vm2516_vm1, %v2474_v61, %v2510_v62  ;;  %v2479_v0 = vpop.xlane.xlu1 %2478  ;;  %2537 = sbr.rel (!%p3419_p5) target bundleno = 734 (0x2de), region = 55 }
 0x2d8   : > { %2524 = vst.msk [vmem:[%s629_s22 + $0x10] sm:$0xff] %vm2521_vm2, %v2519_v63 }
 0x2db   : > { %v2515_v1 = vpop.xlane.xlu1 %2514 }
 0x2dc   : > { %v2520_v2 = vsel %vm2516_vm1, %v2479_v0, %v2515_v1 }
 0x2dd   : > { %2525 = vst.msk [vmem:[%s629_s22 + $0x18] sm:$0xff] %vm2521_vm2, %v2520_v2 }
 0x2de PF: > { %p11_p11 = scmp.ge.s32.totalorder %s3407_s16, 4   ;;  %s4196_s12 = smov %s3361_s13 }
 0x2df   : > { %s4197_s13 = smov %s3417_s19  ;;  %s4198_s14 = smov %s3407_s16 }
 0x2e0   :  { %13 = sbr.rel (!%p11_p11) target bundleno = 2 (0x2), region = 121 }

// kernel: forward.9
= control target key start
LH: loop header
LB: loop body
LE: loop exit
PB: predicated region body
PF: predicated region fallthrough
CT: control target
= control target key end

     0   :  { %s3163_s12 = smov 0   ;;  %s3165_s13 = smov 0   ;;  %s3925_s0 = inlined_call_operand.vmem [shape: bf16[864,1024], index: 0, kind: input, shape index: {}]   ;;  %s3926_s1 = inlined_call_operand.vmem [shape: bf16[16,864], index: 1, kind: input, shape index: {}]   ;;  %s3927_s2 = inlined_call_operand.vmem [shape: f32[16,1024], index: 2, kind: output, shape index: {0}]   ;;  %s3928_s3 = inlined_call_operand.vmem [shape: f32[2,16,2], index: 3, kind: output, shape index: {1}]  }
   0x1   :  { %s3167_s14 = smov 0  }
   0x2 LB: > { %s3179_s15 = sadd.s32 4294967295, %s3140_s14   ;;  %s3182_s16 = sadd.s32 1, %s3140_s14   ;;  %s3140_s14 = sphi %s3167_s14, %s3932_s14   ;;  %s3136_s13 = sphi %s3165_s13, %s3931_s13   ;;  %s3132_s12 = sphi %s3163_s12, %s3930_s12  }
   0x3   : > { %s18_s17 = ssub.s32 %s3140_s14, %s3182_s16  ;;  %s21_s18 = sadd.s32 1, %s3136_s13 }
   0x4   : > { %p19_p0 = scmp.eq.s32.totalorder %s18_s17, 0  ;;  %p28_p1 = scmp.ne.s32.totalorder %s3136_s13, %s3132_s12 }
   0x5   : > { %p29_p2 = scmp.eq.s32.totalorder %s3140_s14, 0  ;;  %p79_p3 = scmp.eq.s32.totalorder %s3179_s15, 1 }
   0x6   : > { %s3192_s19 = scalar_select %p19_p0, %s3136_s13, %s21_s18  }
   0x7   : > { %p30_p4 = por %p29_p2, %p28_p1  ;;  %p3194_p5 = por %p79_p3, %p28_p1 }
   0x8   : > { %p2493_p6 = scmp.ge.s32.totalorder %s3140_s14, 2 }
   0xa   : > { %130 = sbr.rel (%p2493_p6) target bundleno = 129 (0x81), region = 20 }
  0x11   : > { %133 = sbr.rel (!%p30_p4) target bundleno = 129 (0x81), region = 24  ;;  %s135_s21 = sand.u32 (%p30_p4), 1, %s3136_s13  }
  0x12   : > { %s2730_s22 = sshll.u32 (%p30_p4), %s3140_s14, 4  ;;  %s2757_s23 = smul.u32 (%p30_p4), 1728, %s135_s21 }
  0x13   : > { %s3204_s26 = scalar_lea.vmem (%p30_p4), %s3925_s0, %s2730_s22 }
  0x14   : > { %v153_v0 = vld [vmem:[%s3204_s26] sm:$0xff] (%p30_p4)  ;;  %v155_v1 = vld [vmem:[%s3204_s26 + $0x8] sm:$0xff] (%p30_p4)  ;;  %s3212_s27 = scalar_lea.vmem (%p30_p4), [#allocation2], %s2757_s23 }
  0x15   : > { %v157_v2 = vld [vmem:[%s3204_s26 + $0x20] sm:$0xff] (%p30_p4)  ;;  %v159_v3 = vld [vmem:[%s3204_s26 + $0x28] sm:$0xff] (%p30_p4)  ;;  %154 = vst [vmem:[%s3212_s27] sm:$0xff] (%p30_p4), %v153_v0  ;;  %156 = vst [vmem:[%s3212_s27 + $0x8] sm:$0xff] (%p30_p4), %v155_v1 }
  0x16   : > { %v161_v4 = vld [vmem:[%s3204_s26 + $0x40] sm:$0xff] (%p30_p4)  ;;  %v163_v5 = vld [vmem:[%s3204_s26 + $0x48] sm:$0xff] (%p30_p4)  ;;  %158 = vst [vmem:[%s3212_s27 + $0x10] sm:$0xff] (%p30_p4), %v157_v2  ;;  %160 = vst [vmem:[%s3212_s27 + $0x18] sm:$0xff] (%p30_p4), %v159_v3 }
  0x17   : > { %162 = vst [vmem:[%s3212_s27 + $0x20] sm:$0xff] (%p30_p4), %v161_v4  ;;  %164 = vst [vmem:[%s3212_s27 + $0x28] sm:$0xff] (%p30_p4), %v163_v5  ;;  %v165_v6 = vld [vmem:[%s3204_s26 + $0x60] sm:$0xff] (%p30_p4)  ;;  %v167_v7 = vld [vmem:[%s3204_s26 + $0x68] sm:$0xff] (%p30_p4) }
  0x18   : > { %v169_v8 = vld [vmem:[%s3204_s26 + $0x80] sm:$0xff]  ;;  %166 = vst [vmem:[%s3212_s27 + $0x30] sm:$0xff] %v165_v6  ;;  %168 = vst [vmem:[%s3212_s27 + $0x38] sm:$0xff] %v167_v7  ;;  %v171_v9 = vld [vmem:[%s3204_s26 + $0x88] sm:$0xff] }
  0x19   : > { %170 = vst [vmem:[%s3212_s27 + $0x40] sm:$0xff] %v169_v8  ;;  %v173_v10 = vld [vmem:[%s3204_s26 + $0xa0] sm:$0xff]  ;;  %v175_v11 = vld [vmem:[%s3204_s26 + $0xa8] sm:$0xff]  ;;  %172 = vst [vmem:[%s3212_s27 + $0x48] sm:$0xff] %v171_v9 }
  0x1a   : > { %174 = vst [vmem:[%s3212_s27 + $0x50] sm:$0xff] %v173_v10  ;;  %176 = vst [vmem:[%s3212_s27 + $0x58] sm:$0xff] %v175_v11  ;;  %v177_v12 = vld [vmem:[%s3204_s26 + $0xc0] sm:$0xff]  ;;  %v179_v13 = vld [vmem:[%s3204_s26 + $0xc8] sm:$0xff] }
  0x1b   : > { %v181_v14 = vld [vmem:[%s3204_s26 + $0xe0] sm:$0xff]  ;;  %178 = vst [vmem:[%s3212_s27 + $0x60] sm:$0xff] %v177_v12  ;;  %180 = vst [vmem:[%s3212_s27 + $0x68] sm:$0xff] %v179_v13  ;;  %v183_v15 = vld [vmem:[%s3204_s26 + $0xe8] sm:$0xff] }
  0x1c   : > { %182 = vst [vmem:[%s3212_s27 + $0x70] sm:$0xff] %v181_v14  ;;  %v185_v16 = vld [vmem:[%s3204_s26 + $0x100] sm:$0xff]  ;;  %v187_v17 = vld [vmem:[%s3204_s26 + $0x108] sm:$0xff]  ;;  %184 = vst [vmem:[%s3212_s27 + $0x78] sm:$0xff] %v183_v15 }
  0x1d   : > { %186 = vst [vmem:[%s3212_s27 + $0x80] sm:$0xff] %v185_v16  ;;  %188 = vst [vmem:[%s3212_s27 + $0x88] sm:$0xff] %v187_v17  ;;  %v189_v18 = vld [vmem:[%s3204_s26 + $0x120] sm:$0xff]  ;;  %v191_v19 = vld [vmem:[%s3204_s26 + $0x128] sm:$0xff] }
  0x1e   : > { %v193_v20 = vld [vmem:[%s3204_s26 + $0x140] sm:$0xff]  ;;  %190 = vst [vmem:[%s3212_s27 + $0x90] sm:$0xff] %v189_v18  ;;  %192 = vst [vmem:[%s3212_s27 + $0x98] sm:$0xff] %v191_v19  ;;  %v195_v21 = vld [vmem:[%s3204_s26 + $0x148] sm:$0xff] }
  0x1f   : > { %194 = vst [vmem:[%s3212_s27 + $0xa0] sm:$0xff] %v193_v20  ;;  %v197_v22 = vld [vmem:[%s3204_s26 + $0x160] sm:$0xff]  ;;  %v199_v23 = vld [vmem:[%s3204_s26 + $0x168] sm:$0xff]  ;;  %196 = vst [vmem:[%s3212_s27 + $0xa8] sm:$0xff] %v195_v21 }
  0x20   : > { %198 = vst [vmem:[%s3212_s27 + $0xb0] sm:$0xff] %v197_v22  ;;  %200 = vst [vmem:[%s3212_s27 + $0xb8] sm:$0xff] %v199_v23  ;;  %v201_v24 = vld [vmem:[%s3204_s26 + $0x180] sm:$0xff]  ;;  %v203_v25 = vld [vmem:[%s3204_s26 + $0x188] sm:$0xff] }
  0x21   : > { %v205_v26 = vld [vmem:[%s3204_s26 + $0x1a0] sm:$0xff]  ;;  %202 = vst [vmem:[%s3212_s27 + $0xc0] sm:$0xff] %v201_v24  ;;  %204 = vst [vmem:[%s3212_s27 + $0xc8] sm:$0xff] %v203_v25  ;;  %v207_v27 = vld [vmem:[%s3204_s26 + $0x1a8] sm:$0xff] }
  0x22   : > { %206 = vst [vmem:[%s3212_s27 + $0xd0] sm:$0xff] %v205_v26  ;;  %v209_v28 = vld [vmem:[%s3204_s26 + $0x1c0] sm:$0xff]  ;;  %v211_v29 = vld [vmem:[%s3204_s26 + $0x1c8] sm:$0xff]  ;;  %208 = vst [vmem:[%s3212_s27 + $0xd8] sm:$0xff] %v207_v27 }
  0x23   : > { %210 = vst [vmem:[%s3212_s27 + $0xe0] sm:$0xff] %v209_v28  ;;  %212 = vst [vmem:[%s3212_s27 + $0xe8] sm:$0xff] %v211_v29  ;;  %v213_v30 = vld [vmem:[%s3204_s26 + $0x1e0] sm:$0xff]  ;;  %v215_v31 = vld [vmem:[%s3204_s26 + $0x1e8] sm:$0xff] }
  0x24   : > { %v217_v32 = vld [vmem:[%s3204_s26 + $0x200] sm:$0xff]  ;;  %214 = vst [vmem:[%s3212_s27 + $0xf0] sm:$0xff] %v213_v30  ;;  %216 = vst [vmem:[%s3212_s27 + $0xf8] sm:$0xff] %v215_v31  ;;  %v219_v33 = vld [vmem:[%s3204_s26 + $0x208] sm:$0xff] }
  0x25   : > { %218 = vst [vmem:[%s3212_s27 + $0x100] sm:$0xff] %v217_v32  ;;  %v221_v34 = vld [vmem:[%s3204_s26 + $0x220] sm:$0xff]  ;;  %v223_v35 = vld [vmem:[%s3204_s26 + $0x228] sm:$0xff]  ;;  %220 = vst [vmem:[%s3212_s27 + $0x108] sm:$0xff] %v219_v33 }
  0x26   : > { %222 = vst [vmem:[%s3212_s27 + $0x110] sm:$0xff] %v221_v34  ;;  %224 = vst [vmem:[%s3212_s27 + $0x118] sm:$0xff] %v223_v35  ;;  %v225_v36 = vld [vmem:[%s3204_s26 + $0x240] sm:$0xff]  ;;  %v227_v37 = vld [vmem:[%s3204_s26 + $0x248] sm:$0xff] }
  0x27   : > { %v229_v38 = vld [vmem:[%s3204_s26 + $0x260] sm:$0xff]  ;;  %226 = vst [vmem:[%s3212_s27 + $0x120] sm:$0xff] %v225_v36  ;;  %228 = vst [vmem:[%s3212_s27 + $0x128] sm:$0xff] %v227_v37  ;;  %v231_v39 = vld [vmem:[%s3204_s26 + $0x268] sm:$0xff] }
  0x28   : > { %230 = vst [vmem:[%s3212_s27 + $0x130] sm:$0xff] %v229_v38  ;;  %v233_v40 = vld [vmem:[%s3204_s26 + $0x280] sm:$0xff]  ;;  %v235_v41 = vld [vmem:[%s3204_s26 + $0x288] sm:$0xff]  ;;  %232 = vst [vmem:[%s3212_s27 + $0x138] sm:$0xff] %v231_v39 }
  0x29   : > { %234 = vst [vmem:[%s3212_s27 + $0x140] sm:$0xff] %v233_v40  ;;  %236 = vst [vmem:[%s3212_s27 + $0x148] sm:$0xff] %v235_v41  ;;  %v237_v42 = vld [vmem:[%s3204_s26 + $0x2a0] sm:$0xff]  ;;  %v239_v43 = vld [vmem:[%s3204_s26 + $0x2a8] sm:$0xff] }
  0x2a   : > { %v241_v44 = vld [vmem:[%s3204_s26 + $0x2c0] sm:$0xff]  ;;  %238 = vst [vmem:[%s3212_s27 + $0x150] sm:$0xff] %v237_v42  ;;  %240 = vst [vmem:[%s3212_s27 + $0x158] sm:$0xff] %v239_v43  ;;  %v243_v45 = vld [vmem:[%s3204_s26 + $0x2c8] sm:$0xff] }
  0x2b   : > { %242 = vst [vmem:[%s3212_s27 + $0x160] sm:$0xff] %v241_v44  ;;  %v245_v46 = vld [vmem:[%s3204_s26 + $0x2e0] sm:$0xff]  ;;  %v247_v47 = vld [vmem:[%s3204_s26 + $0x2e8] sm:$0xff]  ;;  %244 = vst [vmem:[%s3212_s27 + $0x168] sm:$0xff] %v243_v45 }
  0x2c   : > { %246 = vst [vmem:[%s3212_s27 + $0x170] sm:$0xff] %v245_v46  ;;  %248 = vst [vmem:[%s3212_s27 + $0x178] sm:$0xff] %v247_v47  ;;  %v249_v48 = vld [vmem:[%s3204_s26 + $0x300] sm:$0xff]  ;;  %v251_v49 = vld [vmem:[%s3204_s26 + $0x308] sm:$0xff] }
  0x2d   : > { %v253_v50 = vld [vmem:[%s3204_s26 + $0x320] sm:$0xff]  ;;  %250 = vst [vmem:[%s3212_s27 + $0x180] sm:$0xff] %v249_v48  ;;  %252 = vst [vmem:[%s3212_s27 + $0x188] sm:$0xff] %v251_v49  ;;  %v255_v51 = vld [vmem:[%s3204_s26 + $0x328] sm:$0xff] }
  0x2e   : > { %254 = vst [vmem:[%s3212_s27 + $0x190] sm:$0xff] %v253_v50  ;;  %v257_v52 = vld [vmem:[%s3204_s26 + $0x340] sm:$0xff]  ;;  %v259_v53 = vld [vmem:[%s3204_s26 + $0x348] sm:$0xff]  ;;  %256 = vst [vmem:[%s3212_s27 + $0x198] sm:$0xff] %v255_v51 }
  0x2f   : > { %258 = vst [vmem:[%s3212_s27 + $0x1a0] sm:$0xff] %v257_v52  ;;  %260 = vst [vmem:[%s3212_s27 + $0x1a8] sm:$0xff] %v259_v53  ;;  %v261_v54 = vld [vmem:[%s3204_s26 + $0x360] sm:$0xff]  ;;  %v263_v55 = vld [vmem:[%s3204_s26 + $0x368] sm:$0xff] }
  0x30   : > { %v265_v56 = vld [vmem:[%s3204_s26 + $0x380] sm:$0xff]  ;;  %262 = vst [vmem:[%s3212_s27 + $0x1b0] sm:$0xff] %v261_v54  ;;  %264 = vst [vmem:[%s3212_s27 + $0x1b8] sm:$0xff] %v263_v55  ;;  %v267_v57 = vld [vmem:[%s3204_s26 + $0x388] sm:$0xff] }
  0x31   : > { %266 = vst [vmem:[%s3212_s27 + $0x1c0] sm:$0xff] %v265_v56  ;;  %v269_v58 = vld [vmem:[%s3204_s26 + $0x3a0] sm:$0xff]  ;;  %v271_v59 = vld [vmem:[%s3204_s26 + $0x3a8] sm:$0xff]  ;;  %268 = vst [vmem:[%s3212_s27 + $0x1c8] sm:$0xff] %v267_v57 }
  0x32   : > { %270 = vst [vmem:[%s3212_s27 + $0x1d0] sm:$0xff] %v269_v58  ;;  %272 = vst [vmem:[%s3212_s27 + $0x1d8] sm:$0xff] %v271_v59  ;;  %v273_v60 = vld [vmem:[%s3204_s26 + $0x3c0] sm:$0xff]  ;;  %v275_v61 = vld [vmem:[%s3204_s26 + $0x3c8] sm:$0xff] }
  0x33   : > { %v277_v62 = vld [vmem:[%s3204_s26 + $0x3e0] sm:$0xff]  ;;  %274 = vst [vmem:[%s3212_s27 + $0x1e0] sm:$0xff] %v273_v60  ;;  %276 = vst [vmem:[%s3212_s27 + $0x1e8] sm:$0xff] %v275_v61  ;;  %v279_v63 = vld [vmem:[%s3204_s26 + $0x3e8] sm:$0xff] }
  0x34   : > { %278 = vst [vmem:[%s3212_s27 + $0x1f0] sm:$0xff] %v277_v62  ;;  %v281_v0 = vld [vmem:[%s3204_s26 + $0x400] sm:$0xff]  ;;  %v283_v1 = vld [vmem:[%s3204_s26 + $0x408] sm:$0xff]  ;;  %280 = vst [vmem:[%s3212_s27 + $0x1f8] sm:$0xff] %v279_v63 }
  0x35   : > { %282 = vst [vmem:[%s3212_s27 + $0x200] sm:$0xff] %v281_v0  ;;  %284 = vst [vmem:[%s3212_s27 + $0x208] sm:$0xff] %v283_v1  ;;  %v285_v2 = vld [vmem:[%s3204_s26 + $0x420] sm:$0xff]  ;;  %v287_v3 = vld [vmem:[%s3204_s26 + $0x428] sm:$0xff] }
  0x36   : > { %v289_v4 = vld [vmem:[%s3204_s26 + $0x440] sm:$0xff]  ;;  %286 = vst [vmem:[%s3212_s27 + $0x210] sm:$0xff] %v285_v2  ;;  %288 = vst [vmem:[%s3212_s27 + $0x218] sm:$0xff] %v287_v3  ;;  %v291_v5 = vld [vmem:[%s3204_s26 + $0x448] sm:$0xff] }
  0x37   : > { %290 = vst [vmem:[%s3212_s27 + $0x220] sm:$0xff] %v289_v4  ;;  %v293_v6 = vld [vmem:[%s3204_s26 + $0x460] sm:$0xff]  ;;  %v295_v7 = vld [vmem:[%s3204_s26 + $0x468] sm:$0xff]  ;;  %292 = vst [vmem:[%s3212_s27 + $0x228] sm:$0xff] %v291_v5 }
  0x38   : > { %294 = vst [vmem:[%s3212_s27 + $0x230] sm:$0xff] %v293_v6  ;;  %296 = vst [vmem:[%s3212_s27 + $0x238] sm:$0xff] %v295_v7  ;;  %v297_v8 = vld [vmem:[%s3204_s26 + $0x480] sm:$0xff]  ;;  %v299_v9 = vld [vmem:[%s3204_s26 + $0x488] sm:$0xff] }
  0x39   : > { %v301_v10 = vld [vmem:[%s3204_s26 + $0x4a0] sm:$0xff]  ;;  %298 = vst [vmem:[%s3212_s27 + $0x240] sm:$0xff] %v297_v8  ;;  %300 = vst [vmem:[%s3212_s27 + $0x248] sm:$0xff] %v299_v9  ;;  %v303_v11 = vld [vmem:[%s3204_s26 + $0x4a8] sm:$0xff] }
  0x3a   : > { %302 = vst [vmem:[%s3212_s27 + $0x250] sm:$0xff] %v301_v10  ;;  %v305_v12 = vld [vmem:[%s3204_s26 + $0x4c0] sm:$0xff]  ;;  %v307_v13 = vld [vmem:[%s3204_s26 + $0x4c8] sm:$0xff]  ;;  %304 = vst [vmem:[%s3212_s27 + $0x258] sm:$0xff] %v303_v11 }
  0x3b   : > { %306 = vst [vmem:[%s3212_s27 + $0x260] sm:$0xff] %v305_v12  ;;  %308 = vst [vmem:[%s3212_s27 + $0x268] sm:$0xff] %v307_v13  ;;  %v309_v14 = vld [vmem:[%s3204_s26 + $0x4e0] sm:$0xff]  ;;  %v311_v15 = vld [vmem:[%s3204_s26 + $0x4e8] sm:$0xff] }
  0x3c   : > { %v313_v16 = vld [vmem:[%s3204_s26 + $0x500] sm:$0xff]  ;;  %310 = vst [vmem:[%s3212_s27 + $0x270] sm:$0xff] %v309_v14  ;;  %312 = vst [vmem:[%s3212_s27 + $0x278] sm:$0xff] %v311_v15  ;;  %v315_v17 = vld [vmem:[%s3204_s26 + $0x508] sm:$0xff] }
  0x3d   : > { %314 = vst [vmem:[%s3212_s27 + $0x280] sm:$0xff] %v313_v16  ;;  %v317_v18 = vld [vmem:[%s3204_s26 + $0x520] sm:$0xff]  ;;  %v319_v19 = vld [vmem:[%s3204_s26 + $0x528] sm:$0xff]  ;;  %316 = vst [vmem:[%s3212_s27 + $0x288] sm:$0xff] %v315_v17 }
  0x3e   : > { %318 = vst [vmem:[%s3212_s27 + $0x290] sm:$0xff] %v317_v18  ;;  %320 = vst [vmem:[%s3212_s27 + $0x298] sm:$0xff] %v319_v19  ;;  %v321_v20 = vld [vmem:[%s3204_s26 + $0x540] sm:$0xff]  ;;  %v323_v21 = vld [vmem:[%s3204_s26 + $0x548] sm:$0xff] }
  0x3f   : > { %v325_v22 = vld [vmem:[%s3204_s26 + $0x560] sm:$0xff]  ;;  %322 = vst [vmem:[%s3212_s27 + $0x2a0] sm:$0xff] %v321_v20  ;;  %324 = vst [vmem:[%s3212_s27 + $0x2a8] sm:$0xff] %v323_v21  ;;  %v327_v23 = vld [vmem:[%s3204_s26 + $0x568] sm:$0xff] }
  0x40   : > { %326 = vst [vmem:[%s3212_s27 + $0x2b0] sm:$0xff] %v325_v22  ;;  %v329_v24 = vld [vmem:[%s3204_s26 + $0x580] sm:$0xff]  ;;  %v331_v25 = vld [vmem:[%s3204_s26 + $0x588] sm:$0xff]  ;;  %328 = vst [vmem:[%s3212_s27 + $0x2b8] sm:$0xff] %v327_v23 }
  0x41   : > { %330 = vst [vmem:[%s3212_s27 + $0x2c0] sm:$0xff] %v329_v24  ;;  %332 = vst [vmem:[%s3212_s27 + $0x2c8] sm:$0xff] %v331_v25  ;;  %v333_v26 = vld [vmem:[%s3204_s26 + $0x5a0] sm:$0xff]  ;;  %v335_v27 = vld [vmem:[%s3204_s26 + $0x5a8] sm:$0xff] }
  0x42   : > { %v337_v28 = vld [vmem:[%s3204_s26 + $0x5c0] sm:$0xff]  ;;  %334 = vst [vmem:[%s3212_s27 + $0x2d0] sm:$0xff] %v333_v26  ;;  %336 = vst [vmem:[%s3212_s27 + $0x2d8] sm:$0xff] %v335_v27  ;;  %v339_v29 = vld [vmem:[%s3204_s26 + $0x5c8] sm:$0xff] }
  0x43   : > { %338 = vst [vmem:[%s3212_s27 + $0x2e0] sm:$0xff] %v337_v28  ;;  %v341_v30 = vld [vmem:[%s3204_s26 + $0x5e0] sm:$0xff]  ;;  %v343_v31 = vld [vmem:[%s3204_s26 + $0x5e8] sm:$0xff]  ;;  %340 = vst [vmem:[%s3212_s27 + $0x2e8] sm:$0xff] %v339_v29 }
  0x44   : > { %342 = vst [vmem:[%s3212_s27 + $0x2f0] sm:$0xff] %v341_v30  ;;  %344 = vst [vmem:[%s3212_s27 + $0x2f8] sm:$0xff] %v343_v31  ;;  %v345_v32 = vld [vmem:[%s3204_s26 + $0x600] sm:$0xff]  ;;  %v347_v33 = vld [vmem:[%s3204_s26 + $0x608] sm:$0xff] }
  0x45   : > { %v349_v34 = vld [vmem:[%s3204_s26 + $0x620] sm:$0xff]  ;;  %346 = vst [vmem:[%s3212_s27 + $0x300] sm:$0xff] %v345_v32  ;;  %348 = vst [vmem:[%s3212_s27 + $0x308] sm:$0xff] %v347_v33  ;;  %v351_v35 = vld [vmem:[%s3204_s26 + $0x628] sm:$0xff] }
  0x46   : > { %350 = vst [vmem:[%s3212_s27 + $0x310] sm:$0xff] %v349_v34  ;;  %v353_v36 = vld [vmem:[%s3204_s26 + $0x640] sm:$0xff]  ;;  %v355_v37 = vld [vmem:[%s3204_s26 + $0x648] sm:$0xff]  ;;  %352 = vst [vmem:[%s3212_s27 + $0x318] sm:$0xff] %v351_v35 }
  0x47   : > { %354 = vst [vmem:[%s3212_s27 + $0x320] sm:$0xff] %v353_v36  ;;  %356 = vst [vmem:[%s3212_s27 + $0x328] sm:$0xff] %v355_v37  ;;  %v357_v38 = vld [vmem:[%s3204_s26 + $0x660] sm:$0xff]  ;;  %v359_v39 = vld [vmem:[%s3204_s26 + $0x668] sm:$0xff] }
  0x48   : > { %v361_v40 = vld [vmem:[%s3204_s26 + $0x680] sm:$0xff]  ;;  %358 = vst [vmem:[%s3212_s27 + $0x330] sm:$0xff] %v357_v38  ;;  %360 = vst [vmem:[%s3212_s27 + $0x338] sm:$0xff] %v359_v39  ;;  %v363_v41 = vld [vmem:[%s3204_s26 + $0x688] sm:$0xff] }
  0x49   : > { %362 = vst [vmem:[%s3212_s27 + $0x340] sm:$0xff] %v361_v40  ;;  %v365_v42 = vld [vmem:[%s3204_s26 + $0x6a0] sm:$0xff]  ;;  %v367_v43 = vld [vmem:[%s3204_s26 + $0x6a8] sm:$0xff]  ;;  %364 = vst [vmem:[%s3212_s27 + $0x348] sm:$0xff] %v363_v41 }
  0x4a   : > { %366 = vst [vmem:[%s3212_s27 + $0x350] sm:$0xff] %v365_v42  ;;  %368 = vst [vmem:[%s3212_s27 + $0x358] sm:$0xff] %v367_v43  ;;  %v369_v44 = vld [vmem:[%s3204_s26 + $0x6c0] sm:$0xff]  ;;  %v371_v45 = vld [vmem:[%s3204_s26 + $0x6c8] sm:$0xff] }
  0x4b   : > { %v373_v46 = vld [vmem:[%s3204_s26 + $0x6e0] sm:$0xff]  ;;  %370 = vst [vmem:[%s3212_s27 + $0x360] sm:$0xff] %v369_v44  ;;  %372 = vst [vmem:[%s3212_s27 + $0x368] sm:$0xff] %v371_v45  ;;  %v375_v47 = vld [vmem:[%s3204_s26 + $0x6e8] sm:$0xff] }
  0x4c   : > { %374 = vst [vmem:[%s3212_s27 + $0x370] sm:$0xff] %v373_v46  ;;  %v377_v48 = vld [vmem:[%s3204_s26 + $0x700] sm:$0xff]  ;;  %v379_v49 = vld [vmem:[%s3204_s26 + $0x708] sm:$0xff]  ;;  %376 = vst [vmem:[%s3212_s27 + $0x378] sm:$0xff] %v375_v47 }
  0x4d   : > { %378 = vst [vmem:[%s3212_s27 + $0x380] sm:$0xff] %v377_v48  ;;  %380 = vst [vmem:[%s3212_s27 + $0x388] sm:$0xff] %v379_v49  ;;  %v381_v50 = vld [vmem:[%s3204_s26 + $0x720] sm:$0xff]  ;;  %v383_v51 = vld [vmem:[%s3204_s26 + $0x728] sm:$0xff] }
  0x4e   : > { %v385_v52 = vld [vmem:[%s3204_s26 + $0x740] sm:$0xff]  ;;  %382 = vst [vmem:[%s3212_s27 + $0x390] sm:$0xff] %v381_v50  ;;  %384 = vst [vmem:[%s3212_s27 + $0x398] sm:$0xff] %v383_v51  ;;  %v387_v53 = vld [vmem:[%s3204_s26 + $0x748] sm:$0xff] }
  0x4f   : > { %386 = vst [vmem:[%s3212_s27 + $0x3a0] sm:$0xff] %v385_v52  ;;  %v389_v54 = vld [vmem:[%s3204_s26 + $0x760] sm:$0xff]  ;;  %v391_v55 = vld [vmem:[%s3204_s26 + $0x768] sm:$0xff]  ;;  %388 = vst [vmem:[%s3212_s27 + $0x3a8] sm:$0xff] %v387_v53 }
  0x50   : > { %390 = vst [vmem:[%s3212_s27 + $0x3b0] sm:$0xff] %v389_v54  ;;  %392 = vst [vmem:[%s3212_s27 + $0x3b8] sm:$0xff] %v391_v55  ;;  %v393_v56 = vld [vmem:[%s3204_s26 + $0x780] sm:$0xff]  ;;  %v395_v57 = vld [vmem:[%s3204_s26 + $0x788] sm:$0xff] }
  0x51   : > { %v397_v58 = vld [vmem:[%s3204_s26 + $0x7a0] sm:$0xff]  ;;  %394 = vst [vmem:[%s3212_s27 + $0x3c0] sm:$0xff] %v393_v56  ;;  %396 = vst [vmem:[%s3212_s27 + $0x3c8] sm:$0xff] %v395_v57  ;;  %v399_v59 = vld [vmem:[%s3204_s26 + $0x7a8] sm:$0xff] }
  0x52   : > { %398 = vst [vmem:[%s3212_s27 + $0x3d0] sm:$0xff] %v397_v58  ;;  %v401_v60 = vld [vmem:[%s3204_s26 + $0x7c0] sm:$0xff]  ;;  %v403_v61 = vld [vmem:[%s3204_s26 + $0x7c8] sm:$0xff]  ;;  %400 = vst [vmem:[%s3212_s27 + $0x3d8] sm:$0xff] %v399_v59 }
  0x53   : > { %402 = vst [vmem:[%s3212_s27 + $0x3e0] sm:$0xff] %v401_v60  ;;  %404 = vst [vmem:[%s3212_s27 + $0x3e8] sm:$0xff] %v403_v61  ;;  %v405_v62 = vld [vmem:[%s3204_s26 + $0x7e0] sm:$0xff]  ;;  %v407_v63 = vld [vmem:[%s3204_s26 + $0x7e8] sm:$0xff] }
  0x54   : > { %v409_v0 = vld [vmem:[%s3204_s26 + $0x800] sm:$0xff]  ;;  %406 = vst [vmem:[%s3212_s27 + $0x3f0] sm:$0xff] %v405_v62  ;;  %408 = vst [vmem:[%s3212_s27 + $0x3f8] sm:$0xff] %v407_v63  ;;  %v411_v1 = vld [vmem:[%s3204_s26 + $0x808] sm:$0xff] }
  0x55   : > { %410 = vst [vmem:[%s3212_s27 + $0x400] sm:$0xff] %v409_v0  ;;  %v413_v2 = vld [vmem:[%s3204_s26 + $0x820] sm:$0xff]  ;;  %v415_v3 = vld [vmem:[%s3204_s26 + $0x828] sm:$0xff]  ;;  %412 = vst [vmem:[%s3212_s27 + $0x408] sm:$0xff] %v411_v1 }
  0x56   : > { %414 = vst [vmem:[%s3212_s27 + $0x410] sm:$0xff] %v413_v2  ;;  %416 = vst [vmem:[%s3212_s27 + $0x418] sm:$0xff] %v415_v3  ;;  %v417_v4 = vld [vmem:[%s3204_s26 + $0x840] sm:$0xff]  ;;  %v419_v5 = vld [vmem:[%s3204_s26 + $0x848] sm:$0xff] }
  0x57   : > { %v421_v6 = vld [vmem:[%s3204_s26 + $0x860] sm:$0xff]  ;;  %418 = vst [vmem:[%s3212_s27 + $0x420] sm:$0xff] %v417_v4  ;;  %420 = vst [vmem:[%s3212_s27 + $0x428] sm:$0xff] %v419_v5  ;;  %v423_v7 = vld [vmem:[%s3204_s26 + $0x868] sm:$0xff] }
  0x58   : > { %422 = vst [vmem:[%s3212_s27 + $0x430] sm:$0xff] %v421_v6  ;;  %v425_v8 = vld [vmem:[%s3204_s26 + $0x880] sm:$0xff]  ;;  %v427_v9 = vld [vmem:[%s3204_s26 + $0x888] sm:$0xff]  ;;  %424 = vst [vmem:[%s3212_s27 + $0x438] sm:$0xff] %v423_v7 }
  0x59   : > { %426 = vst [vmem:[%s3212_s27 + $0x440] sm:$0xff] %v425_v8  ;;  %428 = vst [vmem:[%s3212_s27 + $0x448] sm:$0xff] %v427_v9  ;;  %v429_v10 = vld [vmem:[%s3204_s26 + $0x8a0] sm:$0xff]  ;;  %v431_v11 = vld [vmem:[%s3204_s26 + $0x8a8] sm:$0xff] }
  0x5a   : > { %v433_v12 = vld [vmem:[%s3204_s26 + $0x8c0] sm:$0xff]  ;;  %430 = vst [vmem:[%s3212_s27 + $0x450] sm:$0xff] %v429_v10  ;;  %432 = vst [vmem:[%s3212_s27 + $0x458] sm:$0xff] %v431_v11  ;;  %v435_v13 = vld [vmem:[%s3204_s26 + $0x8c8] sm:$0xff] }
  0x5b   : > { %434 = vst [vmem:[%s3212_s27 + $0x460] sm:$0xff] %v433_v12  ;;  %v437_v14 = vld [vmem:[%s3204_s26 + $0x8e0] sm:$0xff]  ;;  %v439_v15 = vld [vmem:[%s3204_s26 + $0x8e8] sm:$0xff]  ;;  %436 = vst [vmem:[%s3212_s27 + $0x468] sm:$0xff] %v435_v13 }
  0x5c   : > { %438 = vst [vmem:[%s3212_s27 + $0x470] sm:$0xff] %v437_v14  ;;  %440 = vst [vmem:[%s3212_s27 + $0x478] sm:$0xff] %v439_v15  ;;  %v441_v16 = vld [vmem:[%s3204_s26 + $0x900] sm:$0xff]  ;;  %v443_v17 = vld [vmem:[%s3204_s26 + $0x908] sm:$0xff] }
  0x5d   : > { %v445_v18 = vld [vmem:[%s3204_s26 + $0x920] sm:$0xff]  ;;  %442 = vst [vmem:[%s3212_s27 + $0x480] sm:$0xff] %v441_v16  ;;  %444 = vst [vmem:[%s3212_s27 + $0x488] sm:$0xff] %v443_v17  ;;  %v447_v19 = vld [vmem:[%s3204_s26 + $0x928] sm:$0xff] }
  0x5e   : > { %446 = vst [vmem:[%s3212_s27 + $0x490] sm:$0xff] %v445_v18  ;;  %v449_v20 = vld [vmem:[%s3204_s26 + $0x940] sm:$0xff]  ;;  %v451_v21 = vld [vmem:[%s3204_s26 + $0x948] sm:$0xff]  ;;  %448 = vst [vmem:[%s3212_s27 + $0x498] sm:$0xff] %v447_v19 }
  0x5f   : > { %450 = vst [vmem:[%s3212_s27 + $0x4a0] sm:$0xff] %v449_v20  ;;  %452 = vst [vmem:[%s3212_s27 + $0x4a8] sm:$0xff] %v451_v21  ;;  %v453_v22 = vld [vmem:[%s3204_s26 + $0x960] sm:$0xff]  ;;  %v455_v23 = vld [vmem:[%s3204_s26 + $0x968] sm:$0xff] }
  0x60   : > { %v457_v24 = vld [vmem:[%s3204_s26 + $0x980] sm:$0xff]  ;;  %454 = vst [vmem:[%s3212_s27 + $0x4b0] sm:$0xff] %v453_v22  ;;  %456 = vst [vmem:[%s3212_s27 + $0x4b8] sm:$0xff] %v455_v23  ;;  %v459_v25 = vld [vmem:[%s3204_s26 + $0x988] sm:$0xff] }
  0x61   : > { %458 = vst [vmem:[%s3212_s27 + $0x4c0] sm:$0xff] %v457_v24  ;;  %v461_v26 = vld [vmem:[%s3204_s26 + $0x9a0] sm:$0xff]  ;;  %v463_v27 = vld [vmem:[%s3204_s26 + $0x9a8] sm:$0xff]  ;;  %460 = vst [vmem:[%s3212_s27 + $0x4c8] sm:$0xff] %v459_v25 }
  0x62   : > { %462 = vst [vmem:[%s3212_s27 + $0x4d0] sm:$0xff] %v461_v26  ;;  %464 = vst [vmem:[%s3212_s27 + $0x4d8] sm:$0xff] %v463_v27  ;;  %v465_v28 = vld [vmem:[%s3204_s26 + $0x9c0] sm:$0xff]  ;;  %v467_v29 = vld [vmem:[%s3204_s26 + $0x9c8] sm:$0xff] }
  0x63   : > { %v469_v30 = vld [vmem:[%s3204_s26 + $0x9e0] sm:$0xff]  ;;  %466 = vst [vmem:[%s3212_s27 + $0x4e0] sm:$0xff] %v465_v28  ;;  %468 = vst [vmem:[%s3212_s27 + $0x4e8] sm:$0xff] %v467_v29  ;;  %v471_v31 = vld [vmem:[%s3204_s26 + $0x9e8] sm:$0xff] }
  0x64   : > { %470 = vst [vmem:[%s3212_s27 + $0x4f0] sm:$0xff] %v469_v30  ;;  %v473_v32 = vld [vmem:[%s3204_s26 + $0xa00] sm:$0xff]  ;;  %v475_v33 = vld [vmem:[%s3204_s26 + $0xa08] sm:$0xff]  ;;  %472 = vst [vmem:[%s3212_s27 + $0x4f8] sm:$0xff] %v471_v31 }
  0x65   : > { %474 = vst [vmem:[%s3212_s27 + $0x500] sm:$0xff] %v473_v32  ;;  %476 = vst [vmem:[%s3212_s27 + $0x508] sm:$0xff] %v475_v33  ;;  %v477_v34 = vld [vmem:[%s3204_s26 + $0xa20] sm:$0xff]  ;;  %v479_v35 = vld [vmem:[%s3204_s26 + $0xa28] sm:$0xff] }
  0x66   : > { %v481_v36 = vld [vmem:[%s3204_s26 + $0xa40] sm:$0xff]  ;;  %478 = vst [vmem:[%s3212_s27 + $0x510] sm:$0xff] %v477_v34  ;;  %480 = vst [vmem:[%s3212_s27 + $0x518] sm:$0xff] %v479_v35  ;;  %v483_v37 = vld [vmem:[%s3204_s26 + $0xa48] sm:$0xff] }
  0x67   : > { %482 = vst [vmem:[%s3212_s27 + $0x520] sm:$0xff] %v481_v36  ;;  %v485_v38 = vld [vmem:[%s3204_s26 + $0xa60] sm:$0xff]  ;;  %v487_v39 = vld [vmem:[%s3204_s26 + $0xa68] sm:$0xff]  ;;  %484 = vst [vmem:[%s3212_s27 + $0x528] sm:$0xff] %v483_v37 }
  0x68   : > { %486 = vst [vmem:[%s3212_s27 + $0x530] sm:$0xff] %v485_v38  ;;  %488 = vst [vmem:[%s3212_s27 + $0x538] sm:$0xff] %v487_v39  ;;  %v489_v40 = vld [vmem:[%s3204_s26 + $0xa80] sm:$0xff]  ;;  %v491_v41 = vld [vmem:[%s3204_s26 + $0xa88] sm:$0xff] }
  0x69   : > { %v493_v42 = vld [vmem:[%s3204_s26 + $0xaa0] sm:$0xff]  ;;  %490 = vst [vmem:[%s3212_s27 + $0x540] sm:$0xff] %v489_v40  ;;  %492 = vst [vmem:[%s3212_s27 + $0x548] sm:$0xff] %v491_v41  ;;  %v495_v43 = vld [vmem:[%s3204_s26 + $0xaa8] sm:$0xff] }
  0x6a   : > { %494 = vst [vmem:[%s3212_s27 + $0x550] sm:$0xff] %v493_v42  ;;  %v497_v44 = vld [vmem:[%s3204_s26 + $0xac0] sm:$0xff]  ;;  %v499_v45 = vld [vmem:[%s3204_s26 + $0xac8] sm:$0xff]  ;;  %496 = vst [vmem:[%s3212_s27 + $0x558] sm:$0xff] %v495_v43 }
  0x6b   : > { %498 = vst [vmem:[%s3212_s27 + $0x560] sm:$0xff] %v497_v44  ;;  %500 = vst [vmem:[%s3212_s27 + $0x568] sm:$0xff] %v499_v45  ;;  %v501_v46 = vld [vmem:[%s3204_s26 + $0xae0] sm:$0xff]  ;;  %v503_v47 = vld [vmem:[%s3204_s26 + $0xae8] sm:$0xff] }
  0x6c   : > { %v505_v48 = vld [vmem:[%s3204_s26 + $0xb00] sm:$0xff]  ;;  %502 = vst [vmem:[%s3212_s27 + $0x570] sm:$0xff] %v501_v46  ;;  %504 = vst [vmem:[%s3212_s27 + $0x578] sm:$0xff] %v503_v47  ;;  %v507_v49 = vld [vmem:[%s3204_s26 + $0xb08] sm:$0xff] }
  0x6d   : > { %506 = vst [vmem:[%s3212_s27 + $0x580] sm:$0xff] %v505_v48  ;;  %v509_v50 = vld [vmem:[%s3204_s26 + $0xb20] sm:$0xff]  ;;  %v511_v51 = vld [vmem:[%s3204_s26 + $0xb28] sm:$0xff]  ;;  %508 = vst [vmem:[%s3212_s27 + $0x588] sm:$0xff] %v507_v49 }
  0x6e   : > { %510 = vst [vmem:[%s3212_s27 + $0x590] sm:$0xff] %v509_v50  ;;  %512 = vst [vmem:[%s3212_s27 + $0x598] sm:$0xff] %v511_v51  ;;  %v513_v52 = vld [vmem:[%s3204_s26 + $0xb40] sm:$0xff]  ;;  %v515_v53 = vld [vmem:[%s3204_s26 + $0xb48] sm:$0xff] }
  0x6f   : > { %v517_v54 = vld [vmem:[%s3204_s26 + $0xb60] sm:$0xff]  ;;  %514 = vst [vmem:[%s3212_s27 + $0x5a0] sm:$0xff] %v513_v52  ;;  %516 = vst [vmem:[%s3212_s27 + $0x5a8] sm:$0xff] %v515_v53  ;;  %v519_v55 = vld [vmem:[%s3204_s26 + $0xb68] sm:$0xff] }
  0x70   : > { %518 = vst [vmem:[%s3212_s27 + $0x5b0] sm:$0xff] %v517_v54  ;;  %v521_v56 = vld [vmem:[%s3204_s26 + $0xb80] sm:$0xff]  ;;  %v523_v57 = vld [vmem:[%s3204_s26 + $0xb88] sm:$0xff]  ;;  %520 = vst [vmem:[%s3212_s27 + $0x5b8] sm:$0xff] %v519_v55 }
  0x71   : > { %522 = vst [vmem:[%s3212_s27 + $0x5c0] sm:$0xff] %v521_v56  ;;  %524 = vst [vmem:[%s3212_s27 + $0x5c8] sm:$0xff] %v523_v57  ;;  %v525_v58 = vld [vmem:[%s3204_s26 + $0xba0] sm:$0xff]  ;;  %v527_v59 = vld [vmem:[%s3204_s26 + $0xba8] sm:$0xff] }
  0x72   : > { %v529_v60 = vld [vmem:[%s3204_s26 + $0xbc0] sm:$0xff]  ;;  %526 = vst [vmem:[%s3212_s27 + $0x5d0] sm:$0xff] %v525_v58  ;;  %528 = vst [vmem:[%s3212_s27 + $0x5d8] sm:$0xff] %v527_v59  ;;  %v531_v61 = vld [vmem:[%s3204_s26 + $0xbc8] sm:$0xff] }
  0x73   : > { %530 = vst [vmem:[%s3212_s27 + $0x5e0] sm:$0xff] %v529_v60  ;;  %v533_v62 = vld [vmem:[%s3204_s26 + $0xbe0] sm:$0xff]  ;;  %v535_v63 = vld [vmem:[%s3204_s26 + $0xbe8] sm:$0xff]  ;;  %532 = vst [vmem:[%s3212_s27 + $0x5e8] sm:$0xff] %v531_v61 }
  0x74   : > { %534 = vst [vmem:[%s3212_s27 + $0x5f0] sm:$0xff] %v533_v62  ;;  %536 = vst [vmem:[%s3212_s27 + $0x5f8] sm:$0xff] %v535_v63  ;;  %v537_v0 = vld [vmem:[%s3204_s26 + $0xc00] sm:$0xff]  ;;  %v539_v1 = vld [vmem:[%s3204_s26 + $0xc08] sm:$0xff] }
  0x75   : > { %v541_v2 = vld [vmem:[%s3204_s26 + $0xc20] sm:$0xff]  ;;  %538 = vst [vmem:[%s3212_s27 + $0x600] sm:$0xff] %v537_v0  ;;  %540 = vst [vmem:[%s3212_s27 + $0x608] sm:$0xff] %v539_v1  ;;  %v543_v3 = vld [vmem:[%s3204_s26 + $0xc28] sm:$0xff] }
  0x76   : > { %542 = vst [vmem:[%s3212_s27 + $0x610] sm:$0xff] %v541_v2  ;;  %v545_v4 = vld [vmem:[%s3204_s26 + $0xc40] sm:$0xff]  ;;  %v547_v5 = vld [vmem:[%s3204_s26 + $0xc48] sm:$0xff]  ;;  %544 = vst [vmem:[%s3212_s27 + $0x618] sm:$0xff] %v543_v3 }
  0x77   : > { %546 = vst [vmem:[%s3212_s27 + $0x620] sm:$0xff] %v545_v4  ;;  %548 = vst [vmem:[%s3212_s27 + $0x628] sm:$0xff] %v547_v5  ;;  %v549_v6 = vld [vmem:[%s3204_s26 + $0xc60] sm:$0xff]  ;;  %v551_v7 = vld [vmem:[%s3204_s26 + $0xc68] sm:$0xff] }
  0x78   : > { %v553_v8 = vld [vmem:[%s3204_s26 + $0xc80] sm:$0xff]  ;;  %550 = vst [vmem:[%s3212_s27 + $0x630] sm:$0xff] %v549_v6  ;;  %552 = vst [vmem:[%s3212_s27 + $0x638] sm:$0xff] %v551_v7  ;;  %v555_v9 = vld [vmem:[%s3204_s26 + $0xc88] sm:$0xff] }
  0x79   : > { %554 = vst [vmem:[%s3212_s27 + $0x640] sm:$0xff] %v553_v8  ;;  %v557_v10 = vld [vmem:[%s3204_s26 + $0xca0] sm:$0xff]  ;;  %v559_v11 = vld [vmem:[%s3204_s26 + $0xca8] sm:$0xff]  ;;  %556 = vst [vmem:[%s3212_s27 + $0x648] sm:$0xff] %v555_v9 }
  0x7a   : > { %558 = vst [vmem:[%s3212_s27 + $0x650] sm:$0xff] %v557_v10  ;;  %560 = vst [vmem:[%s3212_s27 + $0x658] sm:$0xff] %v559_v11  ;;  %v561_v12 = vld [vmem:[%s3204_s26 + $0xcc0] sm:$0xff]  ;;  %v563_v13 = vld [vmem:[%s3204_s26 + $0xcc8] sm:$0xff] }
  0x7b   : > { %v565_v14 = vld [vmem:[%s3204_s26 + $0xce0] sm:$0xff]  ;;  %562 = vst [vmem:[%s3212_s27 + $0x660] sm:$0xff] %v561_v12  ;;  %564 = vst [vmem:[%s3212_s27 + $0x668] sm:$0xff] %v563_v13  ;;  %v567_v15 = vld [vmem:[%s3204_s26 + $0xce8] sm:$0xff] }
  0x7c   : > { %566 = vst [vmem:[%s3212_s27 + $0x670] sm:$0xff] %v565_v14  ;;  %v569_v16 = vld [vmem:[%s3204_s26 + $0xd00] sm:$0xff]  ;;  %v571_v17 = vld [vmem:[%s3204_s26 + $0xd08] sm:$0xff]  ;;  %568 = vst [vmem:[%s3212_s27 + $0x678] sm:$0xff] %v567_v15 }
  0x7d   : > { %570 = vst [vmem:[%s3212_s27 + $0x680] sm:$0xff] %v569_v16  ;;  %572 = vst [vmem:[%s3212_s27 + $0x688] sm:$0xff] %v571_v17  ;;  %v573_v18 = vld [vmem:[%s3204_s26 + $0xd20] sm:$0xff]  ;;  %v575_v19 = vld [vmem:[%s3204_s26 + $0xd28] sm:$0xff] }
  0x7e   : > { %v577_v20 = vld [vmem:[%s3204_s26 + $0xd40] sm:$0xff]  ;;  %574 = vst [vmem:[%s3212_s27 + $0x690] sm:$0xff] %v573_v18  ;;  %576 = vst [vmem:[%s3212_s27 + $0x698] sm:$0xff] %v575_v19  ;;  %v579_v21 = vld [vmem:[%s3204_s26 + $0xd48] sm:$0xff] }
  0x7f   : > { %578 = vst [vmem:[%s3212_s27 + $0x6a0] sm:$0xff] %v577_v20  ;;  %v581_v22 = vld [vmem:[%s3204_s26 + $0xd60] sm:$0xff]  ;;  %v583_v23 = vld [vmem:[%s3204_s26 + $0xd68] sm:$0xff]  ;;  %580 = vst [vmem:[%s3212_s27 + $0x6a8] sm:$0xff] %v579_v21 }
  0x80   : > { %582 = vst [vmem:[%s3212_s27 + $0x6b0] sm:$0xff] %v581_v22  ;;  %584 = vst [vmem:[%s3212_s27 + $0x6b8] sm:$0xff] %v583_v23 }
  0x81 PF: > { %p2496_p7 = scmp.ge.s32.totalorder %s3140_s14, 1  ;;  %p589_p8 = scmp.lt.s32.totalorder %s3140_s14, 3 }
  0x83   : > { %p590_p9 = pnand %p2496_p7, %p589_p8 }
  0x84   : > { %s596_s28 = sand.u32 (!%p590_p9), 1, %s3132_s12   ;;  %v2882_v24 = vld [vmem:[%s3926_s1 + $0x4] ss:$28 sps:$4 sm:$0xff] (!%p590_p9)   ;;  %vm1970_vm0 = vcmask (!%p590_p9), 785408   ;;  %p625_p10 = scmp.lt.s32.totalorder (!%p590_p9), %s3179_s15, 1  ;;  %vm2354_vm1 = vcmask (!%p590_p9), 7168  }
  0x85   : > { %593 = sbr.rel (%p590_p9) target bundleno = 724 (0x2d4), region = 47  ;;  %2006 = vmatprep.mubr.bf16.mxu0 (!%p590_p9), %v2882_v24  ;;  %2178 = vmatprep.mubr.bf16.mxu1 (!%p590_p9), %v2882_v24  ;;  %s2497_s24 = sshll.u32 (!%p590_p9), %s596_s28, 6  ;;  %vm2357_vm2 = vcmask (!%p590_p9), 15360  }
  0x86   : > { %s2758_s29 = smul.u32 (!%p590_p9), 1728, %s596_s28  ;;  %s3886_s25 = scalar_lea.vmem (!%p590_p9), [#allocation3], %s2497_s24 }
  0x88   : > { %s3648_s5 = scalar_lea.vmem (!%p590_p9), [#allocation2], %s2758_s29 }
  0x89   : > { %v2784_v25 = vld [vmem:[%s3648_s5 + $0x4] ss:$16 sps:$4 sm:$0xff] (!%p590_p9)   ;;  %v2786_v26 = vld [vmem:[%s3648_s5 + $0xc] ss:$16 sps:$4 sm:$0xff] (!%p590_p9)   ;;  %v2788_v27 = vld [vmem:[%s3648_s5] ss:$16 sps:$4 sm:$0xff] (!%p590_p9)  }
  0x8a   : > { %1974 = vmatprep.subr.bf16.mxu0 (!%p590_p9), %v2784_v25  ;;  %v2789_v28 = vld [vmem:[%s3648_s5 + $0x8] ss:$16 sps:$4 sm:$0xff] (!%p590_p9)   ;;  %2146 = vmatprep.subr.bf16.mxu1 (!%p590_p9), %v2786_v26  ;;  %v2790_v29 = vld [vmem:[%s3648_s5 + $0x24] ss:$16 sps:$4 sm:$0xff] (!%p590_p9)   ;;  %v2792_v30 = vld [vmem:[%s3648_s5 + $0x2c] ss:$16 sps:$4 sm:$0xff] (!%p590_p9)  }
  0x8b   : > { %1975 = vmatpush1.bf16.msra.mxu0 (!%p590_p9), %v2788_v27  ;;  %2147 = vmatpush1.bf16.msra.mxu1 (!%p590_p9), %v2789_v28  ;;  %v2794_v31 = vld [vmem:[%s3648_s5 + $0x20] ss:$16 sps:$4 sm:$0xff] (!%p590_p9)   ;;  %v2795_v32 = vld [vmem:[%s3648_s5 + $0x28] ss:$16 sps:$4 sm:$0xff] (!%p590_p9)   ;;  %v2796_v33 = vld [vmem:[%s3648_s5 + $0x44] ss:$16 sps:$4 sm:$0xff] (!%p590_p9)  }
  0x8c   : > { %1976 = vmatprep.subr.bf16.mxu0 %v2790_v29  ;;  %2148 = vmatprep.subr.bf16.mxu1 %v2792_v30  ;;  %v2798_v34 = vld [vmem:[%s3648_s5 + $0x4c] ss:$16 sps:$4 sm:$0xff]   ;;  %v2800_v35 = vld [vmem:[%s3648_s5 + $0x40] ss:$16 sps:$4 sm:$0xff]   ;;  %v2801_v36 = vld [vmem:[%s3648_s5 + $0x48] ss:$16 sps:$4 sm:$0xff]  }
  0x8d   : > { %v2802_v37 = vld [vmem:[%s3648_s5 + $0x64] ss:$16 sps:$4 sm:$0xff]   ;;  %v2804_v38 = vld [vmem:[%s3648_s5 + $0x6c] ss:$16 sps:$4 sm:$0xff]   ;;  %v2806_v39 = vld [vmem:[%s3648_s5 + $0x60] ss:$16 sps:$4 sm:$0xff]  }
  0x8e   : > { %v2807_v40 = vld [vmem:[%s3648_s5 + $0x68] ss:$16 sps:$4 sm:$0xff]   ;;  %v2808_v41 = vld [vmem:[%s3648_s5 + $0x84] ss:$16 sps:$4 sm:$0xff]   ;;  %v2810_v42 = vld [vmem:[%s3648_s5 + $0x8c] ss:$16 sps:$4 sm:$0xff]  }
  0x8f   : > { %1977 = vmatpush1.bf16.msra.mxu0 %v2794_v31  ;;  %2149 = vmatpush1.bf16.msra.mxu1 %v2795_v32  ;;  %v2812_v43 = vld [vmem:[%s3648_s5 + $0x80] ss:$16 sps:$4 sm:$0xff]   ;;  %v2813_v44 = vld [vmem:[%s3648_s5 + $0x88] ss:$16 sps:$4 sm:$0xff]   ;;  %v2814_v45 = vld [vmem:[%s3648_s5 + $0xa4] ss:$16 sps:$4 sm:$0xff]  }
  0x90   : > { %1978 = vmatprep.subr.bf16.mxu0 %v2796_v33  ;;  %2150 = vmatprep.subr.bf16.mxu1 %v2798_v34  ;;  %v2816_v46 = vld [vmem:[%s3648_s5 + $0xac] ss:$16 sps:$4 sm:$0xff]   ;;  %v2818_v47 = vld [vmem:[%s3648_s5 + $0xa0] ss:$16 sps:$4 sm:$0xff]   ;;  %v2819_v48 = vld [vmem:[%s3648_s5 + $0xa8] ss:$16 sps:$4 sm:$0xff]  }
  0x91   : > { %v2820_v49 = vld [vmem:[%s3648_s5 + $0xc4] ss:$16 sps:$4 sm:$0xff]   ;;  %v2822_v50 = vld [vmem:[%s3648_s5 + $0xcc] ss:$16 sps:$4 sm:$0xff]   ;;  %v2824_v51 = vld [vmem:[%s3648_s5 + $0xc0] ss:$16 sps:$4 sm:$0xff]  }
  0x92   : > { %v2825_v52 = vld [vmem:[%s3648_s5 + $0xc8] ss:$16 sps:$4 sm:$0xff]   ;;  %v2826_v53 = vld [vmem:[%s3648_s5 + $0xe4] ss:$16 sps:$4 sm:$0xff]   ;;  %v2828_v54 = vld [vmem:[%s3648_s5 + $0xec] ss:$16 sps:$4 sm:$0xff]  }
  0x93   : > { %1979 = vmatpush1.bf16.msra.mxu0 %v2800_v35  ;;  %2151 = vmatpush1.bf16.msra.mxu1 %v2801_v36  ;;  %v2830_v55 = vld [vmem:[%s3648_s5 + $0xe0] ss:$16 sps:$4 sm:$0xff]   ;;  %v2831_v56 = vld [vmem:[%s3648_s5 + $0xe8] ss:$16 sps:$4 sm:$0xff]   ;;  %v2832_v57 = vld [vmem:[%s3648_s5 + $0x104] ss:$16 sps:$4 sm:$0xff]  }
  0x94   : > { %1980 = vmatprep.subr.bf16.mxu0 %v2802_v37  ;;  %2152 = vmatprep.subr.bf16.mxu1 %v2804_v38  ;;  %v2834_v58 = vld [vmem:[%s3648_s5 + $0x10c] ss:$16 sps:$4 sm:$0xff]   ;;  %v2836_v59 = vld [vmem:[%s3648_s5 + $0x100] ss:$16 sps:$4 sm:$0xff]   ;;  %v2837_v60 = vld [vmem:[%s3648_s5 + $0x108] ss:$16 sps:$4 sm:$0xff]  }
  0x95   : > { %v2838_v61 = vld [vmem:[%s3648_s5 + $0x124] ss:$16 sps:$4 sm:$0xff]   ;;  %v2840_v62 = vld [vmem:[%s3648_s5 + $0x12c] ss:$16 sps:$4 sm:$0xff]   ;;  %v2842_v63 = vld [vmem:[%s3648_s5 + $0x120] ss:$16 sps:$4 sm:$0xff]  }
  0x96   : > { %v2843_v0 = vld [vmem:[%s3648_s5 + $0x128] ss:$16 sps:$4 sm:$0xff]   ;;  %v2844_v1 = vld [vmem:[%s3648_s5 + $0x144] ss:$16 sps:$4 sm:$0xff]   ;;  %v2846_v2 = vld [vmem:[%s3648_s5 + $0x14c] ss:$16 sps:$4 sm:$0xff]  }
  0x97   : > { %1981 = vmatpush1.bf16.msra.mxu0 %v2806_v39  ;;  %2153 = vmatpush1.bf16.msra.mxu1 %v2807_v40  ;;  %v2848_v3 = vld [vmem:[%s3648_s5 + $0x140] ss:$16 sps:$4 sm:$0xff]   ;;  %v2849_v4 = vld [vmem:[%s3648_s5 + $0x148] ss:$16 sps:$4 sm:$0xff]   ;;  %v2850_v5 = vld [vmem:[%s3648_s5 + $0x164] ss:$16 sps:$4 sm:$0xff]  }
  0x98   : > { %1982 = vmatprep.subr.bf16.mxu0 %v2808_v41  ;;  %2154 = vmatprep.subr.bf16.mxu1 %v2810_v42  ;;  %v2852_v6 = vld [vmem:[%s3648_s5 + $0x16c] ss:$16 sps:$4 sm:$0xff]   ;;  %v2854_v7 = vld [vmem:[%s3648_s5 + $0x160] ss:$16 sps:$4 sm:$0xff]   ;;  %v2855_v8 = vld [vmem:[%s3648_s5 + $0x168] ss:$16 sps:$4 sm:$0xff]  }
  0x99   : > { %v2856_v9 = vld [vmem:[%s3648_s5 + $0x184] ss:$16 sps:$4 sm:$0xff]   ;;  %v2858_v10 = vld [vmem:[%s3648_s5 + $0x18c] ss:$16 sps:$4 sm:$0xff]   ;;  %v2860_v11 = vld [vmem:[%s3648_s5 + $0x180] ss:$16 sps:$4 sm:$0xff]  }
  0x9a   : > { %v2861_v12 = vld [vmem:[%s3648_s5 + $0x188] ss:$16 sps:$4 sm:$0xff]   ;;  %v2862_v13 = vld [vmem:[%s3648_s5 + $0x1a4] ss:$16 sps:$4 sm:$0xff]   ;;  %v2864_v14 = vld [vmem:[%s3648_s5 + $0x1ac] ss:$16 sps:$4 sm:$0xff]  }
  0x9b   : > { %1983 = vmatpush1.bf16.msra.mxu0 %v2812_v43  ;;  %2155 = vmatpush1.bf16.msra.mxu1 %v2813_v44  ;;  %v2866_v15 = vld [vmem:[%s3648_s5 + $0x1a0] ss:$16 sps:$4 sm:$0xff]   ;;  %v2867_v16 = vld [vmem:[%s3648_s5 + $0x1a8] ss:$16 sps:$4 sm:$0xff]   ;;  %v2868_v17 = vld [vmem:[%s3648_s5 + $0x1c4] ss:$16 sps:$4 sm:$0xff]  }
  0x9c   : > { %1984 = vmatprep.subr.bf16.mxu0 %v2814_v45  ;;  %2156 = vmatprep.subr.bf16.mxu1 %v2816_v46  ;;  %v2870_v18 = vld [vmem:[%s3648_s5 + $0x1cc] ss:$16 sps:$4 sm:$0xff]   ;;  %v2872_v19 = vld [vmem:[%s3648_s5 + $0x1c0] ss:$16 sps:$4 sm:$0xff]   ;;  %v2873_v20 = vld [vmem:[%s3648_s5 + $0x1c8] ss:$16 sps:$4 sm:$0xff]  }
  0x9d   : > { %v2874_v21 = vld [vmem:[%s3648_s5 + $0x1e4] ss:$16 sps:$4 sm:$0xff]   ;;  %v2876_v22 = vld [vmem:[%s3648_s5 + $0x1ec] ss:$16 sps:$4 sm:$0xff]   ;;  %v2878_v23 = vld [vmem:[%s3648_s5 + $0x1e0] ss:$16 sps:$4 sm:$0xff]  }
  0x9e   : > { %v2879_v24 = vld [vmem:[%s3648_s5 + $0x1e8] ss:$16 sps:$4 sm:$0xff]   ;;  %v2885_v25 = vld [vmem:[%s3648_s5 + $0x204] ss:$16 sps:$4 sm:$0xff]   ;;  %v2888_v26 = vld [vmem:[%s3648_s5 + $0x20c] ss:$16 sps:$4 sm:$0xff]  }
  0x9f   : > { %1985 = vmatpush1.bf16.msra.mxu0 %v2818_v47  ;;  %2157 = vmatpush1.bf16.msra.mxu1 %v2819_v48  ;;  %v2880_v27 = vld [vmem:[%s3926_s1] ss:$28 sps:$4 sm:$0xff]   ;;  %v2886_v29 = vld [vmem:[%s3648_s5 + $0x208] ss:$16 sps:$4 sm:$0xff]   ;;  %v2891_v30 = vld [vmem:[%s3648_s5 + $0x224] ss:$16 sps:$4 sm:$0xff]  }
  0xa0   : > { %1986 = vmatprep.subr.bf16.mxu0 %v2820_v49  ;;  %2158 = vmatprep.subr.bf16.mxu1 %v2822_v50  ;;  %v2883_v28 = vld [vmem:[%s3648_s5 + $0x200] ss:$16 sps:$4 sm:$0xff]   ;;  %v2894_v31 = vld [vmem:[%s3648_s5 + $0x22c] ss:$16 sps:$4 sm:$0xff]   ;;  %v2892_v33 = vld [vmem:[%s3648_s5 + $0x228] ss:$16 sps:$4 sm:$0xff]  }
  0xa1   : > { %v2889_v32 = vld [vmem:[%s3648_s5 + $0x220] ss:$16 sps:$4 sm:$0xff]   ;;  %v2897_v34 = vld [vmem:[%s3648_s5 + $0x244] ss:$16 sps:$4 sm:$0xff]   ;;  %v2900_v35 = vld [vmem:[%s3648_s5 + $0x24c] ss:$16 sps:$4 sm:$0xff]  }
  0xa2   : > { %v2895_v36 = vld [vmem:[%s3648_s5 + $0x240] ss:$16 sps:$4 sm:$0xff]   ;;  %v2898_v37 = vld [vmem:[%s3648_s5 + $0x248] ss:$16 sps:$4 sm:$0xff]   ;;  %v2903_v38 = vld [vmem:[%s3648_s5 + $0x264] ss:$16 sps:$4 sm:$0xff]  }
  0xa3   : > { %1987 = vmatpush1.bf16.msra.mxu0 %v2824_v51  ;;  %2159 = vmatpush1.bf16.msra.mxu1 %v2825_v52  ;;  %v2906_v39 = vld [vmem:[%s3648_s5 + $0x26c] ss:$16 sps:$4 sm:$0xff]   ;;  %v2901_v40 = vld [vmem:[%s3648_s5 + $0x260] ss:$16 sps:$4 sm:$0xff]   ;;  %v2904_v41 = vld [vmem:[%s3648_s5 + $0x268] ss:$16 sps:$4 sm:$0xff]  }
  0xa4   : > { %1988 = vmatprep.subr.bf16.mxu0 %v2826_v53  ;;  %2160 = vmatprep.subr.bf16.mxu1 %v2828_v54  ;;  %v2909_v42 = vld [vmem:[%s3648_s5 + $0x284] ss:$16 sps:$4 sm:$0xff]   ;;  %v2912_v43 = vld [vmem:[%s3648_s5 + $0x28c] ss:$16 sps:$4 sm:$0xff]   ;;  %v2907_v44 = vld [vmem:[%s3648_s5 + $0x280] ss:$16 sps:$4 sm:$0xff]  }
  0xa5   : > { %v2910_v45 = vld [vmem:[%s3648_s5 + $0x288] ss:$16 sps:$4 sm:$0xff]   ;;  %v2915_v46 = vld [vmem:[%s3648_s5 + $0x2a4] ss:$16 sps:$4 sm:$0xff]   ;;  %v2918_v47 = vld [vmem:[%s3648_s5 + $0x2ac] ss:$16 sps:$4 sm:$0xff]  }
  0xa6   : > { %v2913_v48 = vld [vmem:[%s3648_s5 + $0x2a0] ss:$16 sps:$4 sm:$0xff]   ;;  %v2916_v49 = vld [vmem:[%s3648_s5 + $0x2a8] ss:$16 sps:$4 sm:$0xff]   ;;  %v2921_v50 = vld [vmem:[%s3648_s5 + $0x2c4] ss:$16 sps:$4 sm:$0xff]  }
  0xa7   : > { %1989 = vmatpush1.bf16.msra.mxu0 %v2830_v55  ;;  %2161 = vmatpush1.bf16.msra.mxu1 %v2831_v56  ;;  %v2924_v51 = vld [vmem:[%s3648_s5 + $0x2cc] ss:$16 sps:$4 sm:$0xff]   ;;  %v2919_v53 = vld [vmem:[%s3648_s5 + $0x2c0] ss:$16 sps:$4 sm:$0xff]   ;;  %v2922_v54 = vld [vmem:[%s3648_s5 + $0x2c8] ss:$16 sps:$4 sm:$0xff]  }
  0xa8   : > { %1990 = vmatprep.subr.bf16.mxu0 %v2832_v57  ;;  %2162 = vmatprep.subr.bf16.mxu1 %v2834_v58  ;;  %v2981_v52 = vld [vmem:[%s3926_s1 + $0xc] ss:$28 sps:$4 sm:$0xff]   ;;  %v2927_v55 = vld [vmem:[%s3648_s5 + $0x2e4] ss:$16 sps:$4 sm:$0xff]   ;;  %v2925_v57 = vld [vmem:[%s3648_s5 + $0x2e0] ss:$16 sps:$4 sm:$0xff]  }
  0xa9   : > { %v2930_v56 = vld [vmem:[%s3648_s5 + $0x2ec] ss:$16 sps:$4 sm:$0xff]   ;;  %v2928_v58 = vld [vmem:[%s3648_s5 + $0x2e8] ss:$16 sps:$4 sm:$0xff]   ;;  %s626_s12 = scalar_select %p625_p10, %s3179_s15, 1 }
  0xaa   : > { %s2732_s30 = sshll.u32 (%p3194_p5), %s3179_s15, 5 }
  0xab   : > { %1991 = vmatpush1.bf16.msra.mxu0 %v2836_v59  ;;  %2163 = vmatpush1.bf16.msra.mxu1 %v2837_v60  ;;  %v2933_v59 = vld [vmem:[%s3648_s5 + $0x304] ss:$16 sps:$4 sm:$0xff]   ;;  %v2936_v60 = vld [vmem:[%s3648_s5 + $0x30c] ss:$16 sps:$4 sm:$0xff]   ;;  %s2731_s26 = sshll.u32 %s626_s12, 4  ;;  %s2374_s6 = scalar_lea.vmem (%p3194_p5), %s3927_s2, %s2732_s30 }
  0xac   : > { %1992 = vmatprep.subr.bf16.mxu0 %v2838_v61  ;;  %2164 = vmatprep.subr.bf16.mxu1 %v2840_v62  ;;  %v2931_v61 = vld [vmem:[%s3648_s5 + $0x300] ss:$16 sps:$4 sm:$0xff]   ;;  %v2934_v62 = vld [vmem:[%s3648_s5 + $0x308] ss:$16 sps:$4 sm:$0xff]   ;;  %s629_s29 = scalar_lea.vmem %s3928_s3, %s2731_s26 }
  0xaf   : > { %1993 = vmatpush1.bf16.msra.mxu0 %v2842_v63  ;;  %2165 = vmatpush1.bf16.msra.mxu1 %v2843_v0  ;;  %v2939_v63 = vld [vmem:[%s3648_s5 + $0x324] ss:$16 sps:$4 sm:$0xff]   ;;  %v2942_v0 = vld [vmem:[%s3648_s5 + $0x32c] ss:$16 sps:$4 sm:$0xff]  }
  0xb0   : > { %1994 = vmatprep.subr.bf16.mxu0 %v2844_v1  ;;  %2166 = vmatprep.subr.bf16.mxu1 %v2846_v2  ;;  %v2937_v1 = vld [vmem:[%s3648_s5 + $0x320] ss:$16 sps:$4 sm:$0xff]   ;;  %v2940_v2 = vld [vmem:[%s3648_s5 + $0x328] ss:$16 sps:$4 sm:$0xff]  }
  0xb3   : > { %1995 = vmatpush1.bf16.msra.mxu0 %v2848_v3  ;;  %2167 = vmatpush1.bf16.msra.mxu1 %v2849_v4  ;;  %v2945_v3 = vld [vmem:[%s3648_s5 + $0x344] ss:$16 sps:$4 sm:$0xff]   ;;  %v2948_v4 = vld [vmem:[%s3648_s5 + $0x34c] ss:$16 sps:$4 sm:$0xff]  }
  0xb4   : > { %1996 = vmatprep.subr.bf16.mxu0 %v2850_v5  ;;  %2168 = vmatprep.subr.bf16.mxu1 %v2852_v6  ;;  %v2943_v5 = vld [vmem:[%s3648_s5 + $0x340] ss:$16 sps:$4 sm:$0xff]   ;;  %v2946_v6 = vld [vmem:[%s3648_s5 + $0x348] ss:$16 sps:$4 sm:$0xff]  }
  0xb7   : > { %1997 = vmatpush1.bf16.msra.mxu0 %v2854_v7  ;;  %2169 = vmatpush1.bf16.msra.mxu1 %v2855_v8  ;;  %v2951_v7 = vld [vmem:[%s3648_s5 + $0x364] ss:$16 sps:$4 sm:$0xff]   ;;  %v2954_v8 = vld [vmem:[%s3648_s5 + $0x36c] ss:$16 sps:$4 sm:$0xff]  }
  0xb8   : > { %1998 = vmatprep.subr.bf16.mxu0 %v2856_v9  ;;  %2170 = vmatprep.subr.bf16.mxu1 %v2858_v10  ;;  %v2949_v9 = vld [vmem:[%s3648_s5 + $0x360] ss:$16 sps:$4 sm:$0xff]   ;;  %v2952_v10 = vld [vmem:[%s3648_s5 + $0x368] ss:$16 sps:$4 sm:$0xff]  }
  0xbb   : > { %1999 = vmatpush1.bf16.msra.mxu0 %v2860_v11  ;;  %2171 = vmatpush1.bf16.msra.mxu1 %v2861_v12  ;;  %v2957_v11 = vld [vmem:[%s3648_s5 + $0x384] ss:$16 sps:$4 sm:$0xff]   ;;  %v2960_v12 = vld [vmem:[%s3648_s5 + $0x38c] ss:$16 sps:$4 sm:$0xff]  }
  0xbc   : > { %2000 = vmatprep.subr.bf16.mxu0 %v2862_v13  ;;  %2172 = vmatprep.subr.bf16.mxu1 %v2864_v14  ;;  %v2955_v13 = vld [vmem:[%s3648_s5 + $0x380] ss:$16 sps:$4 sm:$0xff]   ;;  %v2958_v14 = vld [vmem:[%s3648_s5 + $0x388] ss:$16 sps:$4 sm:$0xff]  }
  0xbf   : > { %2001 = vmatpush1.bf16.msra.mxu0 %v2866_v15  ;;  %2173 = vmatpush1.bf16.msra.mxu1 %v2867_v16  ;;  %v2963_v15 = vld [vmem:[%s3648_s5 + $0x3a4] ss:$16 sps:$4 sm:$0xff]   ;;  %v2966_v16 = vld [vmem:[%s3648_s5 + $0x3ac] ss:$16 sps:$4 sm:$0xff]  }
  0xc0   : > { %2002 = vmatprep.subr.bf16.mxu0 %v2868_v17  ;;  %2174 = vmatprep.subr.bf16.mxu1 %v2870_v18  ;;  %v2961_v17 = vld [vmem:[%s3648_s5 + $0x3a0] ss:$16 sps:$4 sm:$0xff]   ;;  %v2964_v18 = vld [vmem:[%s3648_s5 + $0x3a8] ss:$16 sps:$4 sm:$0xff]  }
  0xc3   : > { %2003 = vmatpush1.bf16.msra.mxu0 %v2872_v19  ;;  %2175 = vmatpush1.bf16.msra.mxu1 %v2873_v20  ;;  %v2969_v19 = vld [vmem:[%s3648_s5 + $0x3c4] ss:$16 sps:$4 sm:$0xff]   ;;  %v2972_v20 = vld [vmem:[%s3648_s5 + $0x3cc] ss:$16 sps:$4 sm:$0xff]  }
  0xc4   : > { %2004 = vmatprep.subr.bf16.mxu0 %v2874_v21  ;;  %2176 = vmatprep.subr.bf16.mxu1 %v2876_v22  ;;  %v2967_v21 = vld [vmem:[%s3648_s5 + $0x3c0] ss:$16 sps:$4 sm:$0xff]   ;;  %v2970_v22 = vld [vmem:[%s3648_s5 + $0x3c8] ss:$16 sps:$4 sm:$0xff]  }
  0xc7   : > { %2005 = vmatpush1.bf16.msra.mxu0 %v2878_v23  ;;  %2177 = vmatpush1.bf16.msra.mxu1 %v2879_v24  ;;  %v2975_v23 = vld [vmem:[%s3648_s5 + $0x3e4] ss:$16 sps:$4 sm:$0xff]   ;;  %v2978_v24 = vld [vmem:[%s3648_s5 + $0x3ec] ss:$16 sps:$4 sm:$0xff]  }
  0xc8   : > { %2017 = vmatprep.subr.bf16.mxu0 %v2885_v25  ;;  %2189 = vmatprep.subr.bf16.mxu1 %v2888_v26  ;;  %v2973_v25 = vld [vmem:[%s3648_s5 + $0x3e0] ss:$16 sps:$4 sm:$0xff]   ;;  %v2976_v26 = vld [vmem:[%s3648_s5 + $0x3e8] ss:$16 sps:$4 sm:$0xff]  }
  0xca   : > { %2007 = vmatmul.mubr.bf16.vlgmr.msra.gmra.mrb[0].mxu0 %v2880_v27  ;;  %2179 = vmatmul.mubr.bf16.vlgmr.msra.gmra.mrb[0].mxu1 %v2880_v27  ;;  %v2984_v27 = vld [vmem:[%s3648_s5 + $0x404] ss:$16 sps:$4 sm:$0xff]  }
  0xcb   : > { %2018 = vmatpush1.bf16.msra.mxu0 %v2883_v28  ;;  %2190 = vmatpush1.bf16.msra.mxu1 %v2886_v29  ;;  %v2987_v28 = vld [vmem:[%s3648_s5 + $0x40c] ss:$16 sps:$4 sm:$0xff]   ;;  %v2979_v29 = vld [vmem:[%s3926_s1 + $0x8] ss:$28 sps:$4 sm:$0xff]  }
  0xcc   : > { %2019 = vmatprep.subr.bf16.mxu0 %v2891_v30  ;;  %2191 = vmatprep.subr.bf16.mxu1 %v2894_v31  ;;  %v2982_v30 = vld [vmem:[%s3648_s5 + $0x400] ss:$16 sps:$4 sm:$0xff]   ;;  %v2985_v31 = vld [vmem:[%s3648_s5 + $0x408] ss:$16 sps:$4 sm:$0xff]  }
  0xcd   : > { %2049 = vmatprep.mubr.bf16.mxu0 %v2981_v52  ;;  %2221 = vmatprep.mubr.bf16.mxu1 %v2981_v52  ;;  %v3015_v52 = vld [vmem:[%s3648_s5 + $0x4a8] ss:$16 sps:$4 sm:$0xff]  }
  0xcf   : > { %2020 = vmatpush1.bf16.msra.mxu0 %v2889_v32  ;;  %2192 = vmatpush1.bf16.msra.mxu1 %v2892_v33  ;;  %v2990_v32 = vld [vmem:[%s3648_s5 + $0x424] ss:$16 sps:$4 sm:$0xff]   ;;  %v2993_v33 = vld [vmem:[%s3648_s5 + $0x42c] ss:$16 sps:$4 sm:$0xff]  }
  0xd0   : > { %2021 = vmatprep.subr.bf16.mxu0 %v2897_v34  ;;  %2193 = vmatprep.subr.bf16.mxu1 %v2900_v35  ;;  %v3080_v34 = vld [vmem:[%s3926_s1 + $0x14] ss:$28 sps:$4 sm:$0xff]  }
  0xd1   : > { %v2988_v35 = vld [vmem:[%s3648_s5 + $0x420] ss:$16 sps:$4 sm:$0xff]  }
  0xd3   : > { %2022 = vmatpush1.bf16.msra.mxu0 %v2895_v36  ;;  %2194 = vmatpush1.bf16.msra.mxu1 %v2898_v37  ;;  %v2991_v36 = vld [vmem:[%s3648_s5 + $0x428] ss:$16 sps:$4 sm:$0xff]   ;;  %v2996_v37 = vld [vmem:[%s3648_s5 + $0x444] ss:$16 sps:$4 sm:$0xff]  }
  0xd4   : > { %2023 = vmatprep.subr.bf16.mxu0 %v2903_v38  ;;  %2195 = vmatprep.subr.bf16.mxu1 %v2906_v39  ;;  %v2999_v38 = vld [vmem:[%s3648_s5 + $0x44c] ss:$16 sps:$4 sm:$0xff]   ;;  %v2994_v39 = vld [vmem:[%s3648_s5 + $0x440] ss:$16 sps:$4 sm:$0xff]  }
  0xd7   : > { %2024 = vmatpush1.bf16.msra.mxu0 %v2901_v40  ;;  %2196 = vmatpush1.bf16.msra.mxu1 %v2904_v41  ;;  %v2997_v40 = vld [vmem:[%s3648_s5 + $0x448] ss:$16 sps:$4 sm:$0xff]   ;;  %v3002_v41 = vld [vmem:[%s3648_s5 + $0x464] ss:$16 sps:$4 sm:$0xff]  }
  0xd8   : > { %2025 = vmatprep.subr.bf16.mxu0 %v2909_v42  ;;  %2197 = vmatprep.subr.bf16.mxu1 %v2912_v43  ;;  %v3005_v42 = vld [vmem:[%s3648_s5 + $0x46c] ss:$16 sps:$4 sm:$0xff]   ;;  %v3000_v43 = vld [vmem:[%s3648_s5 + $0x460] ss:$16 sps:$4 sm:$0xff]  }
  0xdb   : > { %2026 = vmatpush1.bf16.msra.mxu0 %v2907_v44  ;;  %2198 = vmatpush1.bf16.msra.mxu1 %v2910_v45  ;;  %v3003_v44 = vld [vmem:[%s3648_s5 + $0x468] ss:$16 sps:$4 sm:$0xff]   ;;  %v3008_v45 = vld [vmem:[%s3648_s5 + $0x484] ss:$16 sps:$4 sm:$0xff]  }
  0xdc   : > { %2027 = vmatprep.subr.bf16.mxu0 %v2915_v46  ;;  %2199 = vmatprep.subr.bf16.mxu1 %v2918_v47  ;;  %v3011_v46 = vld [vmem:[%s3648_s5 + $0x48c] ss:$16 sps:$4 sm:$0xff]   ;;  %v3006_v47 = vld [vmem:[%s3648_s5 + $0x480] ss:$16 sps:$4 sm:$0xff]  }
  0xdf   : > { %2028 = vmatpush1.bf16.msra.mxu0 %v2913_v48  ;;  %2200 = vmatpush1.bf16.msra.mxu1 %v2916_v49  ;;  %v3009_v48 = vld [vmem:[%s3648_s5 + $0x488] ss:$16 sps:$4 sm:$0xff]   ;;  %v3014_v49 = vld [vmem:[%s3648_s5 + $0x4a4] ss:$16 sps:$4 sm:$0xff]  }
  0xe0   : > { %2029 = vmatprep.subr.bf16.mxu0 %v2921_v50  ;;  %2201 = vmatprep.subr.bf16.mxu1 %v2924_v51  ;;  %v3017_v50 = vld [vmem:[%s3648_s5 + $0x4ac] ss:$16 sps:$4 sm:$0xff]   ;;  %v3012_v51 = vld [vmem:[%s3648_s5 + $0x4a0] ss:$16 sps:$4 sm:$0xff]  }
  0xe3   : > { %2030 = vmatpush1.bf16.msra.mxu0 %v2919_v53  ;;  %2202 = vmatpush1.bf16.msra.mxu1 %v2922_v54  ;;  %v3020_v53 = vld [vmem:[%s3648_s5 + $0x4c4] ss:$16 sps:$4 sm:$0xff]   ;;  %v3023_v54 = vld [vmem:[%s3648_s5 + $0x4cc] ss:$16 sps:$4 sm:$0xff]  }
  0xe4   : > { %2031 = vmatprep.subr.bf16.mxu0 %v2927_v55  ;;  %2203 = vmatprep.subr.bf16.mxu1 %v2930_v56  ;;  %v3018_v55 = vld [vmem:[%s3648_s5 + $0x4c0] ss:$16 sps:$4 sm:$0xff]   ;;  %v3021_v56 = vld [vmem:[%s3648_s5 + $0x4c8] ss:$16 sps:$4 sm:$0xff]  }
  0xe7   : > { %2032 = vmatpush1.bf16.msra.mxu0 %v2925_v57  ;;  %2204 = vmatpush1.bf16.msra.mxu1 %v2928_v58  ;;  %v3026_v57 = vld [vmem:[%s3648_s5 + $0x4e4] ss:$16 sps:$4 sm:$0xff]   ;;  %v3029_v58 = vld [vmem:[%s3648_s5 + $0x4ec] ss:$16 sps:$4 sm:$0xff]  }
  0xe8   : > { %2033 = vmatprep.subr.bf16.mxu0 %v2933_v59  ;;  %2205 = vmatprep.subr.bf16.mxu1 %v2936_v60  ;;  %v3024_v59 = vld [vmem:[%s3648_s5 + $0x4e0] ss:$16 sps:$4 sm:$0xff]   ;;  %v3027_v60 = vld [vmem:[%s3648_s5 + $0x4e8] ss:$16 sps:$4 sm:$0xff]  }
  0xeb   : > { %2034 = vmatpush1.bf16.msra.mxu0 %v2931_v61  ;;  %2206 = vmatpush1.bf16.msra.mxu1 %v2934_v62  ;;  %v3032_v61 = vld [vmem:[%s3648_s5 + $0x504] ss:$16 sps:$4 sm:$0xff]   ;;  %v3035_v62 = vld [vmem:[%s3648_s5 + $0x50c] ss:$16 sps:$4 sm:$0xff]  }
  0xec   : > { %2035 = vmatprep.subr.bf16.mxu0 %v2939_v63  ;;  %2207 = vmatprep.subr.bf16.mxu1 %v2942_v0  ;;  %v3030_v63 = vld [vmem:[%s3648_s5 + $0x500] ss:$16 sps:$4 sm:$0xff]   ;;  %v3033_v0 = vld [vmem:[%s3648_s5 + $0x508] ss:$16 sps:$4 sm:$0xff]  }
  0xef   : > { %2036 = vmatpush1.bf16.msra.mxu0 %v2937_v1  ;;  %2208 = vmatpush1.bf16.msra.mxu1 %v2940_v2  ;;  %v3038_v1 = vld [vmem:[%s3648_s5 + $0x524] ss:$16 sps:$4 sm:$0xff]   ;;  %v3041_v2 = vld [vmem:[%s3648_s5 + $0x52c] ss:$16 sps:$4 sm:$0xff]  }
  0xf0   : > { %2037 = vmatprep.subr.bf16.mxu0 %v2945_v3  ;;  %2209 = vmatprep.subr.bf16.mxu1 %v2948_v4  ;;  %v3036_v3 = vld [vmem:[%s3648_s5 + $0x520] ss:$16 sps:$4 sm:$0xff]   ;;  %v3039_v4 = vld [vmem:[%s3648_s5 + $0x528] ss:$16 sps:$4 sm:$0xff]  }
  0xf3   : > { %2038 = vmatpush1.bf16.msra.mxu0 %v2943_v5  ;;  %2210 = vmatpush1.bf16.msra.mxu1 %v2946_v6  ;;  %v3044_v5 = vld [vmem:[%s3648_s5 + $0x544] ss:$16 sps:$4 sm:$0xff]   ;;  %v3047_v6 = vld [vmem:[%s3648_s5 + $0x54c] ss:$16 sps:$4 sm:$0xff]  }
  0xf4   : > { %2039 = vmatprep.subr.bf16.mxu0 %v2951_v7  ;;  %2211 = vmatprep.subr.bf16.mxu1 %v2954_v8  ;;  %v3042_v7 = vld [vmem:[%s3648_s5 + $0x540] ss:$16 sps:$4 sm:$0xff]   ;;  %v3045_v8 = vld [vmem:[%s3648_s5 + $0x548] ss:$16 sps:$4 sm:$0xff]  }
  0xf7   : > { %2040 = vmatpush1.bf16.msra.mxu0 %v2949_v9  ;;  %2212 = vmatpush1.bf16.msra.mxu1 %v2952_v10  ;;  %v3050_v9 = vld [vmem:[%s3648_s5 + $0x564] ss:$16 sps:$4 sm:$0xff]   ;;  %v3053_v10 = vld [vmem:[%s3648_s5 + $0x56c] ss:$16 sps:$4 sm:$0xff]  }
  0xf8   : > { %2041 = vmatprep.subr.bf16.mxu0 %v2957_v11  ;;  %2213 = vmatprep.subr.bf16.mxu1 %v2960_v12  ;;  %v3048_v11 = vld [vmem:[%s3648_s5 + $0x560] ss:$16 sps:$4 sm:$0xff]   ;;  %v3051_v12 = vld [vmem:[%s3648_s5 + $0x568] ss:$16 sps:$4 sm:$0xff]  }
  0xfb   : > { %2042 = vmatpush1.bf16.msra.mxu0 %v2955_v13  ;;  %2214 = vmatpush1.bf16.msra.mxu1 %v2958_v14  ;;  %v3056_v13 = vld [vmem:[%s3648_s5 + $0x584] ss:$16 sps:$4 sm:$0xff]   ;;  %v3059_v14 = vld [vmem:[%s3648_s5 + $0x58c] ss:$16 sps:$4 sm:$0xff]  }
  0xfc   : > { %2043 = vmatprep.subr.bf16.mxu0 %v2963_v15  ;;  %2215 = vmatprep.subr.bf16.mxu1 %v2966_v16  ;;  %v3054_v15 = vld [vmem:[%s3648_s5 + $0x580] ss:$16 sps:$4 sm:$0xff]   ;;  %v3057_v16 = vld [vmem:[%s3648_s5 + $0x588] ss:$16 sps:$4 sm:$0xff]  }
  0xff   : > { %2044 = vmatpush1.bf16.msra.mxu0 %v2961_v17  ;;  %2216 = vmatpush1.bf16.msra.mxu1 %v2964_v18  ;;  %v3062_v17 = vld [vmem:[%s3648_s5 + $0x5a4] ss:$16 sps:$4 sm:$0xff]   ;;  %v3065_v18 = vld [vmem:[%s3648_s5 + $0x5ac] ss:$16 sps:$4 sm:$0xff]  }
 0x100   : > { %2045 = vmatprep.subr.bf16.mxu0 %v2969_v19  ;;  %2217 = vmatprep.subr.bf16.mxu1 %v2972_v20  ;;  %v3060_v19 = vld [vmem:[%s3648_s5 + $0x5a0] ss:$16 sps:$4 sm:$0xff]   ;;  %v3063_v20 = vld [vmem:[%s3648_s5 + $0x5a8] ss:$16 sps:$4 sm:$0xff]  }
 0x103   : > { %2046 = vmatpush1.bf16.msra.mxu0 %v2967_v21  ;;  %2218 = vmatpush1.bf16.msra.mxu1 %v2970_v22  ;;  %v3068_v21 = vld [vmem:[%s3648_s5 + $0x5c4] ss:$16 sps:$4 sm:$0xff]   ;;  %v3071_v22 = vld [vmem:[%s3648_s5 + $0x5cc] ss:$16 sps:$4 sm:$0xff]  }
 0x104   : > { %2047 = vmatprep.subr.bf16.mxu0 %v2975_v23  ;;  %2219 = vmatprep.subr.bf16.mxu1 %v2978_v24  ;;  %v3066_v23 = vld [vmem:[%s3648_s5 + $0x5c0] ss:$16 sps:$4 sm:$0xff]   ;;  %v3069_v24 = vld [vmem:[%s3648_s5 + $0x5c8] ss:$16 sps:$4 sm:$0xff]  }
 0x107   : > { %2048 = vmatpush1.bf16.msra.mxu0 %v2973_v25  ;;  %2220 = vmatpush1.bf16.msra.mxu1 %v2976_v26  ;;  %v3074_v25 = vld [vmem:[%s3648_s5 + $0x5e4] ss:$16 sps:$4 sm:$0xff]   ;;  %v3077_v26 = vld [vmem:[%s3648_s5 + $0x5ec] ss:$16 sps:$4 sm:$0xff]  }
 0x108   : > { %2060 = vmatprep.subr.bf16.mxu0 %v2984_v27  ;;  %2232 = vmatprep.subr.bf16.mxu1 %v2987_v28  ;;  %v3072_v27 = vld [vmem:[%s3648_s5 + $0x5e0] ss:$16 sps:$4 sm:$0xff]   ;;  %v3075_v28 = vld [vmem:[%s3648_s5 + $0x5e8] ss:$16 sps:$4 sm:$0xff]  }
 0x10a   : > { %2050 = vmatmul.mubr.bf16.vlgmr.msra.gmra.mrb[0].mxu0 %v2979_v29  ;;  %2222 = vmatmul.mubr.bf16.vlgmr.msra.gmra.mrb[0].mxu1 %v2979_v29  ;;  %v3083_v29 = vld [vmem:[%s3648_s5 + $0x604] ss:$16 sps:$4 sm:$0xff]  }
 0x10b   : > { %2061 = vmatpush1.bf16.msra.mxu0 %v2982_v30  ;;  %2233 = vmatpush1.bf16.msra.mxu1 %v2985_v31  ;;  %v3086_v30 = vld [vmem:[%s3648_s5 + $0x60c] ss:$16 sps:$4 sm:$0xff]  }
 0x10c   : > { %2062 = vmatprep.subr.bf16.mxu0 %v2990_v32  ;;  %2234 = vmatprep.subr.bf16.mxu1 %v2993_v33  ;;  %v3078_v31 = vld [vmem:[%s3926_s1 + $0x10] ss:$28 sps:$4 sm:$0xff]   ;;  %v3084_v33 = vld [vmem:[%s3648_s5 + $0x608] ss:$16 sps:$4 sm:$0xff]  }
 0x10d   : > { %2092 = vmatprep.mubr.bf16.mxu0 %v3080_v34  ;;  %2264 = vmatprep.mubr.bf16.mxu1 %v3080_v34  ;;  %v3081_v32 = vld [vmem:[%s3648_s5 + $0x600] ss:$16 sps:$4 sm:$0xff]   ;;  %v3089_v34 = vld [vmem:[%s3648_s5 + $0x624] ss:$16 sps:$4 sm:$0xff]  }
 0x10f   : > { %2063 = vmatpush1.bf16.msra.mxu0 %v2988_v35  ;;  %2235 = vmatpush1.bf16.msra.mxu1 %v2991_v36  ;;  %v3092_v35 = vld [vmem:[%s3648_s5 + $0x62c] ss:$16 sps:$4 sm:$0xff]   ;;  %v3087_v36 = vld [vmem:[%s3648_s5 + $0x620] ss:$16 sps:$4 sm:$0xff]  }
 0x110   : > { %2064 = vmatprep.subr.bf16.mxu0 %v2996_v37  ;;  %2236 = vmatprep.subr.bf16.mxu1 %v2999_v38  ;;  %v3090_v37 = vld [vmem:[%s3648_s5 + $0x628] ss:$16 sps:$4 sm:$0xff]   ;;  %v3095_v38 = vld [vmem:[%s3648_s5 + $0x644] ss:$16 sps:$4 sm:$0xff]  }
 0x113   : > { %2065 = vmatpush1.bf16.msra.mxu0 %v2994_v39  ;;  %2237 = vmatpush1.bf16.msra.mxu1 %v2997_v40  ;;  %v3098_v39 = vld [vmem:[%s3648_s5 + $0x64c] ss:$16 sps:$4 sm:$0xff]   ;;  %v3142_v40 = vmov 0  }
 0x114   : > { %2066 = vmatprep.subr.bf16.mxu0 %v3002_v41  ;;  %2238 = vmatprep.subr.bf16.mxu1 %v3005_v42  ;;  %v3093_v41 = vld [vmem:[%s3648_s5 + $0x640] ss:$16 sps:$4 sm:$0xff]   ;;  %v3096_v42 = vld [vmem:[%s3648_s5 + $0x648] ss:$16 sps:$4 sm:$0xff]  }
 0x117   : > { %2067 = vmatpush1.bf16.msra.mxu0 %v3000_v43  ;;  %2239 = vmatpush1.bf16.msra.mxu1 %v3003_v44  ;;  %v3101_v43 = vld [vmem:[%s3648_s5 + $0x664] ss:$16 sps:$4 sm:$0xff]   ;;  %v3104_v44 = vld [vmem:[%s3648_s5 + $0x66c] ss:$16 sps:$4 sm:$0xff]  }
 0x118   : > { %2068 = vmatprep.subr.bf16.mxu0 %v3008_v45  ;;  %2240 = vmatprep.subr.bf16.mxu1 %v3011_v46  ;;  %v3099_v45 = vld [vmem:[%s3648_s5 + $0x660] ss:$16 sps:$4 sm:$0xff]   ;;  %v3102_v46 = vld [vmem:[%s3648_s5 + $0x668] ss:$16 sps:$4 sm:$0xff]  }
 0x11b   : > { %2069 = vmatpush1.bf16.msra.mxu0 %v3006_v47  ;;  %2241 = vmatpush1.bf16.msra.mxu1 %v3009_v48  ;;  %v3107_v47 = vld [vmem:[%s3648_s5 + $0x684] ss:$16 sps:$4 sm:$0xff]   ;;  %v3110_v48 = vld [vmem:[%s3648_s5 + $0x68c] ss:$16 sps:$4 sm:$0xff]  }
 0x11c   : > { %2070 = vmatprep.subr.bf16.mxu0 %v3014_v49  ;;  %2242 = vmatprep.subr.bf16.mxu1 %v3017_v50  ;;  %v3105_v49 = vld [vmem:[%s3648_s5 + $0x680] ss:$16 sps:$4 sm:$0xff]   ;;  %v3108_v50 = vld [vmem:[%s3648_s5 + $0x688] ss:$16 sps:$4 sm:$0xff]  }
 0x11f   : > { %2071 = vmatpush1.bf16.msra.mxu0 %v3012_v51  ;;  %2243 = vmatpush1.bf16.msra.mxu1 %v3015_v52  ;;  %v3113_v51 = vld [vmem:[%s3648_s5 + $0x6a4] ss:$16 sps:$4 sm:$0xff]   ;;  %v3116_v52 = vld [vmem:[%s3648_s5 + $0x6ac] ss:$16 sps:$4 sm:$0xff]  }
 0x120   : > { %2072 = vmatprep.subr.bf16.mxu0 %v3020_v53  ;;  %2244 = vmatprep.subr.bf16.mxu1 %v3023_v54  ;;  %v3111_v53 = vld [vmem:[%s3648_s5 + $0x6a0] ss:$16 sps:$4 sm:$0xff]   ;;  %v3114_v54 = vld [vmem:[%s3648_s5 + $0x6a8] ss:$16 sps:$4 sm:$0xff]  }
 0x123   : > { %2073 = vmatpush1.bf16.msra.mxu0 %v3018_v55  ;;  %2245 = vmatpush1.bf16.msra.mxu1 %v3021_v56  ;;  %v3117_v55 = vld [vmem:[%s3926_s1 + $0x18] ss:$28 sps:$4 sm:$0xff]  }
 0x124   : > { %2074 = vmatprep.subr.bf16.mxu0 %v3026_v57  ;;  %2246 = vmatprep.subr.bf16.mxu1 %v3029_v58 }
 0x127   : > { %2075 = vmatpush1.bf16.msra.mxu0 %v3024_v59  ;;  %2247 = vmatpush1.bf16.msra.mxu1 %v3027_v60 }
 0x128   : > { %2076 = vmatprep.subr.bf16.mxu0 %v3032_v61  ;;  %2248 = vmatprep.subr.bf16.mxu1 %v3035_v62 }
 0x12b   : > { %2077 = vmatpush1.bf16.msra.mxu0 %v3030_v63  ;;  %2249 = vmatpush1.bf16.msra.mxu1 %v3033_v0 }
 0x12c   : > { %2078 = vmatprep.subr.bf16.mxu0 %v3038_v1  ;;  %2250 = vmatprep.subr.bf16.mxu1 %v3041_v2 }
 0x12f   : > { %2079 = vmatpush1.bf16.msra.mxu0 %v3036_v3  ;;  %2251 = vmatpush1.bf16.msra.mxu1 %v3039_v4 }
 0x130   : > { %2080 = vmatprep.subr.bf16.mxu0 %v3044_v5  ;;  %2252 = vmatprep.subr.bf16.mxu1 %v3047_v6 }
 0x133   : > { %2081 = vmatpush1.bf16.msra.mxu0 %v3042_v7  ;;  %2253 = vmatpush1.bf16.msra.mxu1 %v3045_v8 }
 0x134   : > { %2082 = vmatprep.subr.bf16.mxu0 %v3050_v9  ;;  %2254 = vmatprep.subr.bf16.mxu1 %v3053_v10 }
 0x137   : > { %2083 = vmatpush1.bf16.msra.mxu0 %v3048_v11  ;;  %2255 = vmatpush1.bf16.msra.mxu1 %v3051_v12 }
 0x138   : > { %2084 = vmatprep.subr.bf16.mxu0 %v3056_v13  ;;  %2256 = vmatprep.subr.bf16.mxu1 %v3059_v14 }
 0x13b   : > { %2085 = vmatpush1.bf16.msra.mxu0 %v3054_v15  ;;  %2257 = vmatpush1.bf16.msra.mxu1 %v3057_v16 }
 0x13c   : > { %2086 = vmatprep.subr.bf16.mxu0 %v3062_v17  ;;  %2258 = vmatprep.subr.bf16.mxu1 %v3065_v18 }
 0x13f   : > { %2087 = vmatpush1.bf16.msra.mxu0 %v3060_v19  ;;  %2259 = vmatpush1.bf16.msra.mxu1 %v3063_v20 }
 0x140   : > { %2088 = vmatprep.subr.bf16.mxu0 %v3068_v21  ;;  %2260 = vmatprep.subr.bf16.mxu1 %v3071_v22 }
 0x143   : > { %2089 = vmatpush1.bf16.msra.mxu0 %v3066_v23  ;;  %2261 = vmatpush1.bf16.msra.mxu1 %v3069_v24 }
 0x144   : > { %2090 = vmatprep.subr.bf16.mxu0 %v3074_v25  ;;  %2262 = vmatprep.subr.bf16.mxu1 %v3077_v26 }
 0x147   : > { %2091 = vmatpush1.bf16.msra.mxu0 %v3072_v27  ;;  %2263 = vmatpush1.bf16.msra.mxu1 %v3075_v28 }
 0x148   : > { %2103 = vmatprep.subr.bf16.mxu0 %v3083_v29  ;;  %2275 = vmatprep.subr.bf16.mxu1 %v3086_v30 }
 0x14a   : > { %2093 = vmatmul.mubr.bf16.vlgmr.msra.gmra.mrb[0].mxu0 %v3078_v31  ;;  %2265 = vmatmul.mubr.bf16.vlgmr.msra.gmra.mrb[0].mxu1 %v3078_v31 }
 0x14b   : > { %2104 = vmatpush1.bf16.msra.mxu0 %v3081_v32  ;;  %2276 = vmatpush1.bf16.msra.mxu1 %v3084_v33 }
 0x14c   : > { %2105 = vmatprep.subr.bf16.mxu0 %v3089_v34  ;;  %2277 = vmatprep.subr.bf16.mxu1 %v3092_v35 }
 0x14d   : > { %2135 = vmatprep.mubr.bf16.mxu0 %v3142_v40  ;;  %2307 = vmatprep.mubr.bf16.mxu1 %v3142_v40 }
 0x14f   : > { %2106 = vmatpush1.bf16.msra.mxu0 %v3087_v36  ;;  %2278 = vmatpush1.bf16.msra.mxu1 %v3090_v37 }
 0x150   : > { %2107 = vmatprep.subr.bf16.mxu0 %v3095_v38  ;;  %2279 = vmatprep.subr.bf16.mxu1 %v3098_v39 }
 0x153   : > { %2108 = vmatpush1.bf16.msra.mxu0 %v3093_v41  ;;  %2280 = vmatpush1.bf16.msra.mxu1 %v3096_v42 }
 0x154   : > { %2109 = vmatprep.subr.bf16.mxu0 %v3101_v43  ;;  %2281 = vmatprep.subr.bf16.mxu1 %v3104_v44 }
 0x157   : > { %2110 = vmatpush1.bf16.msra.mxu0 %v3099_v45  ;;  %2282 = vmatpush1.bf16.msra.mxu1 %v3102_v46 }
 0x158   : > { %2111 = vmatprep.subr.bf16.mxu0 %v3107_v47  ;;  %2283 = vmatprep.subr.bf16.mxu1 %v3110_v48 }
 0x15b   : > { %2112 = vmatpush1.bf16.msra.mxu0 %v3105_v49  ;;  %2284 = vmatpush1.bf16.msra.mxu1 %v3108_v50 }
 0x15c   : > { %2113 = vmatprep.subr.bf16.mxu0 %v3113_v51  ;;  %2285 = vmatprep.subr.bf16.mxu1 %v3116_v52 }
 0x15f   : > { %2114 = vmatpush1.bf16.msra.mxu0 %v3111_v53  ;;  %2286 = vmatpush1.bf16.msra.mxu1 %v3114_v54 }
 0x162   : > { %2723 = vmatmul.mubr.msk.bf16.vlgmr.msra.gmra.mrb[0].mxu0 %vm1970_vm0, %v3117_v55  ;;  %2724 = vmatmul.mubr.msk.bf16.vlgmr.msra.gmra.mrb[0].mxu1 %vm1970_vm0, %v3117_v55 }
 0x235   : > { %v2137_v56 = vpop.f32.mrb[0].mxu0  ;;  %v2309_v57 = vpop.f32.mrb[0].mxu1 }
 0x236   : > { %2318 = vst [vmem:[%s3886_s25] sm:$0xff] %v2137_v56  ;;  %v2336_v58 = vmul.f32 %v2137_v56, %v2137_v56  ;;  %2320 = vst [vmem:[%s3886_s25 + $0x10] sm:$0xff] %v2309_v57  ;;  %v2139_v59 = vpop.f32.mrb[1].mxu0  ;;  %v2311_v60 = vpop.f32.mrb[1].mxu1  ;;  %v2338_v7 = vmul.f32 %v2309_v57, %v2309_v57 }
 0x237   : > { %2319 = vst [vmem:[%s3886_s25 + $0x8] sm:$0xff] %v2139_v59  ;;  %v2326_v61 = vadd.f32 %v2139_v59, %v2137_v56  ;;  %v2337_v62 = vmul.f32 %v2139_v59, %v2139_v59  ;;  %2321 = vst [vmem:[%s3886_s25 + $0x18] sm:$0xff] %v2311_v60  ;;  %v2141_v63 = vpop.f32.mrb[2].mxu0  ;;  %v2313_v0 = vpop.f32.mrb[2].mxu1  ;;  %v2339_v13 = vmul.f32 %v2311_v60, %v2311_v60 }
 0x238   : > { %2322 = vst [vmem:[%s3886_s25 + $0x20] sm:$0xff] %v2141_v63  ;;  %v2340_v1 = vmul.f32 %v2141_v63, %v2141_v63  ;;  %2324 = vst [vmem:[%s3886_s25 + $0x30] sm:$0xff] %v2313_v0  ;;  %v2143_v2 = vpop.f32.mrb[3].mxu0  ;;  %v2315_v3 = vpop.f32.mrb[3].mxu1  ;;  %v2342_v9 = vmul.f32 %v2313_v0, %v2313_v0 }
 0x239   : > { %2323 = vst [vmem:[%s3886_s25 + $0x28] sm:$0xff] %v2143_v2  ;;  %v2331_v4 = vadd.f32 %v2143_v2, %v2141_v63  ;;  %v2341_v5 = vmul.f32 %v2143_v2, %v2143_v2  ;;  %2325 = vst [vmem:[%s3886_s25 + $0x38] sm:$0xff] %v2315_v3  ;;  %v2327_v6 = vadd.f32 %v2326_v61, %v2309_v57 }
 0x23a   : > { %v2344_v8 = vadd.f32 %v2337_v62, %v2336_v58  ;;  %v2343_v15 = vmul.f32 %v2315_v3, %v2315_v3 }
 0x23b   : > { %v2349_v10 = vadd.f32 %v2341_v5, %v2340_v1  ;;  %v2328_v11 = vadd.f32 %v2327_v6, %v2311_v60  ;;  %v2332_v12 = vadd.f32 %v2331_v4, %v2313_v0 }
 0x23c   : > { %v2345_v14 = vadd.f32 %v2344_v8, %v2338_v7 }
 0x23d   : > { %2329 = vadd.xlane.f32.xlu0 %v2328_v11  ;;  %v2333_v16 = vadd.f32 %v2332_v12, %v2315_v3  ;;  %v2350_v17 = vadd.f32 %v2349_v10, %v2342_v9  ;;  %v2387_v26 = vld [vmem:[%s3886_s25] sm:$0xff] (%p3194_p5)  ;;  %v2391_v28 = vld [vmem:[%s3886_s25 + $0x10] sm:$0xff] (%p3194_p5) }
 0x23e   : > { %v2346_v18 = vadd.f32 %v2345_v14, %v2339_v13  ;;  %v2389_v27 = vld [vmem:[%s3886_s25 + $0x8] sm:$0xff] (%p3194_p5)  ;;  %v2393_v29 = vld [vmem:[%s3886_s25 + $0x18] sm:$0xff] (%p3194_p5)  ;;  %2388 = vst [vmem:[%s2374_s6] sm:$0xff] (%p3194_p5), %v2387_v26  ;;  %2392 = vst [vmem:[%s2374_s6 + $0x10] sm:$0xff] (%p3194_p5), %v2391_v28 }
 0x23f   : > { %v2351_v19 = vadd.f32 %v2350_v17, %v2343_v15  ;;  %v2395_v30 = vld [vmem:[%s3886_s25 + $0x20] sm:$0xff] (%p3194_p5)  ;;  %2390 = vst [vmem:[%s2374_s6 + $0x8] sm:$0xff] (%p3194_p5), %v2389_v27  ;;  %2394 = vst [vmem:[%s2374_s6 + $0x18] sm:$0xff] (%p3194_p5), %v2393_v29  ;;  %v2399_v32 = vld [vmem:[%s3886_s25 + $0x30] sm:$0xff] (%p3194_p5) }
 0x240   : > { %2347 = vadd.xlane.f32.xlu1 %v2346_v18  ;;  %v2397_v31 = vld [vmem:[%s3886_s25 + $0x28] sm:$0xff] (%p3194_p5)  ;;  %2396 = vst [vmem:[%s2374_s6 + $0x40] sm:$0xff] (%p3194_p5), %v2395_v30  ;;  %v2401_v33 = vld [vmem:[%s3886_s25 + $0x38] sm:$0xff] (%p3194_p5)  ;;  %2400 = vst [vmem:[%s2374_s6 + $0x50] sm:$0xff] (%p3194_p5), %v2399_v32 }
 0x241   : > { %2334 = vadd.xlane.f32.xlu0 %v2333_v16  ;;  %2398 = vst [vmem:[%s2374_s6 + $0x48] sm:$0xff] (%p3194_p5), %v2397_v31  ;;  %2402 = vst [vmem:[%s2374_s6 + $0x58] sm:$0xff] (%p3194_p5), %v2401_v33 }
 0x244   : > { %2352 = vadd.xlane.f32.xlu1 %v2351_v19 }
 0x2ca   : > { %v2330_v20 = vpop.xlane.xlu0 %2329 }
 0x2cd   : > { %v2348_v21 = vpop.xlane.xlu1 %2347  ;;  %2371 = sbr.rel (!%p3194_p5) target bundleno = 724 (0x2d4), region = 55 }
 0x2ce   : > { %v2355_v22 = vsel %vm2354_vm1, %v2330_v20, %v2348_v21  ;;  %v2335_v23 = vpop.xlane.xlu0 %2334 }
 0x2cf   : > { %2358 = vst.msk [vmem:[%s629_s29] sm:$0xff] %vm2357_vm2, %v2355_v22 }
 0x2d1   : > { %v2353_v24 = vpop.xlane.xlu1 %2352 }
 0x2d2   : > { %v2356_v25 = vsel %vm2354_vm1, %v2335_v23, %v2353_v24 }
 0x2d3   : > { %2359 = vst.msk [vmem:[%s629_s29 + $0x8] sm:$0xff] %vm2357_vm2, %v2356_v25 }
 0x2d4 PF: > { %p11_p11 = scmp.ge.s32.totalorder %s3182_s16, 4   ;;  %s3930_s12 = smov %s3136_s13 }
 0x2d5   : > { %s3931_s13 = smov %s3192_s19  ;;  %s3932_s14 = smov %s3182_s16 }
 0x2d6   :  { %13 = sbr.rel (!%p11_p11) target bundleno = 2 (0x2), region = 121 }

// kernel: forward.10
= control target key start
LH: loop header
LB: loop body
LE: loop exit
PB: predicated region body
PF: predicated region fallthrough
CT: control target
= control target key end

     0   :  { %s487_s12 = smov 0   ;;  %s489_s13 = smov 0   ;;  %s559_s0 = inlined_call_operand.vmem [shape: f32[16,1024], index: 0, kind: input, shape index: {}]   ;;  %s560_s1 = inlined_call_operand.vmem [shape: f32[16,1], index: 1, kind: input, shape index: {}]   ;;  %s561_s2 = inlined_call_operand.vmem [shape: f32[16,1], index: 2, kind: input, shape index: {}]   ;;  %s562_s3 = inlined_call_operand.vmem [shape: bf16[16,1024], index: 3, kind: output, shape index: {}]  }
   0x1   :  { %s491_s14 = smov 0  }
   0x2 LB: > { %s390_s15 = sadd.s32 4294967295, %s464_s14   ;;  %s504_s16 = sadd.s32 1, %s464_s14   ;;  %s464_s14 = sphi %s491_s14, %s566_s14   ;;  %s460_s13 = sphi %s489_s13, %s565_s13   ;;  %s456_s12 = sphi %s487_s12, %s564_s12  }
   0x3   : > { %s17_s17 = ssub.s32 %s464_s14, %s504_s16  ;;  %s20_s18 = sadd.s32 1, %s460_s13 }
   0x4   : > { %p18_p0 = scmp.eq.s32.totalorder %s17_s17, 0  ;;  %p27_p1 = scmp.ne.s32.totalorder %s460_s13, %s456_s12 }
   0x5   : > { %p28_p2 = scmp.eq.s32.totalorder %s464_s14, 0  ;;  %p99_p3 = scmp.eq.s32.totalorder %s390_s15, 1 }
   0x6   : > { %s515_s19 = scalar_select %p18_p0, %s460_s13, %s20_s18  }
   0x7   : > { %p29_p4 = por %p28_p2, %p27_p1  ;;  %p517_p5 = por %p99_p3, %p27_p1 }
   0x8   : > { %p393_p6 = scmp.ge.s32.totalorder %s464_s14, 2 }
   0xa   : > { %127 = sbr.rel (%p393_p6) target bundleno = 25 (0x19), region = 24 }
  0x11   : > { %130 = sbr.rel (!%p29_p4) target bundleno = 25 (0x19), region = 28  ;;  %s132_s21 = sand.u32 (%p29_p4), 1, %s460_s13  }
  0x12   : > { %s409_s22 = sshll.u32 (%p29_p4), %s464_s14, 5  ;;  %s394_s23 = sshll.u32 (%p29_p4), %s132_s21, 6 }
  0x13   : > { %s137_s26 = scalar_lea.vmem (%p29_p4), %s559_s0, %s409_s22  ;;  %s134_s27 = scalar_lea.vmem (%p29_p4), [#allocation2], %s394_s23 }
  0x14   : > { %v150_v0 = vld [vmem:[%s137_s26] sm:$0xff] (%p29_p4)  ;;  %v152_v1 = vld [vmem:[%s137_s26 + $0x8] sm:$0xff] (%p29_p4)  ;;  %v154_v2 = vld [vmem:[%s137_s26 + $0x10] sm:$0xff] (%p29_p4) }
  0x15   : > { %151 = vst [vmem:[%s134_s27] sm:$0xff] (%p29_p4), %v150_v0  ;;  %153 = vst [vmem:[%s134_s27 + $0x8] sm:$0xff] (%p29_p4), %v152_v1  ;;  %v156_v3 = vld [vmem:[%s137_s26 + $0x18] sm:$0xff] (%p29_p4)  ;;  %v158_v4 = vld [vmem:[%s137_s26 + $0x40] sm:$0xff] (%p29_p4) }
  0x16   : > { %155 = vst [vmem:[%s134_s27 + $0x10] sm:$0xff] (%p29_p4), %v154_v2  ;;  %v160_v5 = vld [vmem:[%s137_s26 + $0x48] sm:$0xff] (%p29_p4)  ;;  %157 = vst [vmem:[%s134_s27 + $0x18] sm:$0xff] (%p29_p4), %v156_v3  ;;  %v162_v6 = vld [vmem:[%s137_s26 + $0x50] sm:$0xff] (%p29_p4) }
  0x17   : > { %159 = vst [vmem:[%s134_s27 + $0x20] sm:$0xff] (%p29_p4), %v158_v4  ;;  %161 = vst [vmem:[%s134_s27 + $0x28] sm:$0xff] (%p29_p4), %v160_v5  ;;  %v164_v7 = vld [vmem:[%s137_s26 + $0x58] sm:$0xff] (%p29_p4) }
  0x18   : > { %163 = vst [vmem:[%s134_s27 + $0x30] sm:$0xff] %v162_v6  ;;  %165 = vst [vmem:[%s134_s27 + $0x38] sm:$0xff] %v164_v7 }
  0x19 PF: > { %p397_p7 = scmp.ge.s32.totalorder %s464_s14, 1  ;;  %p170_p8 = scmp.lt.s32.totalorder %s464_s14, 3 }
  0x1b   : > { %p171_p9 = pnand %p397_p7, %p170_p8 }
  0x1c   : > { %v229_v8 = vld [vmem:[%s561_s2] sm:$0xff] (!%p171_p9)  ;;  %v466_v10 = vmov (!%p171_p9), 0   ;;  %v230_v11 = vld [vmem:[%s561_s2 + $0x8] sm:$0xff] (!%p171_p9)  ;;  %s177_s9 = sand.u32 (!%p171_p9), 1, %s456_s12  }
  0x1d   : > { %174 = sbr.rel (%p171_p9) target bundleno = 183 (0xb7), region = 51  ;;  %v209_v9 = vld [vmem:[%s560_s1] sm:$0xff] (!%p171_p9)  ;;  %441 = vset.pattern.permute.xlu1 (!%p171_p9), %v466_v10  ;;  %440 = vset.pattern.permute.xlu0 (!%p171_p9), %v466_v10  ;;  %v210_v12 = vld [vmem:[%s560_s1 + $0x8] sm:$0xff] (!%p171_p9)  ;;  %s398_s10 = sshll.u32 (!%p171_p9), %s177_s9, 6 }
  0x1e   : > { %233 = vperm.xlu1 (!%p171_p9), %441, %v229_v8   ;;  %213 = vperm.xlu0 (!%p171_p9), %440, %v209_v9   ;;  %s179_s11 = scalar_lea.vmem (!%p171_p9), [#allocation2], %s398_s10  ;;  %s399_s12 = sshll.u32 (!%p171_p9), %s177_s9, 5 }
  0x1f   : > { %v201_v13 = vld [vmem:[%s179_s11] sm:$0xff] (!%p171_p9)  ;;  %v202_v14 = vld [vmem:[%s179_s11 + $0x8] sm:$0xff] (!%p171_p9)  ;;  %v203_v15 = vld [vmem:[%s179_s11 + $0x10] sm:$0xff] (!%p171_p9)  ;;  %s198_s17 = scalar_lea.vmem (!%p171_p9), [#allocation3], %s399_s12 }
  0x20   : > { %v204_v16 = vld [vmem:[%s179_s11 + $0x18] sm:$0xff] (!%p171_p9)  ;;  %v205_v27 = vld [vmem:[%s179_s11 + $0x20] sm:$0xff] (!%p171_p9)  ;;  %v206_v29 = vld [vmem:[%s179_s11 + $0x28] sm:$0xff] (!%p171_p9) }
  0x21   : > { %v207_v30 = vld [vmem:[%s179_s11 + $0x30] sm:$0xff] (!%p171_p9)  ;;  %v208_v31 = vld [vmem:[%s179_s11 + $0x38] sm:$0xff] (!%p171_p9) }
  0x22   : > { %238 = vperm.xlu1 (!%p171_p9), %441, %v230_v11   ;;  %218 = vperm.xlu0 (!%p171_p9), %440, %v210_v12  }
  0x24   : > { %s414_s18 = sshll.u32 (%p517_p5), %s390_s15, 4 }
  0x25   : > { %s310_s23 = scalar_lea.vmem (%p517_p5), %s562_s3, %s414_s18 }
  0x9d   : > { %v214_v17 = vpop.permute.xlu0 %213  ;;  %v234_v18 = vpop.permute.xlu1 %233 }
  0x9e   : > { %v221_v19 = vmul.f32 %v214_v17, %v201_v13  ;;  %v222_v20 = vmul.f32 %v214_v17, %v202_v14  ;;  %v223_v21 = vmul.f32 %v214_v17, %v203_v15  ;;  %v224_v22 = vmul.f32 %v214_v17, %v204_v16 }
  0xa0   : > { %v241_v23 = vadd.f32 %v234_v18, %v221_v19  ;;  %v242_v24 = vadd.f32 %v234_v18, %v222_v20  ;;  %v243_v25 = vadd.f32 %v234_v18, %v223_v21  ;;  %v244_v26 = vadd.f32 %v234_v18, %v224_v22 }
  0xa1   : > { %v219_v28 = vpop.permute.xlu0 %218  ;;  %v239_v37 = vpop.permute.xlu1 %238 }
  0xa2   : > { %vm249_vm0 = vcmp.ge.f32.partialorder %v241_v23, 0.0  ;;  %vm250_vm1 = vcmp.ge.f32.partialorder %v242_v24, 0.0  ;;  %vm251_vm2 = vcmp.ge.f32.partialorder %v243_v25, 0.0  ;;  %vm252_vm3 = vcmp.ge.f32.partialorder %v244_v26, 0.0 }
  0xa3   : > { %v257_v32 = vmul.f32 0.01, %v241_v23  ;;  %v258_v33 = vmul.f32 0.01, %v242_v24  ;;  %v259_v34 = vmul.f32 0.01, %v243_v25  ;;  %v225_v35 = vmul.f32 %v219_v28, %v205_v27 }
  0xa4   : > { %v260_v36 = vmul.f32 0.01, %v244_v26  ;;  %v226_v38 = vmul.f32 %v219_v28, %v206_v29  ;;  %v227_v39 = vmul.f32 %v219_v28, %v207_v30  ;;  %v228_v40 = vmul.f32 %v219_v28, %v208_v31 }
  0xa5   : > { %v265_v41 = vsel %vm249_vm0, %v241_v23, %v257_v32  ;;  %v266_v42 = vsel %vm250_vm1, %v242_v24, %v258_v33  ;;  %v267_v43 = vsel %vm251_vm2, %v243_v25, %v259_v34  ;;  %v245_v44 = vadd.f32 %v239_v37, %v225_v35 }
  0xa6   : > { %v268_v45 = vsel %vm252_vm3, %v244_v26, %v260_v36  ;;  %v410_v46 = vpack.c.bf16 %v266_v42, %v265_v41  ;;  %v246_v47 = vadd.f32 %v239_v37, %v226_v38  ;;  %v247_v48 = vadd.f32 %v239_v37, %v227_v39 }
  0xa7   : > { %v411_v49 = vpack.c.bf16 %v268_v45, %v267_v43  ;;  %v248_v50 = vadd.f32 %v239_v37, %v228_v40  ;;  %vm253_vm4 = vcmp.ge.f32.partialorder %v245_v44, 0.0  ;;  %v261_v51 = vmul.f32 0.01, %v245_v44 }
  0xa8   : > { %297 = vst [vmem:[%s198_s17] sm:$0xff] %v410_v46  ;;  %vm254_vm5 = vcmp.ge.f32.partialorder %v246_v47, 0.0  ;;  %vm255_vm6 = vcmp.ge.f32.partialorder %v247_v48, 0.0  ;;  %v262_v52 = vmul.f32 0.01, %v246_v47  ;;  %v263_v53 = vmul.f32 0.01, %v247_v48 }
  0xa9   : > { %298 = vst [vmem:[%s198_s17 + $0x8] sm:$0xff] %v411_v49  ;;  %vm256_vm7 = vcmp.ge.f32.partialorder %v248_v50, 0.0  ;;  %v264_v54 = vmul.f32 0.01, %v248_v50  ;;  %v269_v55 = vsel %vm253_vm4, %v245_v44, %v261_v51  ;;  %307 = sbr.rel (!%p517_p5) target bundleno = 183 (0xb7), region = 59 }
  0xaa   : > { %v270_v56 = vsel %vm254_vm5, %v246_v47, %v262_v52  ;;  %v271_v57 = vsel %vm255_vm6, %v247_v48, %v263_v53 }
  0xab   : > { %v272_v58 = vsel %vm256_vm7, %v248_v50, %v264_v54  ;;  %v412_v59 = vpack.c.bf16 %v270_v56, %v269_v55 }
  0xac   : > { %v413_v60 = vpack.c.bf16 %v272_v58, %v271_v57 }
  0xad   : > { %299 = vst [vmem:[%s198_s17 + $0x10] sm:$0xff] %v412_v59 }
  0xae   : > { %300 = vst [vmem:[%s198_s17 + $0x18] sm:$0xff] %v413_v60 }
  0xaf   : > { %v323_v61 = vld [vmem:[%s198_s17] sm:$0xff] (%p517_p5) }
  0xb0   : > { %v325_v62 = vld [vmem:[%s198_s17 + $0x8] sm:$0xff]  ;;  %324 = vst [vmem:[%s310_s23] sm:$0xff] %v323_v61 }
  0xb1   : > { %326 = vst [vmem:[%s310_s23 + $0x8] sm:$0xff] %v325_v62 }
  0xb4   : > { %v327_v63 = vld [vmem:[%s198_s17 + $0x10] sm:$0xff] }
  0xb5   : > { %v329_v0 = vld [vmem:[%s198_s17 + $0x18] sm:$0xff]  ;;  %328 = vst [vmem:[%s310_s23 + $0x20] sm:$0xff] %v327_v63 }
  0xb6   : > { %330 = vst [vmem:[%s310_s23 + $0x28] sm:$0xff] %v329_v0 }
  0xb7 PF: > { %p10_p10 = scmp.ge.s32.totalorder %s504_s16, 4   ;;  %s564_s12 = smov %s460_s13 }
  0xb8   : > { %s565_s13 = smov %s515_s19  ;;  %s566_s14 = smov %s504_s16 }
  0xb9   :  { %12 = sbr.rel (!%p10_p10) target bundleno = 2 (0x2), region = 113 }

// kernel: forward.12
= control target key start
LH: loop header
LB: loop body
LE: loop exit
PB: predicated region body
PF: predicated region fallthrough
CT: control target
= control target key end

     0   :  { %s320_s12 = smov 0   ;;  %s343_s0 = inlined_call_operand.vmem [shape: f32[8,1024], index: 0, kind: input, shape index: {}]   ;;  %s344_s1 = inlined_call_operand.vmem [shape: f32[8,1], index: 1, kind: input, shape index: {}]   ;;  %s345_s2 = inlined_call_operand.vmem [shape: f32[8,1], index: 2, kind: input, shape index: {}]   ;;  %s346_s3 = inlined_call_operand.vmem [shape: f32[8,1024], index: 3, kind: output, shape index: {}]  }
   0x1 LB: > { %s270_s13 = sadd.s32 4294967295, %s297_s12   ;;  %p274_p0 = scmp.ge.s32.totalorder %s297_s12, 1  ;;  %s297_s12 = sphi %s320_s12, %s13_s12  }
   0x2   : > { %p138_p1 = scmp.lt.s32.totalorder %s297_s12, 3 }
   0x4   : > { %p139_p2 = pnand %p274_p0, %p138_p1 }
   0x5   : > { %v178_v0 = vld [vmem:[%s344_s1] sm:$0xff] (!%p139_p2)  ;;  %v299_v1 = vmov (!%p139_p2), 0   ;;  %s275_s18 = sshll.u32 (!%p139_p2), %s270_s13, 2 }
   0x6   : > { %142 = sbr.rel (%p139_p2) target bundleno = 146 (0x92), region = 32  ;;  %290 = vset.pattern.permute.xlu0 (!%p139_p2), %v299_v1  ;;  %v188_v2 = vld [vmem:[%s345_s2] sm:$0xff] (!%p139_p2)  ;;  %p163_p3 = scmp.lt.s32.totalorder (!%p139_p2), %s275_s18, 7 }
   0x7   : > { %181 = vperm.xlu0 (!%p139_p2), %290, %v178_v0  }
   0xb   : > { %191 = vperm.xlu0 (!%p139_p2), %290, %v188_v2  }
   0xd   : > { %s348_s18 = smov (!%p163_p3, %s275_s18), 7 }
   0xe   : > { %s276_s19 = sshll.u32 %s348_s18, 3 }
   0xf   : > { %s166_s22 = scalar_lea.vmem %s343_s0, %s276_s19  ;;  %s172_s25 = scalar_lea.vmem %s346_s3, %s276_s19 }
  0x10   : > { %v174_v3 = vld [vmem:[%s166_s22] sm:$0xff]  ;;  %v175_v5 = vld [vmem:[%s166_s22 + $0x8] sm:$0xff]  ;;  %v176_v6 = vld [vmem:[%s166_s22 + $0x10] sm:$0xff] }
  0x11   : > { %v177_v7 = vld [vmem:[%s166_s22 + $0x18] sm:$0xff] }
  0x86   : > { %v182_v4 = vpop.permute.xlu0 %181 }
  0x87   : > { %v184_v8 = vmul.f32 %v182_v4, %v174_v3  ;;  %v185_v9 = vmul.f32 %v182_v4, %v175_v5  ;;  %v186_v10 = vmul.f32 %v182_v4, %v176_v6  ;;  %v187_v11 = vmul.f32 %v182_v4, %v177_v7 }
  0x8a   : > { %v192_v12 = vpop.permute.xlu0 %191 }
  0x8b   : > { %v194_v13 = vadd.f32 %v192_v12, %v184_v8  ;;  %v195_v14 = vadd.f32 %v192_v12, %v185_v9  ;;  %v196_v15 = vadd.f32 %v192_v12, %v186_v10  ;;  %v197_v16 = vadd.f32 %v192_v12, %v187_v11 }
  0x8d   : > { %vm198_vm0 = vcmp.ge.f32.partialorder %v194_v13, 0.0  ;;  %vm199_vm1 = vcmp.ge.f32.partialorder %v195_v14, 0.0  ;;  %v202_v17 = vmul.f32 0.01, %v194_v13  ;;  %v203_v18 = vmul.f32 0.01, %v195_v14 }
  0x8e   : > { %v204_v19 = vmul.f32 0.01, %v196_v15  ;;  %vm200_vm2 = vcmp.ge.f32.partialorder %v196_v15, 0.0  ;;  %v205_v20 = vmul.f32 0.01, %v197_v16  ;;  %vm201_vm3 = vcmp.ge.f32.partialorder %v197_v16, 0.0 }
  0x8f   : > { %v206_v21 = vsel %vm198_vm0, %v194_v13, %v202_v17  ;;  %v207_v22 = vsel %vm199_vm1, %v195_v14, %v203_v18 }
  0x90   : > { %210 = vst [vmem:[%s172_s25] sm:$0xff] %v206_v21  ;;  %v208_v23 = vsel %vm200_vm2, %v196_v15, %v204_v19  ;;  %211 = vst [vmem:[%s172_s25 + $0x8] sm:$0xff] %v207_v22  ;;  %v209_v24 = vsel %vm201_vm3, %v197_v16, %v205_v20 }
  0x91   : > { %212 = vst [vmem:[%s172_s25 + $0x10] sm:$0xff] %v208_v23  ;;  %213 = vst [vmem:[%s172_s25 + $0x18] sm:$0xff] %v209_v24 }
  0x92 PF: > { %s13_s12 = sadd.s32 1, %s297_s12  }
  0x93   : > { %p10_p4 = scmp.ge.s32.totalorder %s13_s12, 4  }
  0x95   :  { %12 = sbr.rel (!%p10_p4) target bundleno = 1 (0x1), region = 62 }

// kernel: forward.11
= control target key start
LH: loop header
LB: loop body
LE: loop exit
PB: predicated region body
PF: predicated region fallthrough
CT: control target
= control target key end

     0   :  { %s1736_s12 = smov 0   ;;  %s1738_s13 = smov 0   ;;  %s2142_s0 = inlined_call_operand.vmem [shape: bf16[432,1024], index: 0, kind: input, shape index: {}]   ;;  %s2143_s1 = inlined_call_operand.vmem [shape: bf16[8,432], index: 1, kind: input, shape index: {}]   ;;  %s2144_s2 = inlined_call_operand.vmem [shape: f32[8,1024], index: 2, kind: output, shape index: {0}]   ;;  %s2145_s3 = inlined_call_operand.vmem [shape: f32[2,8,2], index: 3, kind: output, shape index: {1}]  }
   0x1   :  { %s1740_s14 = smov 0  }
   0x2 LB: > { %s1752_s15 = sadd.s32 4294967295, %s1714_s14   ;;  %s1755_s16 = sadd.s32 1, %s1714_s14   ;;  %s1714_s14 = sphi %s1740_s14, %s2148_s14   ;;  %s1710_s13 = sphi %s1738_s13, %s2147_s13   ;;  %s1706_s12 = sphi %s1736_s12, %s2146_s12  }
   0x3   : > { %s18_s17 = ssub.s32 %s1714_s14, %s1755_s16  ;;  %s21_s18 = sadd.s32 1, %s1710_s13 }
   0x4   : > { %p19_p0 = scmp.eq.s32.totalorder %s18_s17, 0  ;;  %p28_p1 = scmp.ne.s32.totalorder %s1710_s13, %s1706_s12 }
   0x5   : > { %p29_p2 = scmp.eq.s32.totalorder %s1714_s14, 0  ;;  %p1368_p4 = scmp.ge.s32.totalorder %s1714_s14, 2 }
   0x6   : > { %s1764_s19 = scalar_select %p19_p0, %s1710_s13, %s21_s18  }
   0x7   : > { %p30_p3 = por %p29_p2, %p28_p1  ;;  %130 = sbr.rel (%p1368_p4) target bundleno = 72 (0x48), region = 20 }
   0xe   : > { %133 = sbr.rel (!%p30_p3) target bundleno = 72 (0x48), region = 24  ;;  %s135_s20 = sand.u32 (%p30_p3), 1, %s1710_s13  }
   0xf   : > { %s1491_s21 = sshll.u32 (%p30_p3), %s1714_s14, 4  ;;  %s1500_s22 = smul.u32 (%p30_p3), 864, %s135_s20 }
  0x10   : > { %s1772_s25 = scalar_lea.vmem (%p30_p3), %s2142_s0, %s1491_s21 }
  0x11   : > { %v153_v0 = vld [vmem:[%s1772_s25] sm:$0xff] (%p30_p3)  ;;  %v155_v1 = vld [vmem:[%s1772_s25 + $0x8] sm:$0xff] (%p30_p3)  ;;  %s1780_s26 = scalar_lea.vmem (%p30_p3), [#allocation2], %s1500_s22 }
  0x12   : > { %v157_v2 = vld [vmem:[%s1772_s25 + $0x20] sm:$0xff] (%p30_p3)  ;;  %v159_v3 = vld [vmem:[%s1772_s25 + $0x28] sm:$0xff] (%p30_p3)  ;;  %154 = vst [vmem:[%s1780_s26] sm:$0xff] (%p30_p3), %v153_v0  ;;  %156 = vst [vmem:[%s1780_s26 + $0x8] sm:$0xff] (%p30_p3), %v155_v1 }
  0x13   : > { %v161_v4 = vld [vmem:[%s1772_s25 + $0x40] sm:$0xff] (%p30_p3)  ;;  %v163_v5 = vld [vmem:[%s1772_s25 + $0x48] sm:$0xff] (%p30_p3)  ;;  %158 = vst [vmem:[%s1780_s26 + $0x10] sm:$0xff] (%p30_p3), %v157_v2  ;;  %160 = vst [vmem:[%s1780_s26 + $0x18] sm:$0xff] (%p30_p3), %v159_v3 }
  0x14   : > { %162 = vst [vmem:[%s1780_s26 + $0x20] sm:$0xff] (%p30_p3), %v161_v4  ;;  %164 = vst [vmem:[%s1780_s26 + $0x28] sm:$0xff] (%p30_p3), %v163_v5  ;;  %v165_v6 = vld [vmem:[%s1772_s25 + $0x60] sm:$0xff] (%p30_p3)  ;;  %v167_v7 = vld [vmem:[%s1772_s25 + $0x68] sm:$0xff] (%p30_p3) }
  0x15   : > { %v169_v8 = vld [vmem:[%s1772_s25 + $0x80] sm:$0xff]  ;;  %166 = vst [vmem:[%s1780_s26 + $0x30] sm:$0xff] %v165_v6  ;;  %168 = vst [vmem:[%s1780_s26 + $0x38] sm:$0xff] %v167_v7  ;;  %v171_v9 = vld [vmem:[%s1772_s25 + $0x88] sm:$0xff] }
  0x16   : > { %170 = vst [vmem:[%s1780_s26 + $0x40] sm:$0xff] %v169_v8  ;;  %v173_v10 = vld [vmem:[%s1772_s25 + $0xa0] sm:$0xff]  ;;  %v175_v11 = vld [vmem:[%s1772_s25 + $0xa8] sm:$0xff]  ;;  %172 = vst [vmem:[%s1780_s26 + $0x48] sm:$0xff] %v171_v9 }
  0x17   : > { %174 = vst [vmem:[%s1780_s26 + $0x50] sm:$0xff] %v173_v10  ;;  %176 = vst [vmem:[%s1780_s26 + $0x58] sm:$0xff] %v175_v11  ;;  %v177_v12 = vld [vmem:[%s1772_s25 + $0xc0] sm:$0xff]  ;;  %v179_v13 = vld [vmem:[%s1772_s25 + $0xc8] sm:$0xff] }
  0x18   : > { %v181_v14 = vld [vmem:[%s1772_s25 + $0xe0] sm:$0xff]  ;;  %178 = vst [vmem:[%s1780_s26 + $0x60] sm:$0xff] %v177_v12  ;;  %180 = vst [vmem:[%s1780_s26 + $0x68] sm:$0xff] %v179_v13  ;;  %v183_v15 = vld [vmem:[%s1772_s25 + $0xe8] sm:$0xff] }
  0x19   : > { %182 = vst [vmem:[%s1780_s26 + $0x70] sm:$0xff] %v181_v14  ;;  %v185_v16 = vld [vmem:[%s1772_s25 + $0x100] sm:$0xff]  ;;  %v187_v17 = vld [vmem:[%s1772_s25 + $0x108] sm:$0xff]  ;;  %184 = vst [vmem:[%s1780_s26 + $0x78] sm:$0xff] %v183_v15 }
  0x1a   : > { %186 = vst [vmem:[%s1780_s26 + $0x80] sm:$0xff] %v185_v16  ;;  %188 = vst [vmem:[%s1780_s26 + $0x88] sm:$0xff] %v187_v17  ;;  %v189_v18 = vld [vmem:[%s1772_s25 + $0x120] sm:$0xff]  ;;  %v191_v19 = vld [vmem:[%s1772_s25 + $0x128] sm:$0xff] }
  0x1b   : > { %v193_v20 = vld [vmem:[%s1772_s25 + $0x140] sm:$0xff]  ;;  %190 = vst [vmem:[%s1780_s26 + $0x90] sm:$0xff] %v189_v18  ;;  %192 = vst [vmem:[%s1780_s26 + $0x98] sm:$0xff] %v191_v19  ;;  %v195_v21 = vld [vmem:[%s1772_s25 + $0x148] sm:$0xff] }
  0x1c   : > { %194 = vst [vmem:[%s1780_s26 + $0xa0] sm:$0xff] %v193_v20  ;;  %v197_v22 = vld [vmem:[%s1772_s25 + $0x160] sm:$0xff]  ;;  %v199_v23 = vld [vmem:[%s1772_s25 + $0x168] sm:$0xff]  ;;  %196 = vst [vmem:[%s1780_s26 + $0xa8] sm:$0xff] %v195_v21 }
  0x1d   : > { %198 = vst [vmem:[%s1780_s26 + $0xb0] sm:$0xff] %v197_v22  ;;  %200 = vst [vmem:[%s1780_s26 + $0xb8] sm:$0xff] %v199_v23  ;;  %v201_v24 = vld [vmem:[%s1772_s25 + $0x180] sm:$0xff]  ;;  %v203_v25 = vld [vmem:[%s1772_s25 + $0x188] sm:$0xff] }
  0x1e   : > { %v205_v26 = vld [vmem:[%s1772_s25 + $0x1a0] sm:$0xff]  ;;  %202 = vst [vmem:[%s1780_s26 + $0xc0] sm:$0xff] %v201_v24  ;;  %204 = vst [vmem:[%s1780_s26 + $0xc8] sm:$0xff] %v203_v25  ;;  %v207_v27 = vld [vmem:[%s1772_s25 + $0x1a8] sm:$0xff] }
  0x1f   : > { %206 = vst [vmem:[%s1780_s26 + $0xd0] sm:$0xff] %v205_v26  ;;  %v209_v28 = vld [vmem:[%s1772_s25 + $0x1c0] sm:$0xff]  ;;  %v211_v29 = vld [vmem:[%s1772_s25 + $0x1c8] sm:$0xff]  ;;  %208 = vst [vmem:[%s1780_s26 + $0xd8] sm:$0xff] %v207_v27 }
  0x20   : > { %210 = vst [vmem:[%s1780_s26 + $0xe0] sm:$0xff] %v209_v28  ;;  %212 = vst [vmem:[%s1780_s26 + $0xe8] sm:$0xff] %v211_v29  ;;  %v213_v30 = vld [vmem:[%s1772_s25 + $0x1e0] sm:$0xff]  ;;  %v215_v31 = vld [vmem:[%s1772_s25 + $0x1e8] sm:$0xff] }
  0x21   : > { %v217_v32 = vld [vmem:[%s1772_s25 + $0x200] sm:$0xff]  ;;  %214 = vst [vmem:[%s1780_s26 + $0xf0] sm:$0xff] %v213_v30  ;;  %216 = vst [vmem:[%s1780_s26 + $0xf8] sm:$0xff] %v215_v31  ;;  %v219_v33 = vld [vmem:[%s1772_s25 + $0x208] sm:$0xff] }
  0x22   : > { %218 = vst [vmem:[%s1780_s26 + $0x100] sm:$0xff] %v217_v32  ;;  %v221_v34 = vld [vmem:[%s1772_s25 + $0x220] sm:$0xff]  ;;  %v223_v35 = vld [vmem:[%s1772_s25 + $0x228] sm:$0xff]  ;;  %220 = vst [vmem:[%s1780_s26 + $0x108] sm:$0xff] %v219_v33 }
  0x23   : > { %222 = vst [vmem:[%s1780_s26 + $0x110] sm:$0xff] %v221_v34  ;;  %224 = vst [vmem:[%s1780_s26 + $0x118] sm:$0xff] %v223_v35  ;;  %v225_v36 = vld [vmem:[%s1772_s25 + $0x240] sm:$0xff]  ;;  %v227_v37 = vld [vmem:[%s1772_s25 + $0x248] sm:$0xff] }
  0x24   : > { %v229_v38 = vld [vmem:[%s1772_s25 + $0x260] sm:$0xff]  ;;  %226 = vst [vmem:[%s1780_s26 + $0x120] sm:$0xff] %v225_v36  ;;  %228 = vst [vmem:[%s1780_s26 + $0x128] sm:$0xff] %v227_v37  ;;  %v231_v39 = vld [vmem:[%s1772_s25 + $0x268] sm:$0xff] }
  0x25   : > { %230 = vst [vmem:[%s1780_s26 + $0x130] sm:$0xff] %v229_v38  ;;  %v233_v40 = vld [vmem:[%s1772_s25 + $0x280] sm:$0xff]  ;;  %v235_v41 = vld [vmem:[%s1772_s25 + $0x288] sm:$0xff]  ;;  %232 = vst [vmem:[%s1780_s26 + $0x138] sm:$0xff] %v231_v39 }
  0x26   : > { %234 = vst [vmem:[%s1780_s26 + $0x140] sm:$0xff] %v233_v40  ;;  %236 = vst [vmem:[%s1780_s26 + $0x148] sm:$0xff] %v235_v41  ;;  %v237_v42 = vld [vmem:[%s1772_s25 + $0x2a0] sm:$0xff]  ;;  %v239_v43 = vld [vmem:[%s1772_s25 + $0x2a8] sm:$0xff] }
  0x27   : > { %v241_v44 = vld [vmem:[%s1772_s25 + $0x2c0] sm:$0xff]  ;;  %238 = vst [vmem:[%s1780_s26 + $0x150] sm:$0xff] %v237_v42  ;;  %240 = vst [vmem:[%s1780_s26 + $0x158] sm:$0xff] %v239_v43  ;;  %v243_v45 = vld [vmem:[%s1772_s25 + $0x2c8] sm:$0xff] }
  0x28   : > { %242 = vst [vmem:[%s1780_s26 + $0x160] sm:$0xff] %v241_v44  ;;  %v245_v46 = vld [vmem:[%s1772_s25 + $0x2e0] sm:$0xff]  ;;  %v247_v47 = vld [vmem:[%s1772_s25 + $0x2e8] sm:$0xff]  ;;  %244 = vst [vmem:[%s1780_s26 + $0x168] sm:$0xff] %v243_v45 }
  0x29   : > { %246 = vst [vmem:[%s1780_s26 + $0x170] sm:$0xff] %v245_v46  ;;  %248 = vst [vmem:[%s1780_s26 + $0x178] sm:$0xff] %v247_v47  ;;  %v249_v48 = vld [vmem:[%s1772_s25 + $0x300] sm:$0xff]  ;;  %v251_v49 = vld [vmem:[%s1772_s25 + $0x308] sm:$0xff] }
  0x2a   : > { %v253_v50 = vld [vmem:[%s1772_s25 + $0x320] sm:$0xff]  ;;  %250 = vst [vmem:[%s1780_s26 + $0x180] sm:$0xff] %v249_v48  ;;  %252 = vst [vmem:[%s1780_s26 + $0x188] sm:$0xff] %v251_v49  ;;  %v255_v51 = vld [vmem:[%s1772_s25 + $0x328] sm:$0xff] }
  0x2b   : > { %254 = vst [vmem:[%s1780_s26 + $0x190] sm:$0xff] %v253_v50  ;;  %v257_v52 = vld [vmem:[%s1772_s25 + $0x340] sm:$0xff]  ;;  %v259_v53 = vld [vmem:[%s1772_s25 + $0x348] sm:$0xff]  ;;  %256 = vst [vmem:[%s1780_s26 + $0x198] sm:$0xff] %v255_v51 }
  0x2c   : > { %258 = vst [vmem:[%s1780_s26 + $0x1a0] sm:$0xff] %v257_v52  ;;  %260 = vst [vmem:[%s1780_s26 + $0x1a8] sm:$0xff] %v259_v53  ;;  %v261_v54 = vld [vmem:[%s1772_s25 + $0x360] sm:$0xff]  ;;  %v263_v55 = vld [vmem:[%s1772_s25 + $0x368] sm:$0xff] }
  0x2d   : > { %v265_v56 = vld [vmem:[%s1772_s25 + $0x380] sm:$0xff]  ;;  %262 = vst [vmem:[%s1780_s26 + $0x1b0] sm:$0xff] %v261_v54  ;;  %264 = vst [vmem:[%s1780_s26 + $0x1b8] sm:$0xff] %v263_v55  ;;  %v267_v57 = vld [vmem:[%s1772_s25 + $0x388] sm:$0xff] }
  0x2e   : > { %266 = vst [vmem:[%s1780_s26 + $0x1c0] sm:$0xff] %v265_v56  ;;  %v269_v58 = vld [vmem:[%s1772_s25 + $0x3a0] sm:$0xff]  ;;  %v271_v59 = vld [vmem:[%s1772_s25 + $0x3a8] sm:$0xff]  ;;  %268 = vst [vmem:[%s1780_s26 + $0x1c8] sm:$0xff] %v267_v57 }
  0x2f   : > { %270 = vst [vmem:[%s1780_s26 + $0x1d0] sm:$0xff] %v269_v58  ;;  %272 = vst [vmem:[%s1780_s26 + $0x1d8] sm:$0xff] %v271_v59  ;;  %v273_v60 = vld [vmem:[%s1772_s25 + $0x3c0] sm:$0xff]  ;;  %v275_v61 = vld [vmem:[%s1772_s25 + $0x3c8] sm:$0xff] }
  0x30   : > { %v277_v62 = vld [vmem:[%s1772_s25 + $0x3e0] sm:$0xff]  ;;  %274 = vst [vmem:[%s1780_s26 + $0x1e0] sm:$0xff] %v273_v60  ;;  %276 = vst [vmem:[%s1780_s26 + $0x1e8] sm:$0xff] %v275_v61  ;;  %v279_v63 = vld [vmem:[%s1772_s25 + $0x3e8] sm:$0xff] }
  0x31   : > { %278 = vst [vmem:[%s1780_s26 + $0x1f0] sm:$0xff] %v277_v62  ;;  %v281_v0 = vld [vmem:[%s1772_s25 + $0x400] sm:$0xff]  ;;  %v283_v1 = vld [vmem:[%s1772_s25 + $0x408] sm:$0xff]  ;;  %280 = vst [vmem:[%s1780_s26 + $0x1f8] sm:$0xff] %v279_v63 }
  0x32   : > { %282 = vst [vmem:[%s1780_s26 + $0x200] sm:$0xff] %v281_v0  ;;  %284 = vst [vmem:[%s1780_s26 + $0x208] sm:$0xff] %v283_v1  ;;  %v285_v2 = vld [vmem:[%s1772_s25 + $0x420] sm:$0xff]  ;;  %v287_v3 = vld [vmem:[%s1772_s25 + $0x428] sm:$0xff] }
  0x33   : > { %v289_v4 = vld [vmem:[%s1772_s25 + $0x440] sm:$0xff]  ;;  %286 = vst [vmem:[%s1780_s26 + $0x210] sm:$0xff] %v285_v2  ;;  %288 = vst [vmem:[%s1780_s26 + $0x218] sm:$0xff] %v287_v3  ;;  %v291_v5 = vld [vmem:[%s1772_s25 + $0x448] sm:$0xff] }
  0x34   : > { %290 = vst [vmem:[%s1780_s26 + $0x220] sm:$0xff] %v289_v4  ;;  %v293_v6 = vld [vmem:[%s1772_s25 + $0x460] sm:$0xff]  ;;  %v295_v7 = vld [vmem:[%s1772_s25 + $0x468] sm:$0xff]  ;;  %292 = vst [vmem:[%s1780_s26 + $0x228] sm:$0xff] %v291_v5 }
  0x35   : > { %294 = vst [vmem:[%s1780_s26 + $0x230] sm:$0xff] %v293_v6  ;;  %296 = vst [vmem:[%s1780_s26 + $0x238] sm:$0xff] %v295_v7  ;;  %v297_v8 = vld [vmem:[%s1772_s25 + $0x480] sm:$0xff]  ;;  %v299_v9 = vld [vmem:[%s1772_s25 + $0x488] sm:$0xff] }
  0x36   : > { %v301_v10 = vld [vmem:[%s1772_s25 + $0x4a0] sm:$0xff]  ;;  %298 = vst [vmem:[%s1780_s26 + $0x240] sm:$0xff] %v297_v8  ;;  %300 = vst [vmem:[%s1780_s26 + $0x248] sm:$0xff] %v299_v9  ;;  %v303_v11 = vld [vmem:[%s1772_s25 + $0x4a8] sm:$0xff] }
  0x37   : > { %302 = vst [vmem:[%s1780_s26 + $0x250] sm:$0xff] %v301_v10  ;;  %v305_v12 = vld [vmem:[%s1772_s25 + $0x4c0] sm:$0xff]  ;;  %v307_v13 = vld [vmem:[%s1772_s25 + $0x4c8] sm:$0xff]  ;;  %304 = vst [vmem:[%s1780_s26 + $0x258] sm:$0xff] %v303_v11 }
  0x38   : > { %306 = vst [vmem:[%s1780_s26 + $0x260] sm:$0xff] %v305_v12  ;;  %308 = vst [vmem:[%s1780_s26 + $0x268] sm:$0xff] %v307_v13  ;;  %v309_v14 = vld [vmem:[%s1772_s25 + $0x4e0] sm:$0xff]  ;;  %v311_v15 = vld [vmem:[%s1772_s25 + $0x4e8] sm:$0xff] }
  0x39   : > { %v313_v16 = vld [vmem:[%s1772_s25 + $0x500] sm:$0xff]  ;;  %310 = vst [vmem:[%s1780_s26 + $0x270] sm:$0xff] %v309_v14  ;;  %312 = vst [vmem:[%s1780_s26 + $0x278] sm:$0xff] %v311_v15  ;;  %v315_v17 = vld [vmem:[%s1772_s25 + $0x508] sm:$0xff] }
  0x3a   : > { %314 = vst [vmem:[%s1780_s26 + $0x280] sm:$0xff] %v313_v16  ;;  %v317_v18 = vld [vmem:[%s1772_s25 + $0x520] sm:$0xff]  ;;  %v319_v19 = vld [vmem:[%s1772_s25 + $0x528] sm:$0xff]  ;;  %316 = vst [vmem:[%s1780_s26 + $0x288] sm:$0xff] %v315_v17 }
  0x3b   : > { %318 = vst [vmem:[%s1780_s26 + $0x290] sm:$0xff] %v317_v18  ;;  %320 = vst [vmem:[%s1780_s26 + $0x298] sm:$0xff] %v319_v19  ;;  %v321_v20 = vld [vmem:[%s1772_s25 + $0x540] sm:$0xff]  ;;  %v323_v21 = vld [vmem:[%s1772_s25 + $0x548] sm:$0xff] }
  0x3c   : > { %v325_v22 = vld [vmem:[%s1772_s25 + $0x560] sm:$0xff]  ;;  %322 = vst [vmem:[%s1780_s26 + $0x2a0] sm:$0xff] %v321_v20  ;;  %324 = vst [vmem:[%s1780_s26 + $0x2a8] sm:$0xff] %v323_v21  ;;  %v327_v23 = vld [vmem:[%s1772_s25 + $0x568] sm:$0xff] }
  0x3d   : > { %326 = vst [vmem:[%s1780_s26 + $0x2b0] sm:$0xff] %v325_v22  ;;  %v329_v24 = vld [vmem:[%s1772_s25 + $0x580] sm:$0xff]  ;;  %v331_v25 = vld [vmem:[%s1772_s25 + $0x588] sm:$0xff]  ;;  %328 = vst [vmem:[%s1780_s26 + $0x2b8] sm:$0xff] %v327_v23 }
  0x3e   : > { %330 = vst [vmem:[%s1780_s26 + $0x2c0] sm:$0xff] %v329_v24  ;;  %332 = vst [vmem:[%s1780_s26 + $0x2c8] sm:$0xff] %v331_v25  ;;  %v333_v26 = vld [vmem:[%s1772_s25 + $0x5a0] sm:$0xff]  ;;  %v335_v27 = vld [vmem:[%s1772_s25 + $0x5a8] sm:$0xff] }
  0x3f   : > { %v337_v28 = vld [vmem:[%s1772_s25 + $0x5c0] sm:$0xff]  ;;  %334 = vst [vmem:[%s1780_s26 + $0x2d0] sm:$0xff] %v333_v26  ;;  %336 = vst [vmem:[%s1780_s26 + $0x2d8] sm:$0xff] %v335_v27  ;;  %v339_v29 = vld [vmem:[%s1772_s25 + $0x5c8] sm:$0xff] }
  0x40   : > { %338 = vst [vmem:[%s1780_s26 + $0x2e0] sm:$0xff] %v337_v28  ;;  %v341_v30 = vld [vmem:[%s1772_s25 + $0x5e0] sm:$0xff]  ;;  %v343_v31 = vld [vmem:[%s1772_s25 + $0x5e8] sm:$0xff]  ;;  %340 = vst [vmem:[%s1780_s26 + $0x2e8] sm:$0xff] %v339_v29 }
  0x41   : > { %342 = vst [vmem:[%s1780_s26 + $0x2f0] sm:$0xff] %v341_v30  ;;  %344 = vst [vmem:[%s1780_s26 + $0x2f8] sm:$0xff] %v343_v31  ;;  %v345_v32 = vld [vmem:[%s1772_s25 + $0x600] sm:$0xff]  ;;  %v347_v33 = vld [vmem:[%s1772_s25 + $0x608] sm:$0xff] }
  0x42   : > { %v349_v34 = vld [vmem:[%s1772_s25 + $0x620] sm:$0xff]  ;;  %346 = vst [vmem:[%s1780_s26 + $0x300] sm:$0xff] %v345_v32  ;;  %348 = vst [vmem:[%s1780_s26 + $0x308] sm:$0xff] %v347_v33  ;;  %v351_v35 = vld [vmem:[%s1772_s25 + $0x628] sm:$0xff] }
  0x43   : > { %350 = vst [vmem:[%s1780_s26 + $0x310] sm:$0xff] %v349_v34  ;;  %v353_v36 = vld [vmem:[%s1772_s25 + $0x640] sm:$0xff]  ;;  %v355_v37 = vld [vmem:[%s1772_s25 + $0x648] sm:$0xff]  ;;  %352 = vst [vmem:[%s1780_s26 + $0x318] sm:$0xff] %v351_v35 }
  0x44   : > { %354 = vst [vmem:[%s1780_s26 + $0x320] sm:$0xff] %v353_v36  ;;  %356 = vst [vmem:[%s1780_s26 + $0x328] sm:$0xff] %v355_v37  ;;  %v357_v38 = vld [vmem:[%s1772_s25 + $0x660] sm:$0xff]  ;;  %v359_v39 = vld [vmem:[%s1772_s25 + $0x668] sm:$0xff] }
  0x45   : > { %v361_v40 = vld [vmem:[%s1772_s25 + $0x680] sm:$0xff]  ;;  %358 = vst [vmem:[%s1780_s26 + $0x330] sm:$0xff] %v357_v38  ;;  %360 = vst [vmem:[%s1780_s26 + $0x338] sm:$0xff] %v359_v39  ;;  %v363_v41 = vld [vmem:[%s1772_s25 + $0x688] sm:$0xff] }
  0x46   : > { %362 = vst [vmem:[%s1780_s26 + $0x340] sm:$0xff] %v361_v40  ;;  %v365_v42 = vld [vmem:[%s1772_s25 + $0x6a0] sm:$0xff]  ;;  %v367_v43 = vld [vmem:[%s1772_s25 + $0x6a8] sm:$0xff]  ;;  %364 = vst [vmem:[%s1780_s26 + $0x348] sm:$0xff] %v363_v41 }
  0x47   : > { %366 = vst [vmem:[%s1780_s26 + $0x350] sm:$0xff] %v365_v42  ;;  %368 = vst [vmem:[%s1780_s26 + $0x358] sm:$0xff] %v367_v43 }
  0x48 PF: > { %p1371_p5 = scmp.ge.s32.totalorder %s1714_s14, 1  ;;  %p373_p6 = scmp.lt.s32.totalorder %s1714_s14, 3 }
  0x4a   : > { %p374_p7 = pnand %p1371_p5, %p373_p6 }
  0x4b   : > { %s380_s27 = sand.u32 (!%p374_p7), 1, %s1706_s12   ;;  %v1998_v44 = vld [vmem:[%s2143_s1] sm:$0xff] (!%p374_p7)  ;;  %vm1082_vm0 = vcmask (!%p374_p7), 392192   ;;  %s1372_s7 = sshll.u32 (!%p374_p7), %s1752_s15, 2  ;;  %vm1268_vm1 = vcmask (!%p374_p7), 7168   ;;  %vm1270_vm2 = vcmask (!%p374_p7), 15360  }
  0x4c   : > { %377 = sbr.rel (%p374_p7) target bundleno = 556 (0x22c), region = 47  ;;  %v1376_v45 = vcombine.high (!%p374_p7), %v1998_v44, %v1998_v44  ;;  %p409_p8 = scmp.lt.s32.totalorder (!%p374_p7), %s1372_s7, 7 }
  0x4d   : > { %s1501_s30 = smul.u32 (!%p374_p7), 864, %s380_s27  ;;  %p414_p9 = scmp.lt.s32.totalorder (!%p374_p7), %s1752_s15, 1 }
  0x4e   : > { %1118 = vmatprep.mubr.bf16.mxu0 (!%p374_p7), %v1376_v45  ;;  %1200 = vmatprep.mubr.bf16.mxu1 (!%p374_p7), %v1376_v45 }
  0x4f   : > { %s2002_s4 = scalar_lea.vmem (!%p374_p7), [#allocation2], %s1501_s30 }
  0x50   : > { %v1526_v46 = vld [vmem:[%s2002_s4 + $0x4] ss:$16 sps:$4 sm:$0xff] (!%p374_p7)   ;;  %v1528_v47 = vld [vmem:[%s2002_s4 + $0xc] ss:$16 sps:$4 sm:$0xff] (!%p374_p7)   ;;  %v1530_v48 = vld [vmem:[%s2002_s4] ss:$16 sps:$4 sm:$0xff] (!%p374_p7)  }
  0x51   : > { %1086 = vmatprep.subr.bf16.mxu0 (!%p374_p7), %v1526_v46  ;;  %v1531_v49 = vld [vmem:[%s2002_s4 + $0x8] ss:$16 sps:$4 sm:$0xff] (!%p374_p7)   ;;  %1168 = vmatprep.subr.bf16.mxu1 (!%p374_p7), %v1528_v47  ;;  %v1532_v50 = vld [vmem:[%s2002_s4 + $0x24] ss:$16 sps:$4 sm:$0xff] (!%p374_p7)   ;;  %v1534_v51 = vld [vmem:[%s2002_s4 + $0x2c] ss:$16 sps:$4 sm:$0xff] (!%p374_p7)  }
  0x52   : > { %1087 = vmatpush1.bf16.msra.mxu0 (!%p374_p7), %v1530_v48  ;;  %1169 = vmatpush1.bf16.msra.mxu1 (!%p374_p7), %v1531_v49  ;;  %v1536_v52 = vld [vmem:[%s2002_s4 + $0x20] ss:$16 sps:$4 sm:$0xff] (!%p374_p7)   ;;  %v1537_v53 = vld [vmem:[%s2002_s4 + $0x28] ss:$16 sps:$4 sm:$0xff] (!%p374_p7)   ;;  %v1538_v54 = vld [vmem:[%s2002_s4 + $0x44] ss:$16 sps:$4 sm:$0xff] (!%p374_p7)  }
  0x53   : > { %1088 = vmatprep.subr.bf16.mxu0 %v1532_v50  ;;  %1170 = vmatprep.subr.bf16.mxu1 %v1534_v51  ;;  %v1540_v55 = vld [vmem:[%s2002_s4 + $0x4c] ss:$16 sps:$4 sm:$0xff]   ;;  %v1542_v56 = vld [vmem:[%s2002_s4 + $0x40] ss:$16 sps:$4 sm:$0xff]   ;;  %v1543_v57 = vld [vmem:[%s2002_s4 + $0x48] ss:$16 sps:$4 sm:$0xff]   ;;  %v1375_v50 = vcombine.low %v1998_v44, %v1998_v44 }
  0x54   : > { %v1544_v58 = vld [vmem:[%s2002_s4 + $0x64] ss:$16 sps:$4 sm:$0xff]   ;;  %v1546_v59 = vld [vmem:[%s2002_s4 + $0x6c] ss:$16 sps:$4 sm:$0xff]   ;;  %v1548_v60 = vld [vmem:[%s2002_s4 + $0x60] ss:$16 sps:$4 sm:$0xff]  }
  0x55   : > { %v1549_v61 = vld [vmem:[%s2002_s4 + $0x68] ss:$16 sps:$4 sm:$0xff]   ;;  %v1550_v62 = vld [vmem:[%s2002_s4 + $0x84] ss:$16 sps:$4 sm:$0xff]   ;;  %v1552_v63 = vld [vmem:[%s2002_s4 + $0x8c] ss:$16 sps:$4 sm:$0xff]  }
  0x56   : > { %1089 = vmatpush1.bf16.msra.mxu0 %v1536_v52  ;;  %1171 = vmatpush1.bf16.msra.mxu1 %v1537_v53  ;;  %v1554_v0 = vld [vmem:[%s2002_s4 + $0x80] ss:$16 sps:$4 sm:$0xff]   ;;  %v1555_v1 = vld [vmem:[%s2002_s4 + $0x88] ss:$16 sps:$4 sm:$0xff]   ;;  %v1556_v2 = vld [vmem:[%s2002_s4 + $0xa4] ss:$16 sps:$4 sm:$0xff]  }
  0x57   : > { %1090 = vmatprep.subr.bf16.mxu0 %v1538_v54  ;;  %1172 = vmatprep.subr.bf16.mxu1 %v1540_v55  ;;  %v1558_v3 = vld [vmem:[%s2002_s4 + $0xac] ss:$16 sps:$4 sm:$0xff]   ;;  %v1560_v4 = vld [vmem:[%s2002_s4 + $0xa0] ss:$16 sps:$4 sm:$0xff]   ;;  %v1561_v5 = vld [vmem:[%s2002_s4 + $0xa8] ss:$16 sps:$4 sm:$0xff]  }
  0x58   : > { %v1562_v6 = vld [vmem:[%s2002_s4 + $0xc4] ss:$16 sps:$4 sm:$0xff]   ;;  %v1564_v7 = vld [vmem:[%s2002_s4 + $0xcc] ss:$16 sps:$4 sm:$0xff]   ;;  %v1566_v8 = vld [vmem:[%s2002_s4 + $0xc0] ss:$16 sps:$4 sm:$0xff]  }
  0x59   : > { %v1567_v9 = vld [vmem:[%s2002_s4 + $0xc8] ss:$16 sps:$4 sm:$0xff]   ;;  %v1568_v10 = vld [vmem:[%s2002_s4 + $0xe4] ss:$16 sps:$4 sm:$0xff]   ;;  %v1570_v11 = vld [vmem:[%s2002_s4 + $0xec] ss:$16 sps:$4 sm:$0xff]  }
  0x5a   : > { %1091 = vmatpush1.bf16.msra.mxu0 %v1542_v56  ;;  %1173 = vmatpush1.bf16.msra.mxu1 %v1543_v57  ;;  %v1572_v12 = vld [vmem:[%s2002_s4 + $0xe0] ss:$16 sps:$4 sm:$0xff]   ;;  %v1573_v13 = vld [vmem:[%s2002_s4 + $0xe8] ss:$16 sps:$4 sm:$0xff]   ;;  %v1574_v14 = vld [vmem:[%s2002_s4 + $0x104] ss:$16 sps:$4 sm:$0xff]  }
  0x5b   : > { %1092 = vmatprep.subr.bf16.mxu0 %v1544_v58  ;;  %1174 = vmatprep.subr.bf16.mxu1 %v1546_v59  ;;  %v1576_v15 = vld [vmem:[%s2002_s4 + $0x10c] ss:$16 sps:$4 sm:$0xff]   ;;  %v1578_v16 = vld [vmem:[%s2002_s4 + $0x100] ss:$16 sps:$4 sm:$0xff]   ;;  %v1579_v17 = vld [vmem:[%s2002_s4 + $0x108] ss:$16 sps:$4 sm:$0xff]  }
  0x5c   : > { %v1580_v18 = vld [vmem:[%s2002_s4 + $0x124] ss:$16 sps:$4 sm:$0xff]   ;;  %v1582_v19 = vld [vmem:[%s2002_s4 + $0x12c] ss:$16 sps:$4 sm:$0xff]   ;;  %v1584_v20 = vld [vmem:[%s2002_s4 + $0x120] ss:$16 sps:$4 sm:$0xff]  }
  0x5d   : > { %v1585_v21 = vld [vmem:[%s2002_s4 + $0x128] ss:$16 sps:$4 sm:$0xff]   ;;  %v1586_v22 = vld [vmem:[%s2002_s4 + $0x144] ss:$16 sps:$4 sm:$0xff]   ;;  %v1588_v23 = vld [vmem:[%s2002_s4 + $0x14c] ss:$16 sps:$4 sm:$0xff]  }
  0x5e   : > { %1093 = vmatpush1.bf16.msra.mxu0 %v1548_v60  ;;  %1175 = vmatpush1.bf16.msra.mxu1 %v1549_v61  ;;  %v1590_v24 = vld [vmem:[%s2002_s4 + $0x140] ss:$16 sps:$4 sm:$0xff]   ;;  %v1591_v25 = vld [vmem:[%s2002_s4 + $0x148] ss:$16 sps:$4 sm:$0xff]   ;;  %v1592_v26 = vld [vmem:[%s2002_s4 + $0x164] ss:$16 sps:$4 sm:$0xff]  }
  0x5f   : > { %1094 = vmatprep.subr.bf16.mxu0 %v1550_v62  ;;  %1176 = vmatprep.subr.bf16.mxu1 %v1552_v63  ;;  %v1594_v27 = vld [vmem:[%s2002_s4 + $0x16c] ss:$16 sps:$4 sm:$0xff]   ;;  %v1596_v28 = vld [vmem:[%s2002_s4 + $0x160] ss:$16 sps:$4 sm:$0xff]   ;;  %v1597_v29 = vld [vmem:[%s2002_s4 + $0x168] ss:$16 sps:$4 sm:$0xff]  }
  0x60   : > { %v1598_v30 = vld [vmem:[%s2002_s4 + $0x184] ss:$16 sps:$4 sm:$0xff]   ;;  %v1600_v31 = vld [vmem:[%s2002_s4 + $0x18c] ss:$16 sps:$4 sm:$0xff]   ;;  %v1602_v32 = vld [vmem:[%s2002_s4 + $0x180] ss:$16 sps:$4 sm:$0xff]  }
  0x61   : > { %v1603_v33 = vld [vmem:[%s2002_s4 + $0x188] ss:$16 sps:$4 sm:$0xff]   ;;  %v1604_v34 = vld [vmem:[%s2002_s4 + $0x1a4] ss:$16 sps:$4 sm:$0xff]   ;;  %v1606_v35 = vld [vmem:[%s2002_s4 + $0x1ac] ss:$16 sps:$4 sm:$0xff]  }
  0x62   : > { %1095 = vmatpush1.bf16.msra.mxu0 %v1554_v0  ;;  %1177 = vmatpush1.bf16.msra.mxu1 %v1555_v1  ;;  %v1608_v36 = vld [vmem:[%s2002_s4 + $0x1a0] ss:$16 sps:$4 sm:$0xff]   ;;  %v1609_v37 = vld [vmem:[%s2002_s4 + $0x1a8] ss:$16 sps:$4 sm:$0xff]   ;;  %v1610_v38 = vld [vmem:[%s2002_s4 + $0x1c4] ss:$16 sps:$4 sm:$0xff]  }
  0x63   : > { %1096 = vmatprep.subr.bf16.mxu0 %v1556_v2  ;;  %1178 = vmatprep.subr.bf16.mxu1 %v1558_v3  ;;  %v1612_v39 = vld [vmem:[%s2002_s4 + $0x1cc] ss:$16 sps:$4 sm:$0xff]   ;;  %v1614_v40 = vld [vmem:[%s2002_s4 + $0x1c0] ss:$16 sps:$4 sm:$0xff]   ;;  %v1615_v41 = vld [vmem:[%s2002_s4 + $0x1c8] ss:$16 sps:$4 sm:$0xff]  }
  0x64   : > { %v1616_v42 = vld [vmem:[%s2002_s4 + $0x1e4] ss:$16 sps:$4 sm:$0xff]   ;;  %v1618_v43 = vld [vmem:[%s2002_s4 + $0x1ec] ss:$16 sps:$4 sm:$0xff]   ;;  %v1620_v45 = vld [vmem:[%s2002_s4 + $0x1e0] ss:$16 sps:$4 sm:$0xff]  }
  0x65   : > { %v1621_v46 = vld [vmem:[%s2002_s4 + $0x1e8] ss:$16 sps:$4 sm:$0xff]   ;;  %v1626_v47 = vld [vmem:[%s2002_s4 + $0x204] ss:$16 sps:$4 sm:$0xff]   ;;  %v1629_v48 = vld [vmem:[%s2002_s4 + $0x20c] ss:$16 sps:$4 sm:$0xff]  }
  0x66   : > { %1097 = vmatpush1.bf16.msra.mxu0 %v1560_v4  ;;  %1179 = vmatpush1.bf16.msra.mxu1 %v1561_v5  ;;  %v2073_v49 = vld [vmem:[%s2143_s1 + $0x8] sm:$0xff]  ;;  %v1624_v51 = vld [vmem:[%s2002_s4 + $0x200] ss:$16 sps:$4 sm:$0xff]   ;;  %v1632_v53 = vld [vmem:[%s2002_s4 + $0x224] ss:$16 sps:$4 sm:$0xff]   ;;  %s2150_s7 = smov (!%p409_p8, %s1372_s7), 7 }
  0x67   : > { %1098 = vmatprep.subr.bf16.mxu0 %v1562_v6  ;;  %1180 = vmatprep.subr.bf16.mxu1 %v1564_v7  ;;  %v1627_v52 = vld [vmem:[%s2002_s4 + $0x208] ss:$16 sps:$4 sm:$0xff]   ;;  %v1635_v54 = vld [vmem:[%s2002_s4 + $0x22c] ss:$16 sps:$4 sm:$0xff]   ;;  %v1378_v55 = vcombine.high %v2073_v49, %v2073_v49  ;;  %v1630_v56 = vld [vmem:[%s2002_s4 + $0x220] ss:$16 sps:$4 sm:$0xff]  }
  0x68   : > { %v1633_v57 = vld [vmem:[%s2002_s4 + $0x228] ss:$16 sps:$4 sm:$0xff]   ;;  %v1638_v44 = vld [vmem:[%s2002_s4 + $0x244] ss:$16 sps:$4 sm:$0xff]   ;;  %v1641_v58 = vld [vmem:[%s2002_s4 + $0x24c] ss:$16 sps:$4 sm:$0xff]  }
  0x69   : > { %v1636_v59 = vld [vmem:[%s2002_s4 + $0x240] ss:$16 sps:$4 sm:$0xff]   ;;  %v1639_v60 = vld [vmem:[%s2002_s4 + $0x248] ss:$16 sps:$4 sm:$0xff]   ;;  %v1644_v61 = vld [vmem:[%s2002_s4 + $0x264] ss:$16 sps:$4 sm:$0xff]  }
  0x6a   : > { %1099 = vmatpush1.bf16.msra.mxu0 %v1566_v8  ;;  %1181 = vmatpush1.bf16.msra.mxu1 %v1567_v9  ;;  %v1647_v62 = vld [vmem:[%s2002_s4 + $0x26c] ss:$16 sps:$4 sm:$0xff]   ;;  %v1642_v63 = vld [vmem:[%s2002_s4 + $0x260] ss:$16 sps:$4 sm:$0xff]   ;;  %v1645_v0 = vld [vmem:[%s2002_s4 + $0x268] ss:$16 sps:$4 sm:$0xff]  }
  0x6b   : > { %1100 = vmatprep.subr.bf16.mxu0 %v1568_v10  ;;  %1182 = vmatprep.subr.bf16.mxu1 %v1570_v11  ;;  %v1650_v1 = vld [vmem:[%s2002_s4 + $0x284] ss:$16 sps:$4 sm:$0xff]   ;;  %v1653_v2 = vld [vmem:[%s2002_s4 + $0x28c] ss:$16 sps:$4 sm:$0xff]   ;;  %v1648_v3 = vld [vmem:[%s2002_s4 + $0x280] ss:$16 sps:$4 sm:$0xff]  }
  0x6c   : > { %v1651_v4 = vld [vmem:[%s2002_s4 + $0x288] ss:$16 sps:$4 sm:$0xff]   ;;  %v1656_v5 = vld [vmem:[%s2002_s4 + $0x2a4] ss:$16 sps:$4 sm:$0xff]   ;;  %v1659_v6 = vld [vmem:[%s2002_s4 + $0x2ac] ss:$16 sps:$4 sm:$0xff]  }
  0x6d   : > { %v1654_v7 = vld [vmem:[%s2002_s4 + $0x2a0] ss:$16 sps:$4 sm:$0xff]   ;;  %v1657_v8 = vld [vmem:[%s2002_s4 + $0x2a8] ss:$16 sps:$4 sm:$0xff]   ;;  %v1662_v9 = vld [vmem:[%s2002_s4 + $0x2c4] ss:$16 sps:$4 sm:$0xff]  }
  0x6e   : > { %1101 = vmatpush1.bf16.msra.mxu0 %v1572_v12  ;;  %1183 = vmatpush1.bf16.msra.mxu1 %v1573_v13  ;;  %v1665_v10 = vld [vmem:[%s2002_s4 + $0x2cc] ss:$16 sps:$4 sm:$0xff]   ;;  %v1660_v11 = vld [vmem:[%s2002_s4 + $0x2c0] ss:$16 sps:$4 sm:$0xff]   ;;  %v1663_v12 = vld [vmem:[%s2002_s4 + $0x2c8] ss:$16 sps:$4 sm:$0xff]  }
  0x6f   : > { %1102 = vmatprep.subr.bf16.mxu0 %v1574_v14  ;;  %1184 = vmatprep.subr.bf16.mxu1 %v1576_v15  ;;  %v1668_v13 = vld [vmem:[%s2002_s4 + $0x2e4] ss:$16 sps:$4 sm:$0xff]   ;;  %v1671_v14 = vld [vmem:[%s2002_s4 + $0x2ec] ss:$16 sps:$4 sm:$0xff]   ;;  %v1666_v15 = vld [vmem:[%s2002_s4 + $0x2e0] ss:$16 sps:$4 sm:$0xff]  }
  0x70   : > { %s1373_s8 = sshll.u32 %s2150_s7, 3  ;;  %s2152_s15 = smov (!%p414_p9, %s1752_s15), 1 }
  0x71   : > { %s412_s11 = scalar_lea.vmem %s2144_s2, %s1373_s8  ;;  %s1374_s12 = sshll.u32 %s2152_s15, 3 }
  0x72   : > { %1103 = vmatpush1.bf16.msra.mxu0 %v1578_v16  ;;  %1185 = vmatpush1.bf16.msra.mxu1 %v1579_v17  ;;  %v1669_v16 = vld [vmem:[%s2002_s4 + $0x2e8] ss:$16 sps:$4 sm:$0xff]   ;;  %v1674_v17 = vld [vmem:[%s2002_s4 + $0x304] ss:$16 sps:$4 sm:$0xff]   ;;  %s417_s18 = scalar_lea.vmem %s2145_s3, %s1374_s12 }
  0x73   : > { %1104 = vmatprep.subr.bf16.mxu0 %v1580_v18  ;;  %1186 = vmatprep.subr.bf16.mxu1 %v1582_v19  ;;  %v1677_v18 = vld [vmem:[%s2002_s4 + $0x30c] ss:$16 sps:$4 sm:$0xff]   ;;  %v1672_v19 = vld [vmem:[%s2002_s4 + $0x300] ss:$16 sps:$4 sm:$0xff]  }
  0x76   : > { %1105 = vmatpush1.bf16.msra.mxu0 %v1584_v20  ;;  %1187 = vmatpush1.bf16.msra.mxu1 %v1585_v21  ;;  %v1675_v20 = vld [vmem:[%s2002_s4 + $0x308] ss:$16 sps:$4 sm:$0xff]   ;;  %v1680_v21 = vld [vmem:[%s2002_s4 + $0x324] ss:$16 sps:$4 sm:$0xff]  }
  0x77   : > { %1106 = vmatprep.subr.bf16.mxu0 %v1586_v22  ;;  %1188 = vmatprep.subr.bf16.mxu1 %v1588_v23  ;;  %v1683_v22 = vld [vmem:[%s2002_s4 + $0x32c] ss:$16 sps:$4 sm:$0xff]   ;;  %v1678_v23 = vld [vmem:[%s2002_s4 + $0x320] ss:$16 sps:$4 sm:$0xff]  }
  0x7a   : > { %1107 = vmatpush1.bf16.msra.mxu0 %v1590_v24  ;;  %1189 = vmatpush1.bf16.msra.mxu1 %v1591_v25  ;;  %v1681_v24 = vld [vmem:[%s2002_s4 + $0x328] ss:$16 sps:$4 sm:$0xff]   ;;  %v1686_v25 = vld [vmem:[%s2002_s4 + $0x344] ss:$16 sps:$4 sm:$0xff]  }
  0x7b   : > { %1108 = vmatprep.subr.bf16.mxu0 %v1592_v26  ;;  %1190 = vmatprep.subr.bf16.mxu1 %v1594_v27  ;;  %v1689_v26 = vld [vmem:[%s2002_s4 + $0x34c] ss:$16 sps:$4 sm:$0xff]   ;;  %v1684_v27 = vld [vmem:[%s2002_s4 + $0x340] ss:$16 sps:$4 sm:$0xff]  }
  0x7e   : > { %1109 = vmatpush1.bf16.msra.mxu0 %v1596_v28  ;;  %1191 = vmatpush1.bf16.msra.mxu1 %v1597_v29  ;;  %v1687_v28 = vld [vmem:[%s2002_s4 + $0x348] ss:$16 sps:$4 sm:$0xff]   ;;  %v1377_v29 = vcombine.low %v2073_v49, %v2073_v49 }
  0x7f   : > { %1110 = vmatprep.subr.bf16.mxu0 %v1598_v30  ;;  %1192 = vmatprep.subr.bf16.mxu1 %v1600_v31 }
  0x82   : > { %1111 = vmatpush1.bf16.msra.mxu0 %v1602_v32  ;;  %1193 = vmatpush1.bf16.msra.mxu1 %v1603_v33 }
  0x83   : > { %1112 = vmatprep.subr.bf16.mxu0 %v1604_v34  ;;  %1194 = vmatprep.subr.bf16.mxu1 %v1606_v35 }
  0x86   : > { %1113 = vmatpush1.bf16.msra.mxu0 %v1608_v36  ;;  %1195 = vmatpush1.bf16.msra.mxu1 %v1609_v37 }
  0x87   : > { %1114 = vmatprep.subr.bf16.mxu0 %v1610_v38  ;;  %1196 = vmatprep.subr.bf16.mxu1 %v1612_v39 }
  0x8a   : > { %1115 = vmatpush1.bf16.msra.mxu0 %v1614_v40  ;;  %1197 = vmatpush1.bf16.msra.mxu1 %v1615_v41 }
  0x8b   : > { %1116 = vmatprep.subr.bf16.mxu0 %v1616_v42  ;;  %1198 = vmatprep.subr.bf16.mxu1 %v1618_v43 }
  0x8e   : > { %1117 = vmatpush1.bf16.msra.mxu0 %v1620_v45  ;;  %1199 = vmatpush1.bf16.msra.mxu1 %v1621_v46 }
  0x8f   : > { %1127 = vmatprep.subr.bf16.mxu0 %v1626_v47  ;;  %1209 = vmatprep.subr.bf16.mxu1 %v1629_v48 }
  0x91   : > { %1119 = vmatmul.mubr.bf16.vlgmr.msra.gmra.mrb[0].mxu0 %v1375_v50  ;;  %1201 = vmatmul.mubr.bf16.vlgmr.msra.gmra.mrb[0].mxu1 %v1375_v50 }
  0x92   : > { %1128 = vmatpush1.bf16.msra.mxu0 %v1624_v51  ;;  %1210 = vmatpush1.bf16.msra.mxu1 %v1627_v52 }
  0x93   : > { %1129 = vmatprep.subr.bf16.mxu0 %v1632_v53  ;;  %1211 = vmatprep.subr.bf16.mxu1 %v1635_v54 }
  0x94   : > { %1487 = vmatprep.mubr.msk.bf16.mxu0 %vm1082_vm0, %v1378_v55  ;;  %1488 = vmatprep.mubr.msk.bf16.mxu1 %vm1082_vm0, %v1378_v55 }
  0x96   : > { %1130 = vmatpush1.bf16.msra.mxu0 %v1630_v56  ;;  %1212 = vmatpush1.bf16.msra.mxu1 %v1633_v57 }
  0x97   : > { %1131 = vmatprep.subr.bf16.mxu0 %v1638_v44  ;;  %1213 = vmatprep.subr.bf16.mxu1 %v1641_v58 }
  0x9a   : > { %1132 = vmatpush1.bf16.msra.mxu0 %v1636_v59  ;;  %1214 = vmatpush1.bf16.msra.mxu1 %v1639_v60 }
  0x9b   : > { %1133 = vmatprep.subr.bf16.mxu0 %v1644_v61  ;;  %1215 = vmatprep.subr.bf16.mxu1 %v1647_v62 }
  0x9e   : > { %1134 = vmatpush1.bf16.msra.mxu0 %v1642_v63  ;;  %1216 = vmatpush1.bf16.msra.mxu1 %v1645_v0 }
  0x9f   : > { %1135 = vmatprep.subr.bf16.mxu0 %v1650_v1  ;;  %1217 = vmatprep.subr.bf16.mxu1 %v1653_v2 }
  0xa2   : > { %1136 = vmatpush1.bf16.msra.mxu0 %v1648_v3  ;;  %1218 = vmatpush1.bf16.msra.mxu1 %v1651_v4 }
  0xa3   : > { %1137 = vmatprep.subr.bf16.mxu0 %v1656_v5  ;;  %1219 = vmatprep.subr.bf16.mxu1 %v1659_v6 }
  0xa6   : > { %1138 = vmatpush1.bf16.msra.mxu0 %v1654_v7  ;;  %1220 = vmatpush1.bf16.msra.mxu1 %v1657_v8 }
  0xa7   : > { %1139 = vmatprep.subr.bf16.mxu0 %v1662_v9  ;;  %1221 = vmatprep.subr.bf16.mxu1 %v1665_v10 }
  0xaa   : > { %1140 = vmatpush1.bf16.msra.mxu0 %v1660_v11  ;;  %1222 = vmatpush1.bf16.msra.mxu1 %v1663_v12 }
  0xab   : > { %1141 = vmatprep.subr.bf16.mxu0 %v1668_v13  ;;  %1223 = vmatprep.subr.bf16.mxu1 %v1671_v14 }
  0xae   : > { %1142 = vmatpush1.bf16.msra.mxu0 %v1666_v15  ;;  %1224 = vmatpush1.bf16.msra.mxu1 %v1669_v16 }
  0xaf   : > { %1143 = vmatprep.subr.bf16.mxu0 %v1674_v17  ;;  %1225 = vmatprep.subr.bf16.mxu1 %v1677_v18 }
  0xb2   : > { %1144 = vmatpush1.bf16.msra.mxu0 %v1672_v19  ;;  %1226 = vmatpush1.bf16.msra.mxu1 %v1675_v20 }
  0xb3   : > { %1145 = vmatprep.subr.bf16.mxu0 %v1680_v21  ;;  %1227 = vmatprep.subr.bf16.mxu1 %v1683_v22 }
  0xb6   : > { %1146 = vmatpush1.bf16.msra.mxu0 %v1678_v23  ;;  %1228 = vmatpush1.bf16.msra.mxu1 %v1681_v24 }
  0xb7   : > { %1147 = vmatprep.subr.bf16.mxu0 %v1686_v25  ;;  %1229 = vmatprep.subr.bf16.mxu1 %v1689_v26 }
  0xba   : > { %1148 = vmatpush1.bf16.msra.mxu0 %v1684_v27  ;;  %1230 = vmatpush1.bf16.msra.mxu1 %v1687_v28 }
  0xbd   : > { %1160 = vmatmul.mubr.bf16.vlgmr.msra.gmra.mrb[0].mxu0 %v1377_v29  ;;  %1242 = vmatmul.mubr.bf16.vlgmr.msra.gmra.mrb[0].mxu1 %v1377_v29 }
 0x190   : > { %v1161_v30 = vpop.f32.mrb[0].mxu0  ;;  %v1243_v31 = vpop.f32.mrb[0].mxu1 }
 0x191   : > { %1250 = vst [vmem:[%s412_s11] sm:$0xff] %v1161_v30  ;;  %v1259_v32 = vmul.f32 %v1161_v30, %v1161_v30  ;;  %v1163_v33 = vpop.f32.mrb[1].mxu0  ;;  %v1245_v34 = vpop.f32.mrb[1].mxu1  ;;  %1252 = vst [vmem:[%s412_s11 + $0x10] sm:$0xff] %v1243_v31  ;;  %v1261_v41 = vmul.f32 %v1243_v31, %v1243_v31 }
 0x192   : > { %1251 = vst [vmem:[%s412_s11 + $0x8] sm:$0xff] %v1163_v33  ;;  %v1254_v35 = vadd.f32 %v1163_v33, %v1161_v30  ;;  %v1260_v36 = vmul.f32 %v1163_v33, %v1163_v33  ;;  %v1165_v37 = vpop.f32.mrb[2].mxu0  ;;  %v1247_v38 = vpop.f32.mrb[2].mxu1  ;;  %1253 = vst [vmem:[%s412_s11 + $0x18] sm:$0xff] %v1245_v34  ;;  %v1262_v46 = vmul.f32 %v1245_v34, %v1245_v34 }
 0x193   : > { %v1166_v39 = vpop.f32.mrb[3].mxu0  ;;  %v1248_v40 = vpop.f32.mrb[3].mxu1 }
 0x194   : > { %v1255_v42 = vadd.f32 %v1254_v35, %v1243_v31  ;;  %v1263_v43 = vadd.f32 %v1260_v36, %v1259_v32 }
 0x196   : > { %v1256_v45 = vadd.f32 %v1255_v42, %v1245_v34  ;;  %v1264_v47 = vadd.f32 %v1263_v43, %v1261_v41 }
 0x198   : > { %1257 = vadd.xlane.f32.xlu0 %v1256_v45  ;;  %v1265_v48 = vadd.f32 %v1264_v47, %v1262_v46 }
 0x19c   : > { %1266 = vadd.xlane.f32.xlu0 %v1265_v48 }
 0x225   : > { %v1258_v49 = vpop.xlane.xlu0 %1257 }
 0x229   : > { %v1267_v50 = vpop.xlane.xlu0 %1266 }
 0x22a   : > { %v1269_v51 = vsel %vm1268_vm1, %v1258_v49, %v1267_v50 }
 0x22b   : > { %1271 = vst.msk [vmem:[%s417_s18] sm:$0xff] %vm1270_vm2, %v1269_v51 }
 0x22c PF: > { %p11_p10 = scmp.ge.s32.totalorder %s1755_s16, 4   ;;  %s2146_s12 = smov %s1710_s13 }
 0x22d   : > { %s2147_s13 = smov %s1764_s19  ;;  %s2148_s14 = smov %s1755_s16 }
 0x22e   :  { %13 = sbr.rel (!%p11_p10) target bundleno = 2 (0x2), region = 98 }

// kernel: forward.13
= control target key start
LH: loop header
LB: loop body
LE: loop exit
PB: predicated region body
PF: predicated region fallthrough
CT: control target
= control target key end

     0   :  { %s654_s24 = smov 0   ;;  %s705_s0 = inlined_call_operand.vmem [shape: f32[2,11,256], index: 0, kind: input, shape index: {}]   ;;  %s706_s1 = inlined_call_operand.vmem [shape: f32[8,11], index: 1, kind: input, shape index: {}]   ;;  %s707_s2 = inlined_call_operand.vmem [shape: f32[8,1], index: 2, kind: input, shape index: {}]   ;;  %s708_s3 = inlined_call_operand.vmem [shape: f32[8,1], index: 3, kind: input, shape index: {}]   ;;  %s709_s4 = inlined_call_operand.vmem [shape: f32[8,1], index: 4, kind: input, shape index: {}]   ;;  %s710_s5 = inlined_call_operand.vmem [shape: f32[16,8], index: 5, kind: input, shape index: {}]   ;;  %s711_s6 = inlined_call_operand.vmem [shape: f32[16,1], index: 6, kind: input, shape index: {}]   ;;  %s712_s7 = inlined_call_operand.vmem [shape: f32[2,16,256], index: 7, kind: output, shape index: {}]  }
   0x1 LB: > { %s564_s25 = sadd.s32 4294967295, %s609_s24   ;;  %p568_p0 = scmp.ge.s32.totalorder %s609_s24, 1  ;;  %s609_s24 = sphi %s654_s24, %s17_s24  }
   0x2   : > { %p237_p1 = scmp.lt.s32.totalorder %s609_s24, 3 }
   0x4   : > { %p238_p2 = pnand %p568_p0, %p237_p1 }
   0x5   : > { %p269_p3 = scmp.lt.s32.totalorder (!%p238_p2), %s564_s25, 1  ;;  %v611_v0 = vmov (!%p238_p2), 0.0   ;;  %v284_v1 = vld [vmem:[%s707_s2] sm:$0xff] (!%p238_p2)  ;;  %vm294_vm0 = vcmask (!%p238_p2), 1042432   ;;  %v612_v2 = vmov (!%p238_p2), 0   ;;  %vm613_vm1 = vmmov (!%p238_p2), 1  }
   0x6   : > { %241 = sbr.rel (%p238_p2) target bundleno = 777 (0x309), region = 48  ;;  %365 = vmatprep.mubr.f32.mxu0 (!%p238_p2), %v611_v0  ;;  %492 = vmatprep.mubr.f32.mxu1 (!%p238_p2), %v611_v0  ;;  %vm583_vm2 = vmpackc.low (!%p238_p2), %vm294_vm0, %vm613_vm1  ;;  %v283_v9 = vld [vmem:[%s706_s1] sm:$0xff] (!%p238_p2)  ;;  %vm290_vm3 = vcmask (!%p238_p2), 89088   ;;  %v410_v26 = vld [vmem:[%s711_s6 + $0x8] sm:$0xff] (!%p238_p2)  ;;  %vm421_vm4 = vcmask (!%p238_p2), 64512  }
   0x7   : > { %599 = vset.pattern.permute.xlu0 (!%p238_p2), %v612_v2  ;;  %600 = vset.pattern.permute.xlu1 (!%p238_p2), %v612_v2  ;;  %v389_v10 = vld [vmem:[%s708_s3] sm:$0xff] (!%p238_p2)  ;;  %v408_v42 = vld [vmem:[%s710_s5 + $0x8] sm:$0xff] (!%p238_p2) }
   0x8   : > { %287 = vperm.xlu0 (!%p238_p2), %599, %v284_v1   ;;  %392 = vperm.xlu1 (!%p238_p2), %600, %v389_v10   ;;  %v397_v24 = vld [vmem:[%s709_s4] sm:$0xff] (!%p238_p2) }
   0x9   : > { %v409_v25 = vld [vmem:[%s711_s6] sm:$0xff] (!%p238_p2) }
   0xa   : > { %v407_v41 = vld [vmem:[%s710_s5] sm:$0xff] (!%p238_p2) }
   0xd   : > { %s714_s25 = smov (!%p269_p3, %s564_s25), 1 }
   0xe   : > { %s580_s28 = sshll.u32 %s714_s25, 5 }
   0xf   : > { %s273_s8 = scalar_lea.vmem %s705_s0, %s580_s28  ;;  %s278_s27 = scalar_lea.vmem %s712_s7, %s580_s28 }
  0x10   : > { %v280_v3 = vld [vmem:[%s273_s8 + $0x8] sm:$0xff]  ;;  %v282_v4 = vld [vmem:[%s273_s8 + $0x18] sm:$0x7]  ;;  %v279_v5 = vld [vmem:[%s273_s8] sm:$0xff] }
  0x11   : > { %v582_v6 = vpack.c.bf16 %v282_v4, %v280_v3  ;;  %v281_v7 = vld [vmem:[%s273_s8 + $0x10] sm:$0x7] }
  0x12   : > { %v585_v8 = vpack.c.bf16 %v281_v7, %v279_v5 }
  0x13   : > { %584 = vmatprep.subr.msk.bf16.mxu0 %vm583_vm2, %v582_v6 }
  0x14   : > { %587 = vmatpush1.bf16.msk.msra.mxu0 %vm583_vm2, %v585_v8 }
  0x17   : > { %575 = vmatmul.mubr.msk.f32.vlgmr.msra.gmra.mrb[0].mxu0 %vm290_vm3, %v283_v9 }
  0x87   : > { %v288_v11 = vpop.permute.xlu0 %287  ;;  %v393_v27 = vpop.permute.xlu1 %392 }
  0xea   : > { %v367_v12 = vpop.f32.mrb[0].mxu0 }
  0xeb   : > { %v368_v13 = vadd.f32 %v367_v12, %v288_v11  ;;  %v369_v14 = vpop.f32.mrb[1].mxu0 }
  0xec   : > { %v370_v15 = vadd.f32 %v369_v14, %v288_v11 }
  0xee   : > { %v372_v16 = vadd.f32 %v370_v15, %v368_v13 }
  0xf0   : > { %373 = vadd.xlane.f32.xlu0 %v372_v16 }
 0x17d   : > { %v374_v17 = vpop.xlane.xlu0 %373 }
 0x17e   : > { %v376_v18 = vmul.f32 0.00390625, %v374_v17 }
 0x180   : > { %v377_v19 = vsub.f32 %v368_v13, %v376_v18  ;;  %v378_v20 = vsub.f32 %v370_v15, %v376_v18 }
 0x182   : > { %v379_v21 = vmul.f32 %v377_v19, %v377_v19  ;;  %v380_v22 = vmul.f32 %v378_v20, %v378_v20 }
 0x184   : > { %v381_v23 = vadd.f32 %v380_v22, %v379_v21 }
 0x186   : > { %382 = vadd.xlane.f32.xlu1 %v381_v23 }
 0x197   : > { %400 = vperm.xlu1 %600, %v397_v24  }
 0x19b   : > { %413 = vperm.xlu1 %600, %v409_v25  }
 0x19f   : > { %418 = vperm.xlu1 %600, %v410_v26  }
 0x213   : > { %v383_v28 = vpop.xlane.xlu1 %382 }
 0x214   : > { %v384_v29 = vmul.f32 0.00390625, %v383_v28 }
 0x216   : > { %v385_v30 = vadd.f32 1e-05, %v384_v29 }
 0x217   : > { %v401_v36 = vpop.permute.xlu1 %400 }
 0x218   : > { %601 = vrsqrt.f32 %v385_v30 }
 0x21b   : > { %v414_v43 = vpop.permute.xlu1 %413 }
 0x21f   : > { %v419_v48 = vpop.permute.xlu1 %418 }
 0x222   : > { %v602_v31 = vpop.eup %601 }
 0x223   : > { %v387_v32 = vmul.f32 %v602_v31, %v377_v19  ;;  %v388_v33 = vmul.f32 %v602_v31, %v378_v20 }
 0x225   : > { %v395_v34 = vmul.f32 %v393_v27, %v387_v32  ;;  %v396_v35 = vmul.f32 %v393_v27, %v388_v33 }
 0x227   : > { %v403_v37 = vadd.f32 %v401_v36, %v395_v34  ;;  %v404_v38 = vadd.f32 %v401_v36, %v396_v35 }
 0x229   : > { %v406_v39 = vmax.f32 %v404_v38, 0.0  ;;  %v405_v40 = vmax.f32 %v403_v37, 0.0 }
 0x22b   : > { %428 = vmatprep.subr.mxu1 %v406_v39 }
 0x22c   : > { %429 = vmatpush1.msra.mxu1 %v405_v40 }
 0x22d   : > { %576 = vmatmul.mubr.msk.f32.vlgmr.msra.gmra.mrb[0].mxu1 %vm421_vm4, %v407_v41 }
 0x22e   : > { %498 = vmatprep.mubr.f32.mxu1 %v611_v0 }
 0x231   : > { %577 = vmatmul.mubr.msk.f32.gmra.mrb[2].mxu1 %vm421_vm4, %v408_v42 }
 0x300   : > { %v494_v44 = vpop.f32.mrb[0].mxu1 }
 0x301   : > { %v495_v45 = vadd.f32 %v494_v44, %v414_v43  ;;  %v496_v46 = vpop.f32.mrb[1].mxu1 }
 0x302   : > { %v497_v47 = vadd.f32 %v496_v46, %v414_v43 }
 0x303   : > { %505 = vst [vmem:[%s278_s27] sm:$0xff] %v495_v45 }
 0x304   : > { %506 = vst [vmem:[%s278_s27 + $0x8] sm:$0xff] %v497_v47  ;;  %v500_v49 = vpop.f32.mrb[2].mxu1 }
 0x305   : > { %v501_v50 = vadd.f32 %v500_v49, %v419_v48  ;;  %v502_v51 = vpop.f32.mrb[3].mxu1 }
 0x306   : > { %v503_v52 = vadd.f32 %v502_v51, %v419_v48 }
 0x307   : > { %507 = vst [vmem:[%s278_s27 + $0x10] sm:$0xff] %v501_v50 }
 0x308   : > { %508 = vst [vmem:[%s278_s27 + $0x18] sm:$0xff] %v503_v52 }
 0x309 PF: > { %s17_s24 = sadd.s32 1, %s609_s24  }
 0x30a   : > { %p14_p4 = scmp.ge.s32.totalorder %s17_s24, 4  }
 0x30c   :  { %16 = sbr.rel (!%p14_p4) target bundleno = 1 (0x1), region = 78 }

</bundles_post_ra>
